<compile_context>
chip_gen: v7x
topology: tpu7x:2x2x1
jax: 0.10.0
libtpu: 0.0.40
codegen_flags: <defaults>
</compile_context>

<pallas_src>
import functools
import math

import jax
import jax.numpy as jnp
from jax.experimental import pallas as pl
from jax.experimental.pallas import tpu as pltpu


# ------------------------------ fused kernel ---------------------------------
def _make_fused_lstm_fc_kernel(num_layers: int, seq_len: int, batch_padded: int,
                               hidden: int):
    """Kernel closure over static num_layers / seq_len / padded batch / hidden."""
    L, S, BP, H = num_layers, seq_len, batch_padded, hidden

    def kernel(*refs):
        idx = 0
        x_ref = refs[idx]; idx += 1                 # (S*BP, IP) time-major rows
        wih0_ref = refs[idx]; idx += 1              # (IP, 4H)  layer-0 W_ih^T (padded)
        whh0_ref = refs[idx]; idx += 1              # (H, 4H)   layer-0 W_hh^T
        b0_ref = refs[idx]; idx += 1                # (1, 4H)
        stk_refs = []
        for _ in range(L - 1):                      # layers >= 1: stacked weights
            stk_refs.append((refs[idx], refs[idx + 1]))   # (2H, 4H), (1, 4H)
            idx += 2
        fcw_ref = refs[idx]; idx += 1               # (H, OP)   OP = 128-padded out
        fcb_ref = refs[idx]; idx += 1               # (1, OP)
        out_ref = refs[idx]; idx += 1               # (S*BP, OP)
        hs_ref = refs[idx]; idx += 1                # VMEM scratch (S*BP, H)

        # Loop-invariant loads hoisted once.
        whh0 = whh0_ref[...]
        stk = [(w[...], b[...]) for (w, b) in stk_refs]

        # Layer-0 input projection for the WHOLE sequence: one matmul, off the
        # serial recurrence chain.  K = IP (128-padded input width).
        gx0 = jnp.dot(x_ref[...], wih0_ref[...],
                      preferred_element_type=jnp.float32) + b0_ref[...]

        def cell(g, c_prev):
            # PyTorch gate order: i, f, g, o — each gate a full 128-lane slab.
            i_g = jax.nn.sigmoid(g[:, 0 * H:1 * H])
            f_g = jax.nn.sigmoid(g[:, 1 * H:2 * H])
            g_g = jnp.tanh(g[:, 2 * H:3 * H])
            o_g = jax.nn.sigmoid(g[:, 3 * H:4 * H])
            c_new = f_g * c_prev + i_g * g_g
            h_new = o_g * jnp.tanh(c_new)
            return h_new, c_new

        zero = jnp.zeros((BP, H), jnp.float32)
        h = [zero] * L
        c = [zero] * L

        # Fully unrolled wavefront over time: layer-0 step t, then layers 1..L-1
        # step t.  Layer-0 step t+1 is independent of layer l>=1 step t, so the
        # scheduler can overlap them on the MXU/EUP pipelines.
        for t in range(S):
            # ---- layer 0, step t (K = H recurrent matmul on the chain) ----
            g0 = gx0[t * BP:(t + 1) * BP, :] + jnp.dot(
                h[0], whh0, preferred_element_type=jnp.float32)
            h[0], c[0] = cell(g0, c[0])
            # ---- layers 1..L-1, step t: stacked K = 2H matmul (fills the MXU) ----
            for l in range(1, L):
                w_stk, b_l = stk[l - 1]
                lhs = jnp.concatenate([h[l - 1], h[l]], axis=1)       # (BP, 2H)
                g = jnp.dot(lhs, w_stk, preferred_element_type=jnp.float32) + b_l
                h[l], c[l] = cell(g, c[l])
            # Top-layer hidden into its static row slot (single aligned store).
            hs_ref[pl.ds(t * BP, BP), :] = h[L - 1]
            # TODO(synk): nn.LSTM(dropout=0.3) applies dropout between layers only
            # in training mode; this implements the eval-mode (inference) forward.

        # FC head: one (S*BP, H) @ (H, OP) matmul and a single lane-dense store.
        out_ref[...] = (jnp.dot(hs_ref[...], fcw_ref[...],
                                preferred_element_type=jnp.float32) + fcb_ref[...])

    return kernel


# ------------------------------- model forward --------------------------------
@functools.partial(jax.jit, static_argnames=("output_size",))
def lstm_model_forward(x, packed, *, output_size):
    """x: (B, S, input_size) batch_first, like the PyTorch module. Returns (B, S, O)."""
    B, S, IN = x.shape
    IP = packed["wih0_t"].shape[0]                 # 128-padded input width
    H = packed["whh0_t"].shape[0]
    OP = packed["fc_w_t"].shape[1]
    L = 1 + len(packed["stacked"])
    BP = ((B + 7) // 8) * 8                        # pad batch to the 8-sublane width

    # time-major rows: row t*BP + b <-> (time t, batch b); padded rows/cols are zero.
    x_tm = jnp.transpose(x, (1, 0, 2)).astype(jnp.float32)        # (S, B, IN)
    x_tm = jnp.pad(x_tm, ((0, 0), (0, BP - B), (0, IP - IN)))     # (S, BP, IP)
    x2d = x_tm.reshape(S * BP, IP)

    args = [x2d, packed["wih0_t"], packed["whh0_t"], packed["b0"]]
    for sp in packed["stacked"]:
        args += [sp["w"], sp["b"]]
    args += [packed["fc_w_t"], packed["fc_b"]]

    flops = (2 * S * BP * IP * 4 * H               # layer-0 input projection
             + 2 * S * BP * H * 4 * H              # layer-0 recurrent matmuls
             + (L - 1) * 2 * S * BP * 2 * H * 4 * H  # stacked layers >= 1
             + 2 * S * BP * H * OP)                # FC head
    transcendentals = S * BP * L * 5 * H           # 3 sigmoid + 2 tanh per step/layer
    bytes_accessed = 4 * (x2d.size + sum(int(a.size) for a in args[1:]) + S * BP * OP)

    out2d = pl.pallas_call(
        _make_fused_lstm_fc_kernel(L, S, BP, H),
        out_shape=jax.ShapeDtypeStruct((S * BP, OP), jnp.float32),
        scratch_shapes=[pltpu.VMEM((S * BP, H), jnp.float32)],
        cost_estimate=pl.CostEstimate(flops=int(flops),
                                      transcendentals=int(transcendentals),
                                      bytes_accessed=int(bytes_accessed)),
    )(*args)

    out = out2d.reshape(S, BP, OP)[:, :B, :output_size]
    return jnp.transpose(out, (1, 0, 2))                          # (B, S, output_size)


# ----------------------------- param construction -----------------------------
def init_params(key, input_size, hidden_size, output_size, num_layers):
    """PyTorch-layout parameters (same shapes/init style as nn.LSTM / nn.Linear)."""
    k = 1.0 / math.sqrt(hidden_size)
    layers = []
    in_sz = input_size
    for _ in range(num_layers):
        key, k1, k2, k3, k4 = jax.random.split(key, 5)
        layers.append(dict(
            w_ih=jax.random.uniform(k1, (4 * hidden_size, in_sz), jnp.float32, -k, k),
            w_hh=jax.random.uniform(k2, (4 * hidden_size, hidden_size), jnp.float32, -k, k),
            b_ih=jax.random.uniform(k3, (4 * hidden_size,), jnp.float32, -k, k),
            b_hh=jax.random.uniform(k4, (4 * hidden_size,), jnp.float32, -k, k),
        ))
        in_sz = hidden_size
    key, k5, k6 = jax.random.split(key, 3)
    return dict(
        lstm=layers,
        fc_w=jax.random.uniform(k5, (output_size, hidden_size), jnp.float32, -k, k),
        fc_b=jax.random.uniform(k6, (output_size,), jnp.float32, -k, k),
    )


def pack_params(params):
    """One-time repack: transposed / stacked / padded weights for the fused kernel."""
    layers = params["lstm"]
    H = layers[0]["w_hh"].shape[1]
    IN = layers[0]["w_ih"].shape[1]
    IP = ((IN + 127) // 128) * 128                 # 128-lane-pad layer-0 input width
    wih0_t = jnp.zeros((IP, 4 * H), jnp.float32).at[:IN, :].set(
        jnp.transpose(layers[0]["w_ih"]))
    whh0_t = jnp.transpose(layers[0]["w_hh"])
    b0 = (layers[0]["b_ih"] + layers[0]["b_hh"]).reshape(1, -1)

    stacked = []
    for lp in layers[1:]:
        # Stacked [W_ih^T ; W_hh^T] -> (2H, 4H); LHS per step is [h_{l-1}, h_l_prev].
        w_stk = jnp.concatenate(
            [jnp.transpose(lp["w_ih"]), jnp.transpose(lp["w_hh"])], axis=0)
        b = (lp["b_ih"] + lp["b_hh"]).reshape(1, -1)
        stacked.append(dict(w=w_stk, b=b))

    O, H2 = params["fc_w"].shape
    OP = ((O + 127) // 128) * 128                  # lane-dense output width
    fc_w_t = jnp.zeros((H2, OP), jnp.float32).at[:, :O].set(
        jnp.transpose(params["fc_w"]))
    fc_b = jnp.zeros((1, OP), jnp.float32).at[:, :O].set(params["fc_b"])
    return dict(wih0_t=wih0_t, whh0_t=whh0_t, b0=b0, stacked=stacked,
                fc_w_t=fc_w_t, fc_b=fc_b)


# ------------------------------ pure-JAX reference ----------------------------
def lstm_model_reference(x, params):
    h = x.astype(jnp.float32)
    B, S, _ = h.shape
    for lp in params["lstm"]:
        H = lp["w_hh"].shape[1]
        ht = jnp.zeros((B, H), jnp.float32)
        ct = jnp.zeros((B, H), jnp.float32)
        hs = []
        for t in range(S):
            g = (h[:, t, :] @ lp["w_ih"].T + ht @ lp["w_hh"].T
                 + lp["b_ih"] + lp["b_hh"])
            i_g = jax.nn.sigmoid(g[:, :H])
            f_g = jax.nn.sigmoid(g[:, H:2 * H])
            g_g = jnp.tanh(g[:, 2 * H:3 * H])
            o_g = jax.nn.sigmoid(g[:, 3 * H:])
            ct = f_g * ct + i_g * g_g
            ht = o_g * jnp.tanh(ct)
            hs.append(ht)
        h = jnp.stack(hs, axis=1)                             # (B, S, H)
    return h @ params["fc_w"].T + params["fc_b"]


if __name__ == "__main__":
    # Shapes from the module spec: input=36, hidden=128, layers=2, output=53.
    batch, seq = 2, 8
    input_size, hidden_size, output_size, num_layers = 36, 128, 53, 2

    root = jax.random.PRNGKey(0)
    kx, kp = jax.random.split(root)
    x = jax.random.normal(kx, (batch, seq, input_size), jnp.float32)
    params = init_params(kp, input_size, hidden_size, output_size, num_layers)
    packed = pack_params(params)                              # one-time repack

    out = lstm_model_forward(x, packed, output_size=output_size)
    out = jax.block_until_ready(out)
    assert out.shape == (batch, seq, output_size), out.shape
    assert bool(jnp.all(jnp.isfinite(out)))

    ref = lstm_model_reference(x, params)
    assert bool(jnp.allclose(out, ref, atol=1e-3, rtol=1e-3)), \
        float(jnp.max(jnp.abs(out - ref)))

    print("KERNEL_OK")
</pallas_src>

<mosaic_0001>
module attributes {stable_mosaic.version = 11 : i64} {
  func.func @kernel(%arg0: memref<64x128xf32, #tpu.memory_space<vmem>>, %arg1: memref<128x512xf32, #tpu.memory_space<vmem>>, %arg2: memref<128x512xf32, #tpu.memory_space<vmem>>, %arg3: memref<1x512xf32, #tpu.memory_space<vmem>>, %arg4: memref<256x512xf32, #tpu.memory_space<vmem>>, %arg5: memref<1x512xf32, #tpu.memory_space<vmem>>, %arg6: memref<128x128xf32, #tpu.memory_space<vmem>>, %arg7: memref<1x128xf32, #tpu.memory_space<vmem>>, %arg8: memref<64x128xf32, #tpu.memory_space<vmem>>, %arg9: memref<64x128xf32, #tpu.memory_space<vmem>>) attributes {dimension_semantics = [], scalar_prefetch = 0 : i64, scratch_operands = 1 : i64, tpu.core_type = #tpu.core_type<tc>} {
    %c0 = arith.constant 0 : index
    %c0_0 = arith.constant 0 : index
    %0 = vector.load %arg2[%c0, %c0_0] : memref<128x512xf32, #tpu.memory_space<vmem>>, vector<128x512xf32>
    %c0_1 = arith.constant 0 : index
    %c0_2 = arith.constant 0 : index
    %1 = vector.load %arg4[%c0_1, %c0_2] : memref<256x512xf32, #tpu.memory_space<vmem>>, vector<256x512xf32>
    %c0_3 = arith.constant 0 : index
    %c0_4 = arith.constant 0 : index
    %2 = vector.load %arg5[%c0_3, %c0_4] : memref<1x512xf32, #tpu.memory_space<vmem>>, vector<1x512xf32>
    %c0_5 = arith.constant 0 : index
    %c0_6 = arith.constant 0 : index
    %3 = vector.load %arg0[%c0_5, %c0_6] : memref<64x128xf32, #tpu.memory_space<vmem>>, vector<64x128xf32>
    %c0_7 = arith.constant 0 : index
    %c0_8 = arith.constant 0 : index
    %4 = vector.load %arg1[%c0_7, %c0_8] : memref<128x512xf32, #tpu.memory_space<vmem>>, vector<128x512xf32>
    %cst = arith.constant dense<0.000000e+00> : vector<64x512xf32>
    %5 = tpu.matmul %3, %4, %cst {dimension_numbers = #tpu.dot_dimension_numbers<[1], [0], [0], [1], [0, 0, 1, 1], [], []>} : vector<64x128xf32>, vector<128x512xf32>, vector<64x512xf32> -> vector<64x512xf32>
    %c0_9 = arith.constant 0 : index
    %c0_10 = arith.constant 0 : index
    %6 = vector.load %arg3[%c0_9, %c0_10] : memref<1x512xf32, #tpu.memory_space<vmem>>, vector<1x512xf32>
    %7 = vector.broadcast %6 : vector<1x512xf32> to vector<64x512xf32>
    %8 = arith.addf %5, %7 : vector<64x512xf32>
    %cst_11 = arith.constant 0.000000e+00 : f32
    %9 = vector.broadcast %cst_11 : f32 to vector<8x128xf32>
    %10 = vector.extract_strided_slice %8 {offsets = [0, 0], sizes = [8, 512], strides = [1, 1]} : vector<64x512xf32> to vector<8x512xf32>
    %cst_12 = arith.constant dense<0.000000e+00> : vector<8x512xf32>
    %11 = tpu.matmul %9, %0, %cst_12 {dimension_numbers = #tpu.dot_dimension_numbers<[1], [0], [0], [1], [0, 0, 1, 1], [], []>} : vector<8x128xf32>, vector<128x512xf32>, vector<8x512xf32> -> vector<8x512xf32>
    %12 = arith.addf %10, %11 : vector<8x512xf32>
    %13 = vector.extract_strided_slice %12 {offsets = [0, 0], sizes = [8, 128], strides = [1, 1]} : vector<8x512xf32> to vector<8x128xf32>
    %14 = arith.negf %13 : vector<8x128xf32>
    %15 = math.exp %14 : vector<8x128xf32>
    %cst_13 = arith.constant 1.000000e+00 : f32
    %16 = vector.broadcast %cst_13 : f32 to vector<8x128xf32>
    %17 = arith.addf %16, %15 : vector<8x128xf32>
    %18 = arith.divf %16, %17 : vector<8x128xf32>
    %19 = vector.extract_strided_slice %12 {offsets = [0, 128], sizes = [8, 128], strides = [1, 1]} : vector<8x512xf32> to vector<8x128xf32>
    %20 = arith.negf %19 : vector<8x128xf32>
    %21 = math.exp %20 : vector<8x128xf32>
    %cst_14 = arith.constant 1.000000e+00 : f32
    %22 = vector.broadcast %cst_14 : f32 to vector<8x128xf32>
    %23 = arith.addf %22, %21 : vector<8x128xf32>
    %24 = arith.divf %22, %23 : vector<8x128xf32>
    %25 = vector.extract_strided_slice %12 {offsets = [0, 256], sizes = [8, 128], strides = [1, 1]} : vector<8x512xf32> to vector<8x128xf32>
    %26 = math.tanh %25 : vector<8x128xf32>
    %27 = vector.extract_strided_slice %12 {offsets = [0, 384], sizes = [8, 128], strides = [1, 1]} : vector<8x512xf32> to vector<8x128xf32>
    %28 = arith.negf %27 : vector<8x128xf32>
    %29 = math.exp %28 : vector<8x128xf32>
    %cst_15 = arith.constant 1.000000e+00 : f32
    %30 = vector.broadcast %cst_15 : f32 to vector<8x128xf32>
    %31 = arith.addf %30, %29 : vector<8x128xf32>
    %32 = arith.divf %30, %31 : vector<8x128xf32>
    %33 = arith.mulf %24, %9 : vector<8x128xf32>
    %34 = arith.mulf %18, %26 : vector<8x128xf32>
    %35 = arith.addf %33, %34 : vector<8x128xf32>
    %36 = math.tanh %35 : vector<8x128xf32>
    %37 = arith.mulf %32, %36 : vector<8x128xf32>
    %38 = tpu.concatenate %37, %9 in 1 : vector<8x128xf32>, vector<8x128xf32> -> vector<8x256xf32>
    %cst_16 = arith.constant dense<0.000000e+00> : vector<8x512xf32>
    %39 = tpu.matmul %38, %1, %cst_16 {dimension_numbers = #tpu.dot_dimension_numbers<[1], [0], [0], [1], [0, 0, 1, 1], [], []>} : vector<8x256xf32>, vector<256x512xf32>, vector<8x512xf32> -> vector<8x512xf32>
    %40 = vector.broadcast %2 : vector<1x512xf32> to vector<8x512xf32>
    %41 = arith.addf %39, %40 : vector<8x512xf32>
    %42 = vector.extract_strided_slice %41 {offsets = [0, 0], sizes = [8, 128], strides = [1, 1]} : vector<8x512xf32> to vector<8x128xf32>
    %43 = arith.negf %42 : vector<8x128xf32>
    %44 = math.exp %43 : vector<8x128xf32>
    %cst_17 = arith.constant 1.000000e+00 : f32
    %45 = vector.broadcast %cst_17 : f32 to vector<8x128xf32>
    %46 = arith.addf %45, %44 : vector<8x128xf32>
    %47 = arith.divf %45, %46 : vector<8x128xf32>
    %48 = vector.extract_strided_slice %41 {offsets = [0, 128], sizes = [8, 128], strides = [1, 1]} : vector<8x512xf32> to vector<8x128xf32>
    %49 = arith.negf %48 : vector<8x128xf32>
    %50 = math.exp %49 : vector<8x128xf32>
    %cst_18 = arith.constant 1.000000e+00 : f32
    %51 = vector.broadcast %cst_18 : f32 to vector<8x128xf32>
    %52 = arith.addf %51, %50 : vector<8x128xf32>
    %53 = arith.divf %51, %52 : vector<8x128xf32>
    %54 = vector.extract_strided_slice %41 {offsets = [0, 256], sizes = [8, 128], strides = [1, 1]} : vector<8x512xf32> to vector<8x128xf32>
    %55 = math.tanh %54 : vector<8x128xf32>
    %56 = vector.extract_strided_slice %41 {offsets = [0, 384], sizes = [8, 128], strides = [1, 1]} : vector<8x512xf32> to vector<8x128xf32>
    %57 = arith.negf %56 : vector<8x128xf32>
    %58 = math.exp %57 : vector<8x128xf32>
    %cst_19 = arith.constant 1.000000e+00 : f32
    %59 = vector.broadcast %cst_19 : f32 to vector<8x128xf32>
    %60 = arith.addf %59, %58 : vector<8x128xf32>
    %61 = arith.divf %59, %60 : vector<8x128xf32>
    %62 = arith.mulf %53, %9 : vector<8x128xf32>
    %63 = arith.mulf %47, %55 : vector<8x128xf32>
    %64 = arith.addf %62, %63 : vector<8x128xf32>
    %65 = math.tanh %64 : vector<8x128xf32>
    %66 = arith.mulf %61, %65 : vector<8x128xf32>
    %c0_20 = arith.constant 0 : index
    %c0_21 = arith.constant 0 : index
    %67 = vector.load %arg9[%c0_20, %c0_21] : memref<64x128xf32, #tpu.memory_space<vmem>>, vector<8x128xf32>
    tpu.vector_store %arg9[%c0_20, %c0_21], %66 {strides = array<i32>} : memref<64x128xf32, #tpu.memory_space<vmem>>, vector<8x128xf32>,
    %68 = vector.extract_strided_slice %8 {offsets = [8, 0], sizes = [8, 512], strides = [1, 1]} : vector<64x512xf32> to vector<8x512xf32>
    %cst_22 = arith.constant dense<0.000000e+00> : vector<8x512xf32>
    %69 = tpu.matmul %37, %0, %cst_22 {dimension_numbers = #tpu.dot_dimension_numbers<[1], [0], [0], [1], [0, 0, 1, 1], [], []>} : vector<8x128xf32>, vector<128x512xf32>, vector<8x512xf32> -> vector<8x512xf32>
    %70 = arith.addf %68, %69 : vector<8x512xf32>
    %71 = vector.extract_strided_slice %70 {offsets = [0, 0], sizes = [8, 128], strides = [1, 1]} : vector<8x512xf32> to vector<8x128xf32>
    %72 = arith.negf %71 : vector<8x128xf32>
    %73 = math.exp %72 : vector<8x128xf32>
    %cst_23 = arith.constant 1.000000e+00 : f32
    %74 = vector.broadcast %cst_23 : f32 to vector<8x128xf32>
    %75 = arith.addf %74, %73 : vector<8x128xf32>
    %76 = arith.divf %74, %75 : vector<8x128xf32>
    %77 = vector.extract_strided_slice %70 {offsets = [0, 128], sizes = [8, 128], strides = [1, 1]} : vector<8x512xf32> to vector<8x128xf32>
    %78 = arith.negf %77 : vector<8x128xf32>
    %79 = math.exp %78 : vector<8x128xf32>
    %cst_24 = arith.constant 1.000000e+00 : f32
    %80 = vector.broadcast %cst_24 : f32 to vector<8x128xf32>
    %81 = arith.addf %80, %79 : vector<8x128xf32>
    %82 = arith.divf %80, %81 : vector<8x128xf32>
    %83 = vector.extract_strided_slice %70 {offsets = [0, 256], sizes = [8, 128], strides = [1, 1]} : vector<8x512xf32> to vector<8x128xf32>
    %84 = math.tanh %83 : vector<8x128xf32>
    %85 = vector.extract_strided_slice %70 {offsets = [0, 384], sizes = [8, 128], strides = [1, 1]} : vector<8x512xf32> to vector<8x128xf32>
    %86 = arith.negf %85 : vector<8x128xf32>
    %87 = math.exp %86 : vector<8x128xf32>
    %cst_25 = arith.constant 1.000000e+00 : f32
    %88 = vector.broadcast %cst_25 : f32 to vector<8x128xf32>
    %89 = arith.addf %88, %87 : vector<8x128xf32>
    %90 = arith.divf %88, %89 : vector<8x128xf32>
    %91 = arith.mulf %82, %35 : vector<8x128xf32>
    %92 = arith.mulf %76, %84 : vector<8x128xf32>
    %93 = arith.addf %91, %92 : vector<8x128xf32>
    %94 = math.tanh %93 : vector<8x128xf32>
    %95 = arith.mulf %90, %94 : vector<8x128xf32>
    %96 = tpu.concatenate %95, %66 in 1 : vector<8x128xf32>, vector<8x128xf32> -> vector<8x256xf32>
    %cst_26 = arith.constant dense<0.000000e+00> : vector<8x512xf32>
    %97 = tpu.matmul %96, %1, %cst_26 {dimension_numbers = #tpu.dot_dimension_numbers<[1], [0], [0], [1], [0, 0, 1, 1], [], []>} : vector<8x256xf32>, vector<256x512xf32>, vector<8x512xf32> -> vector<8x512xf32>
    %98 = vector.broadcast %2 : vector<1x512xf32> to vector<8x512xf32>
    %99 = arith.addf %97, %98 : vector<8x512xf32>
    %100 = vector.extract_strided_slice %99 {offsets = [0, 0], sizes = [8, 128], strides = [1, 1]} : vector<8x512xf32> to vector<8x128xf32>
    %101 = arith.negf %100 : vector<8x128xf32>
    %102 = math.exp %101 : vector<8x128xf32>
    %cst_27 = arith.constant 1.000000e+00 : f32
    %103 = vector.broadcast %cst_27 : f32 to vector<8x128xf32>
    %104 = arith.addf %103, %102 : vector<8x128xf32>
    %105 = arith.divf %103, %104 : vector<8x128xf32>
    %106 = vector.extract_strided_slice %99 {offsets = [0, 128], sizes = [8, 128], strides = [1, 1]} : vector<8x512xf32> to vector<8x128xf32>
    %107 = arith.negf %106 : vector<8x128xf32>
    %108 = math.exp %107 : vector<8x128xf32>
    %cst_28 = arith.constant 1.000000e+00 : f32
    %109 = vector.broadcast %cst_28 : f32 to vector<8x128xf32>
    %110 = arith.addf %109, %108 : vector<8x128xf32>
    %111 = arith.divf %109, %110 : vector<8x128xf32>
    %112 = vector.extract_strided_slice %99 {offsets = [0, 256], sizes = [8, 128], strides = [1, 1]} : vector<8x512xf32> to vector<8x128xf32>
    %113 = math.tanh %112 : vector<8x128xf32>
    %114 = vector.extract_strided_slice %99 {offsets = [0, 384], sizes = [8, 128], strides = [1, 1]} : vector<8x512xf32> to vector<8x128xf32>
    %115 = arith.negf %114 : vector<8x128xf32>
    %116 = math.exp %115 : vector<8x128xf32>
    %cst_29 = arith.constant 1.000000e+00 : f32
    %117 = vector.broadcast %cst_29 : f32 to vector<8x128xf32>
    %118 = arith.addf %117, %116 : vector<8x128xf32>
    %119 = arith.divf %117, %118 : vector<8x128xf32>
    %120 = arith.mulf %111, %64 : vector<8x128xf32>
    %121 = arith.mulf %105, %113 : vector<8x128xf32>
    %122 = arith.addf %120, %121 : vector<8x128xf32>
    %123 = math.tanh %122 : vector<8x128xf32>
    %124 = arith.mulf %119, %123 : vector<8x128xf32>
    %c8 = arith.constant 8 : index
    %c0_30 = arith.constant 0 : index
    %125 = vector.load %arg9[%c8, %c0_30] : memref<64x128xf32, #tpu.memory_space<vmem>>, vector<8x128xf32>
    tpu.vector_store %arg9[%c8, %c0_30], %124 {strides = array<i32>} : memref<64x128xf32, #tpu.memory_space<vmem>>, vector<8x128xf32>,
    %126 = vector.extract_strided_slice %8 {offsets = [16, 0], sizes = [8, 512], strides = [1, 1]} : vector<64x512xf32> to vector<8x512xf32>
    %cst_31 = arith.constant dense<0.000000e+00> : vector<8x512xf32>
    %127 = tpu.matmul %95, %0, %cst_31 {dimension_numbers = #tpu.dot_dimension_numbers<[1], [0], [0], [1], [0, 0, 1, 1], [], []>} : vector<8x128xf32>, vector<128x512xf32>, vector<8x512xf32> -> vector<8x512xf32>
    %128 = arith.addf %126, %127 : vector<8x512xf32>
    %129 = vector.extract_strided_slice %128 {offsets = [0, 0], sizes = [8, 128], strides = [1, 1]} : vector<8x512xf32> to vector<8x128xf32>
    %130 = arith.negf %129 : vector<8x128xf32>
    %131 = math.exp %130 : vector<8x128xf32>
    %cst_32 = arith.constant 1.000000e+00 : f32
    %132 = vector.broadcast %cst_32 : f32 to vector<8x128xf32>
    %133 = arith.addf %132, %131 : vector<8x128xf32>
    %134 = arith.divf %132, %133 : vector<8x128xf32>
    %135 = vector.extract_strided_slice %128 {offsets = [0, 128], sizes = [8, 128], strides = [1, 1]} : vector<8x512xf32> to vector<8x128xf32>
    %136 = arith.negf %135 : vector<8x128xf32>
    %137 = math.exp %136 : vector<8x128xf32>
    %cst_33 = arith.constant 1.000000e+00 : f32
    %138 = vector.broadcast %cst_33 : f32 to vector<8x128xf32>
    %139 = arith.addf %138, %137 : vector<8x128xf32>
    %140 = arith.divf %138, %139 : vector<8x128xf32>
    %141 = vector.extract_strided_slice %128 {offsets = [0, 256], sizes = [8, 128], strides = [1, 1]} : vector<8x512xf32> to vector<8x128xf32>
    %142 = math.tanh %141 : vector<8x128xf32>
    %143 = vector.extract_strided_slice %128 {offsets = [0, 384], sizes = [8, 128], strides = [1, 1]} : vector<8x512xf32> to vector<8x128xf32>
    %144 = arith.negf %143 : vector<8x128xf32>
    %145 = math.exp %144 : vector<8x128xf32>
    %cst_34 = arith.constant 1.000000e+00 : f32
    %146 = vector.broadcast %cst_34 : f32 to vector<8x128xf32>
    %147 = arith.addf %146, %145 : vector<8x128xf32>
    %148 = arith.divf %146, %147 : vector<8x128xf32>
    %149 = arith.mulf %140, %93 : vector<8x128xf32>
    %150 = arith.mulf %134, %142 : vector<8x128xf32>
    %151 = arith.addf %149, %150 : vector<8x128xf32>
    %152 = math.tanh %151 : vector<8x128xf32>
    %153 = arith.mulf %148, %152 : vector<8x128xf32>
    %154 = tpu.concatenate %153, %124 in 1 : vector<8x128xf32>, vector<8x128xf32> -> vector<8x256xf32>
    %cst_35 = arith.constant dense<0.000000e+00> : vector<8x512xf32>
    %155 = tpu.matmul %154, %1, %cst_35 {dimension_numbers = #tpu.dot_dimension_numbers<[1], [0], [0], [1], [0, 0, 1, 1], [], []>} : vector<8x256xf32>, vector<256x512xf32>, vector<8x512xf32> -> vector<8x512xf32>
    %156 = vector.broadcast %2 : vector<1x512xf32> to vector<8x512xf32>
    %157 = arith.addf %155, %156 : vector<8x512xf32>
    %158 = vector.extract_strided_slice %157 {offsets = [0, 0], sizes = [8, 128], strides = [1, 1]} : vector<8x512xf32> to vector<8x128xf32>
    %159 = arith.negf %158 : vector<8x128xf32>
    %160 = math.exp %159 : vector<8x128xf32>
    %cst_36 = arith.constant 1.000000e+00 : f32
    %161 = vector.broadcast %cst_36 : f32 to vector<8x128xf32>
    %162 = arith.addf %161, %160 : vector<8x128xf32>
    %163 = arith.divf %161, %162 : vector<8x128xf32>
    %164 = vector.extract_strided_slice %157 {offsets = [0, 128], sizes = [8, 128], strides = [1, 1]} : vector<8x512xf32> to vector<8x128xf32>
    %165 = arith.negf %164 : vector<8x128xf32>
    %166 = math.exp %165 : vector<8x128xf32>
    %cst_37 = arith.constant 1.000000e+00 : f32
    %167 = vector.broadcast %cst_37 : f32 to vector<8x128xf32>
    %168 = arith.addf %167, %166 : vector<8x128xf32>
    %169 = arith.divf %167, %168 : vector<8x128xf32>
    %170 = vector.extract_strided_slice %157 {offsets = [0, 256], sizes = [8, 128], strides = [1, 1]} : vector<8x512xf32> to vector<8x128xf32>
    %171 = math.tanh %170 : vector<8x128xf32>
    %172 = vector.extract_strided_slice %157 {offsets = [0, 384], sizes = [8, 128], strides = [1, 1]} : vector<8x512xf32> to vector<8x128xf32>
    %173 = arith.negf %172 : vector<8x128xf32>
    %174 = math.exp %173 : vector<8x128xf32>
    %cst_38 = arith.constant 1.000000e+00 : f32
    %175 = vector.broadcast %cst_38 : f32 to vector<8x128xf32>
    %176 = arith.addf %175, %174 : vector<8x128xf32>
    %177 = arith.divf %175, %176 : vector<8x128xf32>
    %178 = arith.mulf %169, %122 : vector<8x128xf32>
    %179 = arith.mulf %163, %171 : vector<8x128xf32>
    %180 = arith.addf %178, %179 : vector<8x128xf32>
    %181 = math.tanh %180 : vector<8x128xf32>
    %182 = arith.mulf %177, %181 : vector<8x128xf32>
    %c16 = arith.constant 16 : index
    %c0_39 = arith.constant 0 : index
    %183 = vector.load %arg9[%c16, %c0_39] : memref<64x128xf32, #tpu.memory_space<vmem>>, vector<8x128xf32>
    tpu.vector_store %arg9[%c16, %c0_39], %182 {strides = array<i32>} : memref<64x128xf32, #tpu.memory_space<vmem>>, vector<8x128xf32>,
    %184 = vector.extract_strided_slice %8 {offsets = [24, 0], sizes = [8, 512], strides = [1, 1]} : vector<64x512xf32> to vector<8x512xf32>
    %cst_40 = arith.constant dense<0.000000e+00> : vector<8x512xf32>
    %185 = tpu.matmul %153, %0, %cst_40 {dimension_numbers = #tpu.dot_dimension_numbers<[1], [0], [0], [1], [0, 0, 1, 1], [], []>} : vector<8x128xf32>, vector<128x512xf32>, vector<8x512xf32> -> vector<8x512xf32>
    %186 = arith.addf %184, %185 : vector<8x512xf32>
    %187 = vector.extract_strided_slice %186 {offsets = [0, 0], sizes = [8, 128], strides = [1, 1]} : vector<8x512xf32> to vector<8x128xf32>
    %188 = arith.negf %187 : vector<8x128xf32>
    %189 = math.exp %188 : vector<8x128xf32>
    %cst_41 = arith.constant 1.000000e+00 : f32
    %190 = vector.broadcast %cst_41 : f32 to vector<8x128xf32>
    %191 = arith.addf %190, %189 : vector<8x128xf32>
    %192 = arith.divf %190, %191 : vector<8x128xf32>
    %193 = vector.extract_strided_slice %186 {offsets = [0, 128], sizes = [8, 128], strides = [1, 1]} : vector<8x512xf32> to vector<8x128xf32>
    %194 = arith.negf %193 : vector<8x128xf32>
    %195 = math.exp %194 : vector<8x128xf32>
    %cst_42 = arith.constant 1.000000e+00 : f32
    %196 = vector.broadcast %cst_42 : f32 to vector<8x128xf32>
    %197 = arith.addf %196, %195 : vector<8x128xf32>
    %198 = arith.divf %196, %197 : vector<8x128xf32>
    %199 = vector.extract_strided_slice %186 {offsets = [0, 256], sizes = [8, 128], strides = [1, 1]} : vector<8x512xf32> to vector<8x128xf32>
    %200 = math.tanh %199 : vector<8x128xf32>
    %201 = vector.extract_strided_slice %186 {offsets = [0, 384], sizes = [8, 128], strides = [1, 1]} : vector<8x512xf32> to vector<8x128xf32>
    %202 = arith.negf %201 : vector<8x128xf32>
    %203 = math.exp %202 : vector<8x128xf32>
    %cst_43 = arith.constant 1.000000e+00 : f32
    %204 = vector.broadcast %cst_43 : f32 to vector<8x128xf32>
    %205 = arith.addf %204, %203 : vector<8x128xf32>
    %206 = arith.divf %204, %205 : vector<8x128xf32>
    %207 = arith.mulf %198, %151 : vector<8x128xf32>
    %208 = arith.mulf %192, %200 : vector<8x128xf32>
    %209 = arith.addf %207, %208 : vector<8x128xf32>
    %210 = math.tanh %209 : vector<8x128xf32>
    %211 = arith.mulf %206, %210 : vector<8x128xf32>
    %212 = tpu.concatenate %211, %182 in 1 : vector<8x128xf32>, vector<8x128xf32> -> vector<8x256xf32>
    %cst_44 = arith.constant dense<0.000000e+00> : vector<8x512xf32>
    %213 = tpu.matmul %212, %1, %cst_44 {dimension_numbers = #tpu.dot_dimension_numbers<[1], [0], [0], [1], [0, 0, 1, 1], [], []>} : vector<8x256xf32>, vector<256x512xf32>, vector<8x512xf32> -> vector<8x512xf32>
    %214 = vector.broadcast %2 : vector<1x512xf32> to vector<8x512xf32>
    %215 = arith.addf %213, %214 : vector<8x512xf32>
    %216 = vector.extract_strided_slice %215 {offsets = [0, 0], sizes = [8, 128], strides = [1, 1]} : vector<8x512xf32> to vector<8x128xf32>
    %217 = arith.negf %216 : vector<8x128xf32>
    %218 = math.exp %217 : vector<8x128xf32>
    %cst_45 = arith.constant 1.000000e+00 : f32
    %219 = vector.broadcast %cst_45 : f32 to vector<8x128xf32>
    %220 = arith.addf %219, %218 : vector<8x128xf32>
    %221 = arith.divf %219, %220 : vector<8x128xf32>
    %222 = vector.extract_strided_slice %215 {offsets = [0, 128], sizes = [8, 128], strides = [1, 1]} : vector<8x512xf32> to vector<8x128xf32>
    %223 = arith.negf %222 : vector<8x128xf32>
    %224 = math.exp %223 : vector<8x128xf32>
    %cst_46 = arith.constant 1.000000e+00 : f32
    %225 = vector.broadcast %cst_46 : f32 to vector<8x128xf32>
    %226 = arith.addf %225, %224 : vector<8x128xf32>
    %227 = arith.divf %225, %226 : vector<8x128xf32>
    %228 = vector.extract_strided_slice %215 {offsets = [0, 256], sizes = [8, 128], strides = [1, 1]} : vector<8x512xf32> to vector<8x128xf32>
    %229 = math.tanh %228 : vector<8x128xf32>
    %230 = vector.extract_strided_slice %215 {offsets = [0, 384], sizes = [8, 128], strides = [1, 1]} : vector<8x512xf32> to vector<8x128xf32>
    %231 = arith.negf %230 : vector<8x128xf32>
    %232 = math.exp %231 : vector<8x128xf32>
    %cst_47 = arith.constant 1.000000e+00 : f32
    %233 = vector.broadcast %cst_47 : f32 to vector<8x128xf32>
    %234 = arith.addf %233, %232 : vector<8x128xf32>
    %235 = arith.divf %233, %234 : vector<8x128xf32>
    %236 = arith.mulf %227, %180 : vector<8x128xf32>
    %237 = arith.mulf %221, %229 : vector<8x128xf32>
    %238 = arith.addf %236, %237 : vector<8x128xf32>
    %239 = math.tanh %238 : vector<8x128xf32>
    %240 = arith.mulf %235, %239 : vector<8x128xf32>
    %c24 = arith.constant 24 : index
    %c0_48 = arith.constant 0 : index
    %241 = vector.load %arg9[%c24, %c0_48] : memref<64x128xf32, #tpu.memory_space<vmem>>, vector<8x128xf32>
    tpu.vector_store %arg9[%c24, %c0_48], %240 {strides = array<i32>} : memref<64x128xf32, #tpu.memory_space<vmem>>, vector<8x128xf32>,
    %242 = vector.extract_strided_slice %8 {offsets = [32, 0], sizes = [8, 512], strides = [1, 1]} : vector<64x512xf32> to vector<8x512xf32>
    %cst_49 = arith.constant dense<0.000000e+00> : vector<8x512xf32>
    %243 = tpu.matmul %211, %0, %cst_49 {dimension_numbers = #tpu.dot_dimension_numbers<[1], [0], [0], [1], [0, 0, 1, 1], [], []>} : vector<8x128xf32>, vector<128x512xf32>, vector<8x512xf32> -> vector<8x512xf32>
    %244 = arith.addf %242, %243 : vector<8x512xf32>
    %245 = vector.extract_strided_slice %244 {offsets = [0, 0], sizes = [8, 128], strides = [1, 1]} : vector<8x512xf32> to vector<8x128xf32>
    %246 = arith.negf %245 : vector<8x128xf32>
    %247 = math.exp %246 : vector<8x128xf32>
    %cst_50 = arith.constant 1.000000e+00 : f32
    %248 = vector.broadcast %cst_50 : f32 to vector<8x128xf32>
    %249 = arith.addf %248, %247 : vector<8x128xf32>
    %250 = arith.divf %248, %249 : vector<8x128xf32>
    %251 = vector.extract_strided_slice %244 {offsets = [0, 128], sizes = [8, 128], strides = [1, 1]} : vector<8x512xf32> to vector<8x128xf32>
    %252 = arith.negf %251 : vector<8x128xf32>
    %253 = math.exp %252 : vector<8x128xf32>
    %cst_51 = arith.constant 1.000000e+00 : f32
    %254 = vector.broadcast %cst_51 : f32 to vector<8x128xf32>
    %255 = arith.addf %254, %253 : vector<8x128xf32>
    %256 = arith.divf %254, %255 : vector<8x128xf32>
    %257 = vector.extract_strided_slice %244 {offsets = [0, 256], sizes = [8, 128], strides = [1, 1]} : vector<8x512xf32> to vector<8x128xf32>
    %258 = math.tanh %257 : vector<8x128xf32>
    %259 = vector.extract_strided_slice %244 {offsets = [0, 384], sizes = [8, 128], strides = [1, 1]} : vector<8x512xf32> to vector<8x128xf32>
    %260 = arith.negf %259 : vector<8x128xf32>
    %261 = math.exp %260 : vector<8x128xf32>
    %cst_52 = arith.constant 1.000000e+00 : f32
    %262 = vector.broadcast %cst_52 : f32 to vector<8x128xf32>
    %263 = arith.addf %262, %261 : vector<8x128xf32>
    %264 = arith.divf %262, %263 : vector<8x128xf32>
    %265 = arith.mulf %256, %209 : vector<8x128xf32>
    %266 = arith.mulf %250, %258 : vector<8x128xf32>
    %267 = arith.addf %265, %266 : vector<8x128xf32>
    %268 = math.tanh %267 : vector<8x128xf32>
    %269 = arith.mulf %264, %268 : vector<8x128xf32>
    %270 = tpu.concatenate %269, %240 in 1 : vector<8x128xf32>, vector<8x128xf32> -> vector<8x256xf32>
    %cst_53 = arith.constant dense<0.000000e+00> : vector<8x512xf32>
    %271 = tpu.matmul %270, %1, %cst_53 {dimension_numbers = #tpu.dot_dimension_numbers<[1], [0], [0], [1], [0, 0, 1, 1], [], []>} : vector<8x256xf32>, vector<256x512xf32>, vector<8x512xf32> -> vector<8x512xf32>
    %272 = vector.broadcast %2 : vector<1x512xf32> to vector<8x512xf32>
    %273 = arith.addf %271, %272 : vector<8x512xf32>
    %274 = vector.extract_strided_slice %273 {offsets = [0, 0], sizes = [8, 128], strides = [1, 1]} : vector<8x512xf32> to vector<8x128xf32>
    %275 = arith.negf %274 : vector<8x128xf32>
    %276 = math.exp %275 : vector<8x128xf32>
    %cst_54 = arith.constant 1.000000e+00 : f32
    %277 = vector.broadcast %cst_54 : f32 to vector<8x128xf32>
    %278 = arith.addf %277, %276 : vector<8x128xf32>
    %279 = arith.divf %277, %278 : vector<8x128xf32>
    %280 = vector.extract_strided_slice %273 {offsets = [0, 128], sizes = [8, 128], strides = [1, 1]} : vector<8x512xf32> to vector<8x128xf32>
    %281 = arith.negf %280 : vector<8x128xf32>
    %282 = math.exp %281 : vector<8x128xf32>
    %cst_55 = arith.constant 1.000000e+00 : f32
    %283 = vector.broadcast %cst_55 : f32 to vector<8x128xf32>
    %284 = arith.addf %283, %282 : vector<8x128xf32>
    %285 = arith.divf %283, %284 : vector<8x128xf32>
    %286 = vector.extract_strided_slice %273 {offsets = [0, 256], sizes = [8, 128], strides = [1, 1]} : vector<8x512xf32> to vector<8x128xf32>
    %287 = math.tanh %286 : vector<8x128xf32>
    %288 = vector.extract_strided_slice %273 {offsets = [0, 384], sizes = [8, 128], strides = [1, 1]} : vector<8x512xf32> to vector<8x128xf32>
    %289 = arith.negf %288 : vector<8x128xf32>
    %290 = math.exp %289 : vector<8x128xf32>
    %cst_56 = arith.constant 1.000000e+00 : f32
    %291 = vector.broadcast %cst_56 : f32 to vector<8x128xf32>
    %292 = arith.addf %291, %290 : vector<8x128xf32>
    %293 = arith.divf %291, %292 : vector<8x128xf32>
    %294 = arith.mulf %285, %238 : vector<8x128xf32>
    %295 = arith.mulf %279, %287 : vector<8x128xf32>
    %296 = arith.addf %294, %295 : vector<8x128xf32>
    %297 = math.tanh %296 : vector<8x128xf32>
    %298 = arith.mulf %293, %297 : vector<8x128xf32>
    %c32 = arith.constant 32 : index
    %c0_57 = arith.constant 0 : index
    %299 = vector.load %arg9[%c32, %c0_57] : memref<64x128xf32, #tpu.memory_space<vmem>>, vector<8x128xf32>
    tpu.vector_store %arg9[%c32, %c0_57], %298 {strides = array<i32>} : memref<64x128xf32, #tpu.memory_space<vmem>>, vector<8x128xf32>,
    %300 = vector.extract_strided_slice %8 {offsets = [40, 0], sizes = [8, 512], strides = [1, 1]} : vector<64x512xf32> to vector<8x512xf32>
    %cst_58 = arith.constant dense<0.000000e+00> : vector<8x512xf32>
    %301 = tpu.matmul %269, %0, %cst_58 {dimension_numbers = #tpu.dot_dimension_numbers<[1], [0], [0], [1], [0, 0, 1, 1], [], []>} : vector<8x128xf32>, vector<128x512xf32>, vector<8x512xf32> -> vector<8x512xf32>
    %302 = arith.addf %300, %301 : vector<8x512xf32>
    %303 = vector.extract_strided_slice %302 {offsets = [0, 0], sizes = [8, 128], strides = [1, 1]} : vector<8x512xf32> to vector<8x128xf32>
    %304 = arith.negf %303 : vector<8x128xf32>
    %305 = math.exp %304 : vector<8x128xf32>
    %cst_59 = arith.constant 1.000000e+00 : f32
    %306 = vector.broadcast %cst_59 : f32 to vector<8x128xf32>
    %307 = arith.addf %306, %305 : vector<8x128xf32>
    %308 = arith.divf %306, %307 : vector<8x128xf32>
    %309 = vector.extract_strided_slice %302 {offsets = [0, 128], sizes = [8, 128], strides = [1, 1]} : vector<8x512xf32> to vector<8x128xf32>
    %310 = arith.negf %309 : vector<8x128xf32>
    %311 = math.exp %310 : vector<8x128xf32>
    %cst_60 = arith.constant 1.000000e+00 : f32
    %312 = vector.broadcast %cst_60 : f32 to vector<8x128xf32>
    %313 = arith.addf %312, %311 : vector<8x128xf32>
    %314 = arith.divf %312, %313 : vector<8x128xf32>
    %315 = vector.extract_strided_slice %302 {offsets = [0, 256], sizes = [8, 128], strides = [1, 1]} : vector<8x512xf32> to vector<8x128xf32>
    %316 = math.tanh %315 : vector<8x128xf32>
    %317 = vector.extract_strided_slice %302 {offsets = [0, 384], sizes = [8, 128], strides = [1, 1]} : vector<8x512xf32> to vector<8x128xf32>
    %318 = arith.negf %317 : vector<8x128xf32>
    %319 = math.exp %318 : vector<8x128xf32>
    %cst_61 = arith.constant 1.000000e+00 : f32
    %320 = vector.broadcast %cst_61 : f32 to vector<8x128xf32>
    %321 = arith.addf %320, %319 : vector<8x128xf32>
    %322 = arith.divf %320, %321 : vector<8x128xf32>
    %323 = arith.mulf %314, %267 : vector<8x128xf32>
    %324 = arith.mulf %308, %316 : vector<8x128xf32>
    %325 = arith.addf %323, %324 : vector<8x128xf32>
    %326 = math.tanh %325 : vector<8x128xf32>
    %327 = arith.mulf %322, %326 : vector<8x128xf32>
    %328 = tpu.concatenate %327, %298 in 1 : vector<8x128xf32>, vector<8x128xf32> -> vector<8x256xf32>
    %cst_62 = arith.constant dense<0.000000e+00> : vector<8x512xf32>
    %329 = tpu.matmul %328, %1, %cst_62 {dimension_numbers = #tpu.dot_dimension_numbers<[1], [0], [0], [1], [0, 0, 1, 1], [], []>} : vector<8x256xf32>, vector<256x512xf32>, vector<8x512xf32> -> vector<8x512xf32>
    %330 = vector.broadcast %2 : vector<1x512xf32> to vector<8x512xf32>
    %331 = arith.addf %329, %330 : vector<8x512xf32>
    %332 = vector.extract_strided_slice %331 {offsets = [0, 0], sizes = [8, 128], strides = [1, 1]} : vector<8x512xf32> to vector<8x128xf32>
    %333 = arith.negf %332 : vector<8x128xf32>
    %334 = math.exp %333 : vector<8x128xf32>
    %cst_63 = arith.constant 1.000000e+00 : f32
    %335 = vector.broadcast %cst_63 : f32 to vector<8x128xf32>
    %336 = arith.addf %335, %334 : vector<8x128xf32>
    %337 = arith.divf %335, %336 : vector<8x128xf32>
    %338 = vector.extract_strided_slice %331 {offsets = [0, 128], sizes = [8, 128], strides = [1, 1]} : vector<8x512xf32> to vector<8x128xf32>
    %339 = arith.negf %338 : vector<8x128xf32>
    %340 = math.exp %339 : vector<8x128xf32>
    %cst_64 = arith.constant 1.000000e+00 : f32
    %341 = vector.broadcast %cst_64 : f32 to vector<8x128xf32>
    %342 = arith.addf %341, %340 : vector<8x128xf32>
    %343 = arith.divf %341, %342 : vector<8x128xf32>
    %344 = vector.extract_strided_slice %331 {offsets = [0, 256], sizes = [8, 128], strides = [1, 1]} : vector<8x512xf32> to vector<8x128xf32>
    %345 = math.tanh %344 : vector<8x128xf32>
    %346 = vector.extract_strided_slice %331 {offsets = [0, 384], sizes = [8, 128], strides = [1, 1]} : vector<8x512xf32> to vector<8x128xf32>
    %347 = arith.negf %346 : vector<8x128xf32>
    %348 = math.exp %347 : vector<8x128xf32>
    %cst_65 = arith.constant 1.000000e+00 : f32
    %349 = vector.broadcast %cst_65 : f32 to vector<8x128xf32>
    %350 = arith.addf %349, %348 : vector<8x128xf32>
    %351 = arith.divf %349, %350 : vector<8x128xf32>
    %352 = arith.mulf %343, %296 : vector<8x128xf32>
    %353 = arith.mulf %337, %345 : vector<8x128xf32>
    %354 = arith.addf %352, %353 : vector<8x128xf32>
    %355 = math.tanh %354 : vector<8x128xf32>
    %356 = arith.mulf %351, %355 : vector<8x128xf32>
    %c40 = arith.constant 40 : index
    %c0_66 = arith.constant 0 : index
    %357 = vector.load %arg9[%c40, %c0_66] : memref<64x128xf32, #tpu.memory_space<vmem>>, vector<8x128xf32>
    tpu.vector_store %arg9[%c40, %c0_66], %356 {strides = array<i32>} : memref<64x128xf32, #tpu.memory_space<vmem>>, vector<8x128xf32>,
    %358 = vector.extract_strided_slice %8 {offsets = [48, 0], sizes = [8, 512], strides = [1, 1]} : vector<64x512xf32> to vector<8x512xf32>
    %cst_67 = arith.constant dense<0.000000e+00> : vector<8x512xf32>
    %359 = tpu.matmul %327, %0, %cst_67 {dimension_numbers = #tpu.dot_dimension_numbers<[1], [0], [0], [1], [0, 0, 1, 1], [], []>} : vector<8x128xf32>, vector<128x512xf32>, vector<8x512xf32> -> vector<8x512xf32>
    %360 = arith.addf %358, %359 : vector<8x512xf32>
    %361 = vector.extract_strided_slice %360 {offsets = [0, 0], sizes = [8, 128], strides = [1, 1]} : vector<8x512xf32> to vector<8x128xf32>
    %362 = arith.negf %361 : vector<8x128xf32>
    %363 = math.exp %362 : vector<8x128xf32>
    %cst_68 = arith.constant 1.000000e+00 : f32
    %364 = vector.broadcast %cst_68 : f32 to vector<8x128xf32>
    %365 = arith.addf %364, %363 : vector<8x128xf32>
    %366 = arith.divf %364, %365 : vector<8x128xf32>
    %367 = vector.extract_strided_slice %360 {offsets = [0, 128], sizes = [8, 128], strides = [1, 1]} : vector<8x512xf32> to vector<8x128xf32>
    %368 = arith.negf %367 : vector<8x128xf32>
    %369 = math.exp %368 : vector<8x128xf32>
    %cst_69 = arith.constant 1.000000e+00 : f32
    %370 = vector.broadcast %cst_69 : f32 to vector<8x128xf32>
    %371 = arith.addf %370, %369 : vector<8x128xf32>
    %372 = arith.divf %370, %371 : vector<8x128xf32>
    %373 = vector.extract_strided_slice %360 {offsets = [0, 256], sizes = [8, 128], strides = [1, 1]} : vector<8x512xf32> to vector<8x128xf32>
    %374 = math.tanh %373 : vector<8x128xf32>
    %375 = vector.extract_strided_slice %360 {offsets = [0, 384], sizes = [8, 128], strides = [1, 1]} : vector<8x512xf32> to vector<8x128xf32>
    %376 = arith.negf %375 : vector<8x128xf32>
    %377 = math.exp %376 : vector<8x128xf32>
    %cst_70 = arith.constant 1.000000e+00 : f32
    %378 = vector.broadcast %cst_70 : f32 to vector<8x128xf32>
    %379 = arith.addf %378, %377 : vector<8x128xf32>
    %380 = arith.divf %378, %379 : vector<8x128xf32>
    %381 = arith.mulf %372, %325 : vector<8x128xf32>
    %382 = arith.mulf %366, %374 : vector<8x128xf32>
    %383 = arith.addf %381, %382 : vector<8x128xf32>
    %384 = math.tanh %383 : vector<8x128xf32>
    %385 = arith.mulf %380, %384 : vector<8x128xf32>
    %386 = tpu.concatenate %385, %356 in 1 : vector<8x128xf32>, vector<8x128xf32> -> vector<8x256xf32>
    %cst_71 = arith.constant dense<0.000000e+00> : vector<8x512xf32>
    %387 = tpu.matmul %386, %1, %cst_71 {dimension_numbers = #tpu.dot_dimension_numbers<[1], [0], [0], [1], [0, 0, 1, 1], [], []>} : vector<8x256xf32>, vector<256x512xf32>, vector<8x512xf32> -> vector<8x512xf32>
    %388 = vector.broadcast %2 : vector<1x512xf32> to vector<8x512xf32>
    %389 = arith.addf %387, %388 : vector<8x512xf32>
    %390 = vector.extract_strided_slice %389 {offsets = [0, 0], sizes = [8, 128], strides = [1, 1]} : vector<8x512xf32> to vector<8x128xf32>
    %391 = arith.negf %390 : vector<8x128xf32>
    %392 = math.exp %391 : vector<8x128xf32>
    %cst_72 = arith.constant 1.000000e+00 : f32
    %393 = vector.broadcast %cst_72 : f32 to vector<8x128xf32>
    %394 = arith.addf %393, %392 : vector<8x128xf32>
    %395 = arith.divf %393, %394 : vector<8x128xf32>
    %396 = vector.extract_strided_slice %389 {offsets = [0, 128], sizes = [8, 128], strides = [1, 1]} : vector<8x512xf32> to vector<8x128xf32>
    %397 = arith.negf %396 : vector<8x128xf32>
    %398 = math.exp %397 : vector<8x128xf32>
    %cst_73 = arith.constant 1.000000e+00 : f32
    %399 = vector.broadcast %cst_73 : f32 to vector<8x128xf32>
    %400 = arith.addf %399, %398 : vector<8x128xf32>
    %401 = arith.divf %399, %400 : vector<8x128xf32>
    %402 = vector.extract_strided_slice %389 {offsets = [0, 256], sizes = [8, 128], strides = [1, 1]} : vector<8x512xf32> to vector<8x128xf32>
    %403 = math.tanh %402 : vector<8x128xf32>
    %404 = vector.extract_strided_slice %389 {offsets = [0, 384], sizes = [8, 128], strides = [1, 1]} : vector<8x512xf32> to vector<8x128xf32>
    %405 = arith.negf %404 : vector<8x128xf32>
    %406 = math.exp %405 : vector<8x128xf32>
    %cst_74 = arith.constant 1.000000e+00 : f32
    %407 = vector.broadcast %cst_74 : f32 to vector<8x128xf32>
    %408 = arith.addf %407, %406 : vector<8x128xf32>
    %409 = arith.divf %407, %408 : vector<8x128xf32>
    %410 = arith.mulf %401, %354 : vector<8x128xf32>
    %411 = arith.mulf %395, %403 : vector<8x128xf32>
    %412 = arith.addf %410, %411 : vector<8x128xf32>
    %413 = math.tanh %412 : vector<8x128xf32>
    %414 = arith.mulf %409, %413 : vector<8x128xf32>
    %c48 = arith.constant 48 : index
    %c0_75 = arith.constant 0 : index
    %415 = vector.load %arg9[%c48, %c0_75] : memref<64x128xf32, #tpu.memory_space<vmem>>, vector<8x128xf32>
    tpu.vector_store %arg9[%c48, %c0_75], %414 {strides = array<i32>} : memref<64x128xf32, #tpu.memory_space<vmem>>, vector<8x128xf32>,
    %416 = vector.extract_strided_slice %8 {offsets = [56, 0], sizes = [8, 512], strides = [1, 1]} : vector<64x512xf32> to vector<8x512xf32>
    %cst_76 = arith.constant dense<0.000000e+00> : vector<8x512xf32>
    %417 = tpu.matmul %385, %0, %cst_76 {dimension_numbers = #tpu.dot_dimension_numbers<[1], [0], [0], [1], [0, 0, 1, 1], [], []>} : vector<8x128xf32>, vector<128x512xf32>, vector<8x512xf32> -> vector<8x512xf32>
    %418 = arith.addf %416, %417 : vector<8x512xf32>
    %419 = vector.extract_strided_slice %418 {offsets = [0, 0], sizes = [8, 128], strides = [1, 1]} : vector<8x512xf32> to vector<8x128xf32>
    %420 = arith.negf %419 : vector<8x128xf32>
    %421 = math.exp %420 : vector<8x128xf32>
    %cst_77 = arith.constant 1.000000e+00 : f32
    %422 = vector.broadcast %cst_77 : f32 to vector<8x128xf32>
    %423 = arith.addf %422, %421 : vector<8x128xf32>
    %424 = arith.divf %422, %423 : vector<8x128xf32>
    %425 = vector.extract_strided_slice %418 {offsets = [0, 128], sizes = [8, 128], strides = [1, 1]} : vector<8x512xf32> to vector<8x128xf32>
    %426 = arith.negf %425 : vector<8x128xf32>
    %427 = math.exp %426 : vector<8x128xf32>
    %cst_78 = arith.constant 1.000000e+00 : f32
    %428 = vector.broadcast %cst_78 : f32 to vector<8x128xf32>
    %429 = arith.addf %428, %427 : vector<8x128xf32>
    %430 = arith.divf %428, %429 : vector<8x128xf32>
    %431 = vector.extract_strided_slice %418 {offsets = [0, 256], sizes = [8, 128], strides = [1, 1]} : vector<8x512xf32> to vector<8x128xf32>
    %432 = math.tanh %431 : vector<8x128xf32>
    %433 = vector.extract_strided_slice %418 {offsets = [0, 384], sizes = [8, 128], strides = [1, 1]} : vector<8x512xf32> to vector<8x128xf32>
    %434 = arith.negf %433 : vector<8x128xf32>
    %435 = math.exp %434 : vector<8x128xf32>
    %cst_79 = arith.constant 1.000000e+00 : f32
    %436 = vector.broadcast %cst_79 : f32 to vector<8x128xf32>
    %437 = arith.addf %436, %435 : vector<8x128xf32>
    %438 = arith.divf %436, %437 : vector<8x128xf32>
    %439 = arith.mulf %430, %383 : vector<8x128xf32>
    %440 = arith.mulf %424, %432 : vector<8x128xf32>
    %441 = arith.addf %439, %440 : vector<8x128xf32>
    %442 = math.tanh %441 : vector<8x128xf32>
    %443 = arith.mulf %438, %442 : vector<8x128xf32>
    %444 = tpu.concatenate %443, %414 in 1 : vector<8x128xf32>, vector<8x128xf32> -> vector<8x256xf32>
    %cst_80 = arith.constant dense<0.000000e+00> : vector<8x512xf32>
    %445 = tpu.matmul %444, %1, %cst_80 {dimension_numbers = #tpu.dot_dimension_numbers<[1], [0], [0], [1], [0, 0, 1, 1], [], []>} : vector<8x256xf32>, vector<256x512xf32>, vector<8x512xf32> -> vector<8x512xf32>
    %446 = vector.broadcast %2 : vector<1x512xf32> to vector<8x512xf32>
    %447 = arith.addf %445, %446 : vector<8x512xf32>
    %448 = vector.extract_strided_slice %447 {offsets = [0, 0], sizes = [8, 128], strides = [1, 1]} : vector<8x512xf32> to vector<8x128xf32>
    %449 = arith.negf %448 : vector<8x128xf32>
    %450 = math.exp %449 : vector<8x128xf32>
    %cst_81 = arith.constant 1.000000e+00 : f32
    %451 = vector.broadcast %cst_81 : f32 to vector<8x128xf32>
    %452 = arith.addf %451, %450 : vector<8x128xf32>
    %453 = arith.divf %451, %452 : vector<8x128xf32>
    %454 = vector.extract_strided_slice %447 {offsets = [0, 128], sizes = [8, 128], strides = [1, 1]} : vector<8x512xf32> to vector<8x128xf32>
    %455 = arith.negf %454 : vector<8x128xf32>
    %456 = math.exp %455 : vector<8x128xf32>
    %cst_82 = arith.constant 1.000000e+00 : f32
    %457 = vector.broadcast %cst_82 : f32 to vector<8x128xf32>
    %458 = arith.addf %457, %456 : vector<8x128xf32>
    %459 = arith.divf %457, %458 : vector<8x128xf32>
    %460 = vector.extract_strided_slice %447 {offsets = [0, 256], sizes = [8, 128], strides = [1, 1]} : vector<8x512xf32> to vector<8x128xf32>
    %461 = math.tanh %460 : vector<8x128xf32>
    %462 = vector.extract_strided_slice %447 {offsets = [0, 384], sizes = [8, 128], strides = [1, 1]} : vector<8x512xf32> to vector<8x128xf32>
    %463 = arith.negf %462 : vector<8x128xf32>
    %464 = math.exp %463 : vector<8x128xf32>
    %cst_83 = arith.constant 1.000000e+00 : f32
    %465 = vector.broadcast %cst_83 : f32 to vector<8x128xf32>
    %466 = arith.addf %465, %464 : vector<8x128xf32>
    %467 = arith.divf %465, %466 : vector<8x128xf32>
    %468 = arith.mulf %459, %412 : vector<8x128xf32>
    %469 = arith.mulf %453, %461 : vector<8x128xf32>
    %470 = arith.addf %468, %469 : vector<8x128xf32>
    %471 = math.tanh %470 : vector<8x128xf32>
    %472 = arith.mulf %467, %471 : vector<8x128xf32>
    %c56 = arith.constant 56 : index
    %c0_84 = arith.constant 0 : index
    %473 = vector.load %arg9[%c56, %c0_84] : memref<64x128xf32, #tpu.memory_space<vmem>>, vector<8x128xf32>
    tpu.vector_store %arg9[%c56, %c0_84], %472 {strides = array<i32>} : memref<64x128xf32, #tpu.memory_space<vmem>>, vector<8x128xf32>,
    %c0_85 = arith.constant 0 : index
    %c0_86 = arith.constant 0 : index
    %474 = vector.load %arg9[%c0_85, %c0_86] : memref<64x128xf32, #tpu.memory_space<vmem>>, vector<64x128xf32>
    %c0_87 = arith.constant 0 : index
    %c0_88 = arith.constant 0 : index
    %475 = vector.load %arg6[%c0_87, %c0_88] : memref<128x128xf32, #tpu.memory_space<vmem>>, vector<128x128xf32>
    %cst_89 = arith.constant dense<0.000000e+00> : vector<64x128xf32>
    %476 = tpu.matmul %474, %475, %cst_89 {dimension_numbers = #tpu.dot_dimension_numbers<[1], [0], [0], [1], [0, 0, 1, 1], [], []>} : vector<64x128xf32>, vector<128x128xf32>, vector<64x128xf32> -> vector<64x128xf32>
    %c0_90 = arith.constant 0 : index
    %c0_91 = arith.constant 0 : index
    %477 = vector.load %arg7[%c0_90, %c0_91] : memref<1x128xf32, #tpu.memory_space<vmem>>, vector<1x128xf32>
    %478 = vector.broadcast %477 : vector<1x128xf32> to vector<64x128xf32>
    %479 = arith.addf %476, %478 : vector<64x128xf32>
    %c0_92 = arith.constant 0 : index
    %c0_93 = arith.constant 0 : index
    %480 = vector.load %arg8[%c0_92, %c0_93] : memref<64x128xf32, #tpu.memory_space<vmem>>, vector<64x128xf32>
    tpu.vector_store %arg8[%c0_92, %c0_93], %479 {strides = array<i32>} : memref<64x128xf32, #tpu.memory_space<vmem>>, vector<64x128xf32>,
    return
  }
}

</mosaic_0001>

<bundles_post_ra>
// kernel: lstm_model_forward.1
= control target key start
LH: loop header
LB: loop body
LE: loop exit
PB: predicated region body
PF: predicated region fallthrough
CT: control target
= control target key end

     0   :  { %13 = vsyncpa [#allocation4], 0  ;;  %s7066_s0 = inlined_call_operand.vmem [shape: f32[64,128], index: 0, kind: input, shape index: {}]   ;;  %s7067_s1 = inlined_call_operand.hbm [shape: f32[128,512], index: 1, kind: input, shape index: {}]   ;;  %s7068_s2 = inlined_call_operand.hbm [shape: f32[128,512], index: 2, kind: input, shape index: {}]   ;;  %s7069_s3 = inlined_call_operand.vmem [shape: f32[1,512], index: 3, kind: input, shape index: {}]   ;;  %s7070_s4 = inlined_call_operand.hbm [shape: f32[256,512], index: 4, kind: input, shape index: {}]   ;;  %s7071_s5 = inlined_call_operand.vmem [shape: f32[1,512], index: 5, kind: input, shape index: {}]   ;;  %s7072_s6 = inlined_call_operand.hbm [shape: f32[128,128], index: 6, kind: input, shape index: {}]   ;;  %s7073_s7 = inlined_call_operand.vmem [shape: f32[1,128], index: 7, kind: input, shape index: {}]   ;;  %s7074_s8 = inlined_call_operand.vmem [shape: f32[64,128], index: 8, kind: output, shape index: {}]  }
   0x1   :  { %14 = vsyncpa [#allocation6], 0 }
   0x2   :  { %15 = vsyncpa [#allocation9], 0  ;;  %s5637_s27 = smov [#allocation5]   ;;  %s5638_s29 = smov [#allocation3]  }
   0x3   :  { %s35_s28 = sshll.u32 %s5637_s27, 4  ;;  %s23_s30 = sshll.u32 %s5638_s29, 4  ;;  %s36_s28 = int_to_ptr.vmem [resolvable:$true] %s35_s28  ;;  %s5691_s30 = int_to_ptr.vmem [resolvable:$true] %s23_s30 }
   0x4   :  { %s5543_s11 = scalar_lea.hbm %s7068_s2, 8192 }
   0x5   :  { %p5544_p0 = scmp.ne.s32.totalorder %s7068_s2, %s5543_s11  ;;  %p5547_p1 = scmp.lt.u32.totalorder %s5543_s11, %s7068_s2 }
   0x7   :  { %p5549_p2 = pnand %p5547_p1, %p5544_p0 }
   0x9   :  { %5552 = shalt.err (!%p5549_p2)
}
   0xa   :  { %s5553_s16 = scalar_lea.vmem %s36_s28, 8192  ;;  %p5558_p4 = scmp.lt.s32.totalorder %s36_s28, %s36_s28 }
   0xb   :  { %p5554_p3 = scmp.ne.s32.totalorder %s36_s28, %s5553_s16  ;;  %p5559_p5 = scmp.lt.s32.totalorder %s5553_s16, %s5553_s16 }
   0xd   :  { %p5560_p6 = por %p5559_p5, %p5558_p4 }
   0xf   :  { %p5561_p7 = pnand %p5560_p6, %p5554_p3 }
  0x11   :  { %5564 = shalt.err (!%p5561_p7)
}
  0x12   :  { %s5639_s17 = smov 512   ;;  %s5640_s18 = smov 32  }
  0x13   :  { %41 = dma.hbm_to_vmem [thread:$0]  %s7068_s2, 8192, %s36_s28, [#allocation6], %s5639_s17, %s5639_s17, %s5640_s18  }
  0x14   :  { %s5565_s23 = scalar_lea.hbm %s7067_s1, 8192 }
  0x15   :  { %p5566_p8 = scmp.ne.s32.totalorder %s7067_s1, %s5565_s23  ;;  %p5569_p9 = scmp.lt.u32.totalorder %s5565_s23, %s7067_s1 }
  0x17   :  { %p5571_p10 = pnand %p5569_p9, %p5566_p8 }
  0x19   :  { %5574 = shalt.err (!%p5571_p10)
}
  0x1a   :  { %s5575_s29 = scalar_lea.vmem %s5691_s30, 8192  ;;  %p5580_p12 = scmp.lt.s32.totalorder %s5691_s30, %s5691_s30 }
  0x1b   :  { %p5576_p11 = scmp.ne.s32.totalorder %s5691_s30, %s5575_s29  ;;  %p5581_p13 = scmp.lt.s32.totalorder %s5575_s29, %s5575_s29 }
  0x1d   :  { %p5582_p0 = por %p5581_p13, %p5580_p12 }
  0x1f   :  { %p5583_p1 = pnand %p5582_p0, %p5576_p11 }
  0x21   :  { %5586 = shalt.err (!%p5583_p1)
}
  0x22   :  { %29 = dma.hbm_to_vmem [thread:$0]  %s7067_s1, 8192, %s5691_s30, [#allocation4], %s5639_s17, %s5639_s17, %s5640_s18  }
  0x23   :  { %s5641_s9 = smov [#allocation7]   ;;  %s5642_s11 = smov [#allocation8]  }
  0x24   :  { %s49_s10 = sshll.u32 %s5641_s9, 4  ;;  %s63_s12 = sshll.u32 %s5642_s11, 4  ;;  %s50_s10 = int_to_ptr.vmem [resolvable:$true] %s49_s10  ;;  %s5728_s12 = int_to_ptr.vmem [resolvable:$true] %s63_s12 }
  0x25   :  { %s5587_s15 = scalar_lea.hbm %s7070_s4, 16384 }
  0x26   :  { %p5588_p2 = scmp.ne.s32.totalorder %s7070_s4, %s5587_s15  ;;  %p5591_p3 = scmp.lt.u32.totalorder %s5587_s15, %s7070_s4 }
  0x28   :  { %p5593_p4 = pnand %p5591_p3, %p5588_p2 }
  0x2a   :  { %5596 = shalt.err (!%p5593_p4)
}
  0x2b   :  { %s5597_s1 = scalar_lea.vmem %s50_s10, 16384  ;;  %p5602_p6 = scmp.lt.s32.totalorder %s50_s10, %s50_s10 }
  0x2c   :  { %p5598_p5 = scmp.ne.s32.totalorder %s50_s10, %s5597_s1  ;;  %p5603_p7 = scmp.lt.s32.totalorder %s5597_s1, %s5597_s1 }
  0x2e   :  { %p5604_p8 = por %p5603_p7, %p5602_p6 }
  0x30   :  { %p5605_p9 = pnand %p5604_p8, %p5598_p5 }
  0x32   :  { %5608 = shalt.err (!%p5605_p9)
}
  0x33   :  { %55 = dma.hbm_to_vmem [thread:$0]  %s7070_s4, 16384, %s50_s10, [#allocation6], %s5639_s17, %s5639_s17, %s5640_s18  }
  0x34   :  { %s5609_s25 = scalar_lea.hbm %s7072_s6, 2048 }
  0x35   :  { %p5610_p10 = scmp.ne.s32.totalorder %s7072_s6, %s5609_s25  ;;  %p5613_p11 = scmp.lt.u32.totalorder %s5609_s25, %s7072_s6 }
  0x37   :  { %p5615_p12 = pnand %p5613_p11, %p5610_p10 }
  0x39   :  { %5618 = shalt.err (!%p5615_p12)
}
  0x3a   :  { %s5619_s28 = scalar_lea.vmem %s5728_s12, 2048  ;;  %p5624_p0 = scmp.lt.s32.totalorder %s5728_s12, %s5728_s12 }
  0x3b   :  { %p5620_p13 = scmp.ne.s32.totalorder %s5728_s12, %s5619_s28  ;;  %p5625_p1 = scmp.lt.s32.totalorder %s5619_s28, %s5619_s28 }
  0x3d   :  { %p5626_p2 = por %p5625_p1, %p5624_p0 }
  0x3f   :  { %p5627_p3 = pnand %p5626_p2, %p5620_p13 }
  0x41   :  { %5630 = shalt.err (!%p5627_p3)
}
  0x42   :  { %s5643_s4 = smov 128   ;;  %s5644_s17 = smov 8  }
  0x43   :  { %69 = dma.hbm_to_vmem [thread:$0]  %s7072_s6, 2048, %s5728_s12, [#allocation9], %s5643_s4, %s5643_s4, %s5644_s17  }
  0x44   :  { %5631 = dma.done.wait [#allocation4], 8192  }
  0x45   :  { %5632 = vsyncadd [#allocation4], 4294959104 }
  0x46   :  { %5633 = dma.done.wait [#allocation6], 24576  }
  0x47   :  { %5634 = vsyncadd [#allocation6], 4294942720 }
  0x48   :  { %5635 = dma.done.wait [#allocation9], 2048  }
  0x49   :  { %5636 = vsyncadd [#allocation9], 4294965248  ;;  %v7075_v0 = vmov 0.0   ;;  %v286_v1 = vld [vmem:[#allocation3 + $0x8] sm:$0xff]  ;;  %v285_v3 = vld [vmem:[#allocation3] sm:$0xff] }
  0x4a   :  { %435 = vmatprep.mubr.f32.mxu1 %v7075_v0  ;;  %661 = vmatprep.mubr.f32.mxu0 %v7075_v0  ;;  %v290_v2 = vld [vmem:[#allocation3 + $0x28] sm:$0xff]  ;;  %v289_v5 = vld [vmem:[#allocation3 + $0x20] sm:$0xff] }
  0x4b   :  { %v3582_v4 = vpack.c.bf16 %v290_v2, %v286_v1  ;;  %v85_v6 = vld [vmem:[#allocation5 + $0x8] sm:$0xff]  ;;  %v3584_v8 = vpack.c.bf16 %v289_v5, %v285_v3  ;;  %v84_v10 = vld [vmem:[#allocation5] sm:$0xff] }
  0x4c   :  { %v89_v7 = vld [vmem:[#allocation5 + $0x28] sm:$0xff]  ;;  %v88_v11 = vld [vmem:[#allocation5 + $0x20] sm:$0xff] }
  0x4d   :  { %v5764_v9 = vpack.c.bf16 %v89_v7, %v85_v6  ;;  %v294_v12 = vld [vmem:[#allocation3 + $0x48] sm:$0xff]  ;;  %3583 = vmatprep.subr.bf16.mxu1 %v3582_v4  ;;  %v5766_v13 = vpack.c.bf16 %v88_v11, %v84_v10  ;;  %v293_v15 = vld [vmem:[#allocation3 + $0x40] sm:$0xff] }
  0x4e   :  { %v298_v14 = vld [vmem:[#allocation3 + $0x68] sm:$0xff]  ;;  %v297_v16 = vld [vmem:[#allocation3 + $0x60] sm:$0xff]  ;;  %3585 = vmatpush1.bf16.msra.mxu1 %v3584_v8 }
  0x4f   :  { %7206 = vst [vmem:[#allocation13_spill] sm:$0xff] %v5764_v9  ;;  %3647 = vmatprep.subr.bf16.mxu0 %v5764_v9  ;;  %v3586_v17 = vpack.c.bf16 %v298_v14, %v294_v12  ;;  %v3588_v18 = vpack.c.bf16 %v297_v16, %v293_v15  ;;  %v93_v19 = vld [vmem:[#allocation5 + $0x48] sm:$0xff]  ;;  %v92_v21 = vld [vmem:[#allocation5 + $0x40] sm:$0xff] }
  0x50   :  { %v97_v20 = vld [vmem:[#allocation5 + $0x68] sm:$0xff]  ;;  %3649 = vmatpush1.bf16.msra.mxu0 %v5766_v13  ;;  %v96_v23 = vld [vmem:[#allocation5 + $0x60] sm:$0xff] }
  0x51   :  { %v5770_v22 = vpack.c.bf16 %v97_v20, %v93_v19  ;;  %v302_v24 = vld [vmem:[#allocation3 + $0x88] sm:$0xff]  ;;  %3587 = vmatprep.subr.bf16.mxu1 %v3586_v17  ;;  %v5772_v26 = vpack.c.bf16 %v96_v23, %v92_v21  ;;  %v301_v28 = vld [vmem:[#allocation3 + $0x80] sm:$0xff] }
  0x52   :  { %v306_v25 = vld [vmem:[#allocation3 + $0xa8] sm:$0xff]  ;;  %v305_v29 = vld [vmem:[#allocation3 + $0xa0] sm:$0xff]  ;;  %3589 = vmatpush1.bf16.msra.mxu1 %v3588_v18 }
  0x53   :  { %v3590_v27 = vpack.c.bf16 %v306_v25, %v302_v24  ;;  %v101_v30 = vld [vmem:[#allocation5 + $0x88] sm:$0xff]  ;;  %3651 = vmatprep.subr.bf16.mxu0 %v5770_v22  ;;  %v100_v32 = vld [vmem:[#allocation5 + $0x80] sm:$0xff]  ;;  %v3592_v34 = vpack.c.bf16 %v305_v29, %v301_v28 }
  0x54   :  { %v105_v31 = vld [vmem:[#allocation5 + $0xa8] sm:$0xff]  ;;  %v104_v33 = vld [vmem:[#allocation5 + $0xa0] sm:$0xff]  ;;  %3653 = vmatpush1.bf16.msra.mxu0 %v5772_v26 }
  0x55   :  { %v5775_v35 = vpack.c.bf16 %v105_v31, %v101_v30  ;;  %v310_v36 = vld [vmem:[#allocation3 + $0xc8] sm:$0xff]  ;;  %v309_v38 = vld [vmem:[#allocation3 + $0xc0] sm:$0xff]  ;;  %3591 = vmatprep.subr.bf16.mxu1 %v3590_v27  ;;  %v5778_v39 = vpack.c.bf16 %v104_v33, %v100_v32 }
  0x56   :  { %v314_v37 = vld [vmem:[#allocation3 + $0xe8] sm:$0xff]  ;;  %v313_v41 = vld [vmem:[#allocation3 + $0xe0] sm:$0xff]  ;;  %3593 = vmatpush1.bf16.msra.mxu1 %v3592_v34 }
  0x57   :  { %v3594_v40 = vpack.c.bf16 %v314_v37, %v310_v36  ;;  %v109_v42 = vld [vmem:[#allocation5 + $0xc8] sm:$0xff]  ;;  %3655 = vmatprep.subr.bf16.mxu0 %v5775_v35  ;;  %v108_v45 = vld [vmem:[#allocation5 + $0xc0] sm:$0xff]  ;;  %v3596_v49 = vpack.c.bf16 %v313_v41, %v309_v38  ;;  %v288_v37 = vld [vmem:[#allocation3 + $0x18] sm:$0xff] }
  0x58   :  { %v113_v43 = vld [vmem:[#allocation5 + $0xe8] sm:$0xff]  ;;  %v112_v46 = vld [vmem:[#allocation5 + $0xe0] sm:$0xff]  ;;  %3657 = vmatpush1.bf16.msra.mxu0 %v5778_v39  ;;  %v292_v38 = vld [vmem:[#allocation3 + $0x38] sm:$0xff] }
  0x59   :  { %v5781_v44 = vpack.c.bf16 %v113_v43, %v109_v42  ;;  %v318_v47 = vld [vmem:[#allocation3 + $0x108] sm:$0xff]  ;;  %3595 = vmatprep.subr.bf16.mxu1 %v3594_v40  ;;  %v5784_v52 = vpack.c.bf16 %v112_v46, %v108_v45  ;;  %v317_v54 = vld [vmem:[#allocation3 + $0x100] sm:$0xff]  ;;  %v3614_v42 = vpack.c.bf16 %v292_v38, %v288_v37  ;;  %v287_v43 = vld [vmem:[#allocation3 + $0x10] sm:$0xff] }
  0x5a   :  { %v322_v48 = vld [vmem:[#allocation3 + $0x128] sm:$0xff]  ;;  %v321_v55 = vld [vmem:[#allocation3 + $0x120] sm:$0xff]  ;;  %3597 = vmatpush1.bf16.msra.mxu1 %v3596_v49  ;;  %v291_v45 = vld [vmem:[#allocation3 + $0x30] sm:$0xff] }
  0x5b   :  { %v117_v50 = vld [vmem:[#allocation5 + $0x108] sm:$0xff]  ;;  %v3598_v53 = vpack.c.bf16 %v322_v48, %v318_v47  ;;  %v116_v56 = vld [vmem:[#allocation5 + $0x100] sm:$0xff]  ;;  %3659 = vmatprep.subr.bf16.mxu0 %v5781_v44  ;;  %v3600_v63 = vpack.c.bf16 %v321_v55, %v317_v54  ;;  %v296_v46 = vld [vmem:[#allocation3 + $0x58] sm:$0xff]  ;;  %v3616_v49 = vpack.c.bf16 %v291_v45, %v287_v43 }
  0x5c   :  { %v121_v51 = vld [vmem:[#allocation5 + $0x128] sm:$0xff]  ;;  %v120_v58 = vld [vmem:[#allocation5 + $0x120] sm:$0xff]  ;;  %3661 = vmatpush1.bf16.msra.mxu0 %v5784_v52  ;;  %v300_v47 = vld [vmem:[#allocation3 + $0x78] sm:$0xff] }
  0x5d   :  { %v5787_v57 = vpack.c.bf16 %v121_v51, %v117_v50  ;;  %v326_v59 = vld [vmem:[#allocation3 + $0x148] sm:$0xff]  ;;  %3599 = vmatprep.subr.bf16.mxu1 %v3598_v53  ;;  %v5790_v1 = vpack.c.bf16 %v120_v58, %v116_v56  ;;  %v325_v3 = vld [vmem:[#allocation3 + $0x140] sm:$0xff]  ;;  %v3618_v50 = vpack.c.bf16 %v300_v47, %v296_v46  ;;  %v295_v51 = vld [vmem:[#allocation3 + $0x50] sm:$0xff] }
  0x5e   :  { %v330_v60 = vld [vmem:[#allocation3 + $0x168] sm:$0xff]  ;;  %v329_v4 = vld [vmem:[#allocation3 + $0x160] sm:$0xff]  ;;  %3601 = vmatpush1.bf16.msra.mxu1 %v3600_v63  ;;  %v299_v53 = vld [vmem:[#allocation3 + $0x70] sm:$0xff] }
  0x5f   :  { %v125_v61 = vld [vmem:[#allocation5 + $0x148] sm:$0xff]  ;;  %v3602_v2 = vpack.c.bf16 %v330_v60, %v326_v59  ;;  %v124_v5 = vld [vmem:[#allocation5 + $0x140] sm:$0xff]  ;;  %3663 = vmatprep.subr.bf16.mxu0 %v5787_v57  ;;  %v3604_v14 = vpack.c.bf16 %v329_v4, %v325_v3  ;;  %v304_v54 = vld [vmem:[#allocation3 + $0x98] sm:$0xff]  ;;  %v3620_v58 = vpack.c.bf16 %v299_v53, %v295_v51 }
  0x60   :  { %v129_v62 = vld [vmem:[#allocation5 + $0x168] sm:$0xff]  ;;  %v128_v7 = vld [vmem:[#allocation5 + $0x160] sm:$0xff]  ;;  %3665 = vmatpush1.bf16.msra.mxu0 %v5790_v1  ;;  %v308_v55 = vld [vmem:[#allocation3 + $0xb8] sm:$0xff] }
  0x61   :  { %v5793_v6 = vpack.c.bf16 %v129_v62, %v125_v61  ;;  %v334_v8 = vld [vmem:[#allocation3 + $0x188] sm:$0xff]  ;;  %3603 = vmatprep.subr.bf16.mxu1 %v3602_v2  ;;  %v5796_v15 = vpack.c.bf16 %v128_v7, %v124_v5  ;;  %v333_v17 = vld [vmem:[#allocation3 + $0x180] sm:$0xff]  ;;  %v3622_v59 = vpack.c.bf16 %v308_v55, %v304_v54  ;;  %v303_v60 = vld [vmem:[#allocation3 + $0x90] sm:$0xff] }
  0x62   :  { %v338_v10 = vld [vmem:[#allocation3 + $0x1a8] sm:$0xff]  ;;  %v337_v18 = vld [vmem:[#allocation3 + $0x1a0] sm:$0xff]  ;;  %3605 = vmatpush1.bf16.msra.mxu1 %v3604_v14  ;;  %v307_v61 = vld [vmem:[#allocation3 + $0xb0] sm:$0xff] }
  0x63   :  { %v133_v11 = vld [vmem:[#allocation5 + $0x188] sm:$0xff]  ;;  %v3606_v16 = vpack.c.bf16 %v338_v10, %v334_v8  ;;  %v132_v19 = vld [vmem:[#allocation5 + $0x180] sm:$0xff]  ;;  %3667 = vmatprep.subr.bf16.mxu0 %v5793_v6  ;;  %v3608_v28 = vpack.c.bf16 %v337_v18, %v333_v17  ;;  %v312_v62 = vld [vmem:[#allocation3 + $0xd8] sm:$0xff]  ;;  %v3624_v3 = vpack.c.bf16 %v307_v61, %v303_v60 }
  0x64   :  { %v137_v12 = vld [vmem:[#allocation5 + $0x1a8] sm:$0xff]  ;;  %v136_v21 = vld [vmem:[#allocation5 + $0x1a0] sm:$0xff]  ;;  %3669 = vmatpush1.bf16.msra.mxu0 %v5796_v15  ;;  %v316_v63 = vld [vmem:[#allocation3 + $0xf8] sm:$0xff] }
  0x65   :  { %v5799_v20 = vpack.c.bf16 %v137_v12, %v133_v11  ;;  %v342_v23 = vld [vmem:[#allocation3 + $0x1c8] sm:$0xff]  ;;  %3607 = vmatprep.subr.bf16.mxu1 %v3606_v16  ;;  %v5802_v29 = vpack.c.bf16 %v136_v21, %v132_v19  ;;  %v341_v31 = vld [vmem:[#allocation3 + $0x1c0] sm:$0xff]  ;;  %v5831_v2 = vld [vmem:[%s7066_s0 + $0x10] sm:$0xff]  ;;  %v3626_v4 = vpack.c.bf16 %v316_v63, %v312_v62 }
  0x66   :  { %v346_v24 = vld [vmem:[#allocation3 + $0x1e8] sm:$0xff]  ;;  %v345_v32 = vld [vmem:[#allocation3 + $0x1e0] sm:$0xff]  ;;  %3609 = vmatpush1.bf16.msra.mxu1 %v3608_v28  ;;  %v311_v5 = vld [vmem:[#allocation3 + $0xd0] sm:$0xff] }
  0x67   :  { %v141_v25 = vld [vmem:[#allocation5 + $0x1c8] sm:$0xff]  ;;  %v3610_v30 = vpack.c.bf16 %v346_v24, %v342_v23  ;;  %v140_v33 = vld [vmem:[#allocation5 + $0x1c0] sm:$0xff]  ;;  %3671 = vmatprep.subr.bf16.mxu0 %v5799_v20  ;;  %v3612_v40 = vpack.c.bf16 %v345_v32, %v341_v31  ;;  %v315_v7 = vld [vmem:[#allocation3 + $0xf0] sm:$0xff] }
  0x68   :  { %v145_v27 = vld [vmem:[#allocation5 + $0x1e8] sm:$0xff]  ;;  %v144_v36 = vld [vmem:[#allocation5 + $0x1e0] sm:$0xff]  ;;  %3673 = vmatpush1.bf16.msra.mxu0 %v5802_v29  ;;  %v320_v8 = vld [vmem:[#allocation3 + $0x118] sm:$0xff]  ;;  %v3628_v12 = vpack.c.bf16 %v315_v7, %v311_v5 }
  0x69   :  { %v5805_v34 = vpack.c.bf16 %v145_v27, %v141_v25  ;;  %3611 = vmatprep.subr.bf16.mxu1 %v3610_v30  ;;  %v5808_v41 = vpack.c.bf16 %v144_v36, %v140_v33  ;;  %v5814_v48 = vld [vmem:[%s7066_s0] sm:$0xff]  ;;  %v5822_v56 = vld [vmem:[%s7066_s0 + $0x8] sm:$0xff]  ;;  %v324_v10 = vld [vmem:[#allocation3 + $0x138] sm:$0xff] }
  0x6a   :  { %3613 = vmatpush1.bf16.msra.mxu1 %v3612_v40  ;;  %v5838_v11 = vld [vmem:[%s7066_s0 + $0x18] sm:$0xff]  ;;  %v3630_v14 = vpack.c.bf16 %v324_v10, %v320_v8  ;;  %v319_v16 = vld [vmem:[#allocation3 + $0x110] sm:$0xff]  ;;  %v5845_v21 = vld [vmem:[%s7066_s0 + $0x20] sm:$0xff] }
  0x6b   :  { %3675 = vmatprep.subr.bf16.mxu0 %v5805_v34  ;;  %3615 = vmatprep.subr.bf16.mxu1 %v3614_v42  ;;  %v323_v17 = vld [vmem:[#allocation3 + $0x130] sm:$0xff]  ;;  %v328_v18 = vld [vmem:[#allocation3 + $0x158] sm:$0xff]  ;;  %v5852_v31 = vld [vmem:[%s7066_s0 + $0x28] sm:$0xff] }
  0x6c   :  { %3677 = vmatpush1.bf16.msra.mxu0 %v5808_v41  ;;  %v332_v19 = vld [vmem:[#allocation3 + $0x178] sm:$0xff]  ;;  %v3632_v23 = vpack.c.bf16 %v323_v17, %v319_v16  ;;  %v327_v25 = vld [vmem:[#allocation3 + $0x150] sm:$0xff] }
  0x6d   :  { %436 = vmatmul.mubr.f32.vlgmr.msra.gmra.mrb[0].mxu1 %v5814_v48  ;;  %v3634_v24 = vpack.c.bf16 %v332_v19, %v328_v18  ;;  %v331_v27 = vld [vmem:[#allocation3 + $0x170] sm:$0xff]  ;;  %v336_v28 = vld [vmem:[#allocation3 + $0x198] sm:$0xff] }
  0x6e   :  { %3617 = vmatpush1.bf16.msra.mxu1 %v3616_v49  ;;  %441 = vmatprep.mubr.f32.mxu1 %v7075_v0  ;;  %v340_v30 = vld [vmem:[#allocation3 + $0x1b8] sm:$0xff]  ;;  %v3636_v32 = vpack.c.bf16 %v331_v27, %v327_v25  ;;  %v335_v36 = vld [vmem:[#allocation3 + $0x190] sm:$0xff] }
  0x6f   :  { %662 = vmatmul.mubr.f32.vlgmr.msra.gmra.mrb[0].mxu0 %v7075_v0  ;;  %3619 = vmatprep.subr.bf16.mxu1 %v3618_v50  ;;  %v3638_v33 = vpack.c.bf16 %v340_v30, %v336_v28  ;;  %v339_v37 = vld [vmem:[#allocation3 + $0x1b0] sm:$0xff]  ;;  %v344_v38 = vld [vmem:[#allocation3 + $0x1d8] sm:$0xff] }
  0x70   :  { %852 = vmatprep.mubr.f32.mxu0 %v7075_v0  ;;  %v348_v40 = vld [vmem:[#allocation3 + $0x1f8] sm:$0xff]  ;;  %v5859_v42 = vld [vmem:[%s7066_s0 + $0x30] sm:$0xff]  ;;  %v3640_v43 = vpack.c.bf16 %v339_v37, %v335_v36 }
  0x71   :  { %442 = vmatmul.mubr.f32.gmra.mrb[2].mxu1 %v5822_v56  ;;  %v3642_v45 = vpack.c.bf16 %v348_v40, %v344_v38  ;;  %v343_v46 = vld [vmem:[#allocation3 + $0x1d0] sm:$0xff]  ;;  %v87_v49 = vld [vmem:[#allocation5 + $0x18] sm:$0xff] }
  0x72   :  { %3621 = vmatpush1.bf16.msra.mxu1 %v3620_v58  ;;  %447 = vmatprep.mubr.f32.mxu1 %v7075_v0  ;;  %v347_v47 = vld [vmem:[#allocation3 + $0x1f0] sm:$0xff]  ;;  %v91_v50 = vld [vmem:[#allocation5 + $0x38] sm:$0xff] }
  0x73   :  { %3623 = vmatprep.subr.bf16.mxu1 %v3622_v59  ;;  %v5866_v51 = vld [vmem:[%s7066_s0 + $0x38] sm:$0xff]  ;;  %v3644_v53 = vpack.c.bf16 %v347_v47, %v343_v46  ;;  %v5868_v54 = vpack.c.bf16 %v91_v50, %v87_v49  ;;  %v86_v55 = vld [vmem:[#allocation5 + $0x10] sm:$0xff] }
  0x74   :  { %v90_v58 = vld [vmem:[#allocation5 + $0x30] sm:$0xff]  ;;  %v95_v59 = vld [vmem:[#allocation5 + $0x58] sm:$0xff] }
  0x75   :  { %448 = vmatmul.mubr.f32.gmra.mrb[4].mxu1 %v5831_v2  ;;  %7207 = vst [vmem:[#allocation14_spill] sm:$0xff] %v5868_v54  ;;  %v99_v60 = vld [vmem:[#allocation5 + $0x78] sm:$0xff]  ;;  %v5872_v61 = vpack.c.bf16 %v90_v58, %v86_v55  ;;  %v94_v63 = vld [vmem:[#allocation5 + $0x50] sm:$0xff] }
  0x76   :  { %3625 = vmatpush1.bf16.msra.mxu1 %v3624_v3  ;;  %453 = vmatprep.mubr.f32.mxu1 %v7075_v0  ;;  %v5875_v62 = vpack.c.bf16 %v99_v60, %v95_v59  ;;  %v98_v3 = vld [vmem:[#allocation5 + $0x70] sm:$0xff]  ;;  %v107_v5 = vld [vmem:[#allocation5 + $0xb8] sm:$0xff] }
  0x77   :  { %3627 = vmatprep.subr.bf16.mxu1 %v3626_v4  ;;  %v103_v4 = vld [vmem:[#allocation5 + $0x98] sm:$0xff]  ;;  %v5880_v7 = vpack.c.bf16 %v98_v3, %v94_v63  ;;  %v102_v10 = vld [vmem:[#allocation5 + $0x90] sm:$0xff]  ;;  %v148_v3 = vld [vmem:[#allocation7] sm:$0xff] }
  0x78   :  { %v5883_v8 = vpack.c.bf16 %v107_v5, %v103_v4  ;;  %v115_v16 = vld [vmem:[#allocation5 + $0xf8] sm:$0xff]  ;;  %v110_v18 = vld [vmem:[#allocation5 + $0xd0] sm:$0xff]  ;;  %v152_v4 = vld [vmem:[#allocation7 + $0x20] sm:$0xff] }
  0x79   :  { %454 = vmatmul.mubr.f32.gmra.mrb[6].mxu1 %v5838_v11  ;;  %v114_v19 = vld [vmem:[#allocation5 + $0xf0] sm:$0xff]  ;;  %v127_v30 = vld [vmem:[#allocation5 + $0x158] sm:$0xff] }
  0x7a   :  { %3629 = vmatpush1.bf16.msra.mxu1 %v3628_v12  ;;  %459 = vmatprep.mubr.f32.mxu1 %v7075_v0  ;;  %v106_v12 = vld [vmem:[#allocation5 + $0xb0] sm:$0xff]  ;;  %v135_v38 = vld [vmem:[#allocation5 + $0x198] sm:$0xff] }
  0x7b   :  { %3631 = vmatprep.subr.bf16.mxu1 %v3630_v14  ;;  %v111_v14 = vld [vmem:[#allocation5 + $0xd8] sm:$0xff]  ;;  %v118_v27 = vld [vmem:[#allocation5 + $0x110] sm:$0xff] }
  0x7c   :  { %v5891_v17 = vpack.c.bf16 %v115_v16, %v111_v14  ;;  %v122_v28 = vld [vmem:[#allocation5 + $0x130] sm:$0xff]  ;;  %v139_v40 = vld [vmem:[#allocation5 + $0x1b8] sm:$0xff]  ;;  %v157_v16 = vld [vmem:[#allocation7 + $0x48] sm:$0xff] }
  0x7d   :  { %460 = vmatmul.mubr.f32.gmra.mrb[8].mxu1 %v5845_v21  ;;  %v126_v36 = vld [vmem:[#allocation5 + $0x150] sm:$0xff]  ;;  %v143_v47 = vld [vmem:[#allocation5 + $0x1d8] sm:$0xff] }
  0x7e   :  { %3633 = vmatpush1.bf16.msra.mxu1 %v3632_v23  ;;  %465 = vmatprep.mubr.f32.mxu1 %v7075_v0  ;;  %v119_v23 = vld [vmem:[#allocation5 + $0x118] sm:$0xff]  ;;  %v130_v37 = vld [vmem:[#allocation5 + $0x170] sm:$0xff] }
  0x7f   :  { %3635 = vmatprep.subr.bf16.mxu1 %v3634_v24  ;;  %v123_v24 = vld [vmem:[#allocation5 + $0x138] sm:$0xff]  ;;  %v138_v46 = vld [vmem:[#allocation5 + $0x1b0] sm:$0xff] }
  0x80   :  { %v5899_v25 = vpack.c.bf16 %v123_v24, %v119_v23  ;;  %v147_v49 = vld [vmem:[#allocation5 + $0x1f8] sm:$0xff]  ;;  %v146_v55 = vld [vmem:[#allocation5 + $0x1f0] sm:$0xff] }
  0x81   :  { %466 = vmatmul.mubr.f32.gmra.mrb[10].mxu1 %v5852_v31  ;;  %v5923_v50 = vpack.c.bf16 %v147_v49, %v143_v47  ;;  %v151_v59 = vld [vmem:[#allocation7 + $0x18] sm:$0xff] }
  0x82   :  { %3637 = vmatpush1.bf16.msra.mxu1 %v3636_v32  ;;  %471 = vmatprep.mubr.f32.mxu1 %v7075_v0  ;;  %v131_v32 = vld [vmem:[#allocation5 + $0x178] sm:$0xff] }
  0x83   :  { %3639 = vmatprep.subr.bf16.mxu1 %v3638_v33  ;;  %v5907_v33 = vpack.c.bf16 %v131_v32, %v127_v30  ;;  %v155_v63 = vld [vmem:[#allocation7 + $0x38] sm:$0xff] }
  0x84   :  { %v5938_v5 = vpack.c.bf16 %v155_v63, %v151_v59  ;;  %v163_v24 = vld [vmem:[#allocation7 + $0x78] sm:$0xff]  ;;  %v170_v63 = vld [vmem:[#allocation7 + $0xb0] sm:$0xff] }
  0x85   :  { %472 = vmatmul.mubr.f32.gmra.mrb[12].mxu1 %v5859_v42  ;;  %v171_v47 = vld [vmem:[#allocation7 + $0xb8] sm:$0xff] }
  0x86   :  { %3641 = vmatpush1.bf16.msra.mxu1 %v3640_v43  ;;  %477 = vmatprep.mubr.f32.mxu1 %v7075_v0  ;;  %v5915_v43 = vpack.c.bf16 %v139_v40, %v135_v38  ;;  %v165_v38 = vld [vmem:[#allocation7 + $0x88] sm:$0xff] }
  0x87   :  { %3643 = vmatprep.subr.bf16.mxu1 %v3642_v45  ;;  %v134_v45 = vld [vmem:[#allocation5 + $0x190] sm:$0xff] }
  0x89   :  { %478 = vmatmul.mubr.f32.gmra.mrb[14].mxu1 %v5866_v51 }
  0x8a   :  { %3645 = vmatpush1.bf16.msra.mxu1 %v3644_v53  ;;  %548 = vmatprep.mubr.f32.mxu1 %v7075_v0  ;;  %v142_v53 = vld [vmem:[#allocation5 + $0x1d0] sm:$0xff] }
  0x8b   :  { %3679 = vmatprep.subr.bf16.mxu1 %v5868_v54  ;;  %v5928_v58 = vpack.c.bf16 %v146_v55, %v142_v53  ;;  %v164_v55 = vld [vmem:[#allocation7 + $0x80] sm:$0xff] }
  0x8d   :  { %549 = vmatmul.mubr.f32.vlgmr.msra.gmra.mrb[16].mxu1 %v5814_v48  ;;  %v5888_v48 = vpack.c.bf16 %v106_v12, %v102_v10  ;;  %v5940_v10 = vpack.c.bf16 %v152_v4, %v148_v3  ;;  %v154_v12 = vld [vmem:[#allocation7 + $0x30] sm:$0xff]  ;;  %v173_v3 = vld [vmem:[#allocation7 + $0xc8] sm:$0xff] }
  0x8e   :  { %3681 = vmatpush1.bf16.msra.mxu1 %v5872_v61  ;;  %554 = vmatprep.mubr.f32.mxu1 %v7075_v0  ;;  %v177_v4 = vld [vmem:[#allocation7 + $0xe8] sm:$0xff] }
  0x8f   :  { %3683 = vmatprep.subr.bf16.mxu1 %v5875_v62 }
  0x91   :  { %555 = vmatmul.mubr.f32.gmra.mrb[18].mxu1 %v5822_v56  ;;  %v5896_v56 = vpack.c.bf16 %v114_v19, %v110_v18  ;;  %v161_v18 = vld [vmem:[#allocation7 + $0x68] sm:$0xff]  ;;  %v159_v19 = vld [vmem:[#allocation7 + $0x58] sm:$0xff] }
  0x92   :  { %3685 = vmatpush1.bf16.msra.mxu1 %v5880_v7  ;;  %560 = vmatprep.mubr.f32.mxu1 %v7075_v0  ;;  %v5948_v23 = vpack.c.bf16 %v161_v18, %v157_v16  ;;  %v5950_v30 = vpack.c.bf16 %v163_v24, %v159_v19  ;;  %v175_v16 = vld [vmem:[#allocation7 + $0xd8] sm:$0xff]  ;;  %v172_v19 = vld [vmem:[#allocation7 + $0xc0] sm:$0xff] }
  0x93   :  { %3687 = vmatprep.subr.bf16.mxu1 %v5883_v8  ;;  %v179_v18 = vld [vmem:[#allocation7 + $0xf8] sm:$0xff] }
  0x94   :  { %v5972_v24 = vpack.c.bf16 %v179_v18, %v175_v16  ;;  %v186_v16 = vld [vmem:[#allocation7 + $0x130] sm:$0xff]  ;;  %v189_v18 = vld [vmem:[#allocation7 + $0x148] sm:$0xff] }
  0x95   :  { %561 = vmatmul.mubr.f32.gmra.mrb[20].mxu1 %v5831_v2  ;;  %v5904_v2 = vpack.c.bf16 %v122_v28, %v118_v27  ;;  %v156_v27 = vld [vmem:[#allocation7 + $0x40] sm:$0xff] }
  0x96   :  { %3689 = vmatpush1.bf16.msra.mxu1 %v5888_v48  ;;  %566 = vmatprep.mubr.f32.mxu1 %v7075_v0  ;;  %v160_v28 = vld [vmem:[#allocation7 + $0x60] sm:$0xff]  ;;  %7212 = vst [vmem:[#allocation19_spill] sm:$0xff] %v5972_v24 }
  0x97   :  { %3691 = vmatprep.subr.bf16.mxu1 %v5891_v17  ;;  %v5952_v32 = vpack.c.bf16 %v160_v28, %v156_v27  ;;  %v176_v27 = vld [vmem:[#allocation7 + $0xe0] sm:$0xff]  ;;  %v174_v28 = vld [vmem:[#allocation7 + $0xd0] sm:$0xff] }
  0x99   :  { %567 = vmatmul.mubr.f32.gmra.mrb[22].mxu1 %v5838_v11  ;;  %v5912_v11 = vpack.c.bf16 %v130_v37, %v126_v36  ;;  %v158_v36 = vld [vmem:[#allocation7 + $0x50] sm:$0xff] }
  0x9a   :  { %3693 = vmatpush1.bf16.msra.mxu1 %v5896_v56  ;;  %572 = vmatprep.mubr.f32.mxu1 %v7075_v0  ;;  %v162_v37 = vld [vmem:[#allocation7 + $0x70] sm:$0xff] }
  0x9b   :  { %3695 = vmatprep.subr.bf16.mxu1 %v5899_v25  ;;  %v5955_v40 = vpack.c.bf16 %v162_v37, %v158_v36  ;;  %v178_v36 = vld [vmem:[#allocation7 + $0xf0] sm:$0xff]  ;;  %v5975_v37 = vpack.c.bf16 %v176_v27, %v172_v19  ;;  %v193_v19 = vld [vmem:[#allocation7 + $0x168] sm:$0xff]  ;;  %v191_v27 = vld [vmem:[#allocation7 + $0x158] sm:$0xff] }
  0x9d   :  { %573 = vmatmul.mubr.f32.gmra.mrb[24].mxu1 %v5845_v21  ;;  %v5920_v21 = vpack.c.bf16 %v138_v46, %v134_v45  ;;  %v169_v45 = vld [vmem:[#allocation7 + $0xa8] sm:$0xff]  ;;  %v167_v46 = vld [vmem:[#allocation7 + $0x98] sm:$0xff]  ;;  %7213 = vst [vmem:[#allocation20_spill] sm:$0xff] %v5975_v37 }
  0x9e   :  { %3697 = vmatpush1.bf16.msra.mxu1 %v5904_v2  ;;  %578 = vmatprep.mubr.f32.mxu1 %v7075_v0  ;;  %v5959_v49 = vpack.c.bf16 %v169_v45, %v165_v38  ;;  %v5961_v53 = vpack.c.bf16 %v171_v47, %v167_v46  ;;  %v181_v38 = vld [vmem:[#allocation7 + $0x108] sm:$0xff]  ;;  %v183_v46 = vld [vmem:[#allocation7 + $0x118] sm:$0xff]  ;;  %v5979_v47 = vpack.c.bf16 %v178_v36, %v174_v28 }
  0x9f   :  { %3699 = vmatprep.subr.bf16.mxu1 %v5907_v33  ;;  %v185_v45 = vld [vmem:[#allocation7 + $0x128] sm:$0xff]  ;;  %v5993_v36 = vpack.c.bf16 %v193_v19, %v189_v18  ;;  %v196_v18 = vld [vmem:[#allocation7 + $0x180] sm:$0xff]  ;;  %v198_v19 = vld [vmem:[#allocation7 + $0x190] sm:$0xff] }
  0xa0   :  { %7208 = vst [vmem:[#allocation15_spill] sm:$0xff] %v5961_v53  ;;  %7214 = vst [vmem:[#allocation21_spill] sm:$0xff] %v5979_v47 }
  0xa1   :  { %579 = vmatmul.mubr.f32.gmra.mrb[26].mxu1 %v5852_v31  ;;  %v149_v31 = vld [vmem:[#allocation7 + $0x8] sm:$0xff]  ;;  %7219 = vst [vmem:[#allocation26_spill] sm:$0xff] %v5993_v36 }
  0xa2   :  { %3701 = vmatpush1.bf16.msra.mxu1 %v5912_v11  ;;  %584 = vmatprep.mubr.f32.mxu1 %v7075_v0 }
  0xa3   :  { %3703 = vmatprep.subr.bf16.mxu1 %v5915_v43 }
  0xa5   :  { %585 = vmatmul.mubr.f32.gmra.mrb[28].mxu1 %v5859_v42  ;;  %v153_v42 = vld [vmem:[#allocation7 + $0x28] sm:$0xff] }
  0xa6   :  { %3705 = vmatpush1.bf16.msra.mxu1 %v5920_v21  ;;  %590 = vmatprep.mubr.f32.mxu1 %v7075_v0  ;;  %v5936_v60 = vpack.c.bf16 %v153_v42, %v149_v31  ;;  %v168_v31 = vld [vmem:[#allocation7 + $0xa0] sm:$0xff]  ;;  %v166_v42 = vld [vmem:[#allocation7 + $0x90] sm:$0xff] }
  0xa7   :  { %3707 = vmatprep.subr.bf16.mxu1 %v5923_v50  ;;  %v5964_v59 = vpack.c.bf16 %v168_v31, %v164_v55  ;;  %v5981_v55 = vpack.c.bf16 %v185_v45, %v181_v38  ;;  %v187_v31 = vld [vmem:[#allocation7 + $0x138] sm:$0xff]  ;;  %v188_v38 = vld [vmem:[#allocation7 + $0x140] sm:$0xff] }
  0xa8   :  { %3711 = vmatprep.subr.bf16.mxu0 %v5936_v60  ;;  %v192_v45 = vld [vmem:[#allocation7 + $0x160] sm:$0xff] }
  0xa9   :  { %591 = vmatmul.mubr.f32.gmra.mrb[30].mxu1 %v5866_v51  ;;  %v150_v51 = vld [vmem:[#allocation7 + $0x10] sm:$0xff]  ;;  %3713 = vmatpush1.bf16.msra.mxu0 %v5940_v10  ;;  %7209 = vst [vmem:[#allocation16_spill] sm:$0xff] %v5964_v59  ;;  %7215 = vst [vmem:[#allocation22_spill] sm:$0xff] %v5981_v55 }
  0xaa   :  { %3709 = vmatpush1.bf16.msra.mxu1 %v5928_v58  ;;  %732 = vmatprep.mubr.f32.mxu1 %v7075_v0  ;;  %v5943_v14 = vpack.c.bf16 %v154_v12, %v150_v51  ;;  %v5968_v51 = vpack.c.bf16 %v170_v63, %v166_v42  ;;  %v5970_v12 = vpack.c.bf16 %v177_v4, %v173_v3  ;;  %v180_v42 = vld [vmem:[#allocation7 + $0x100] sm:$0xff]  ;;  %v182_v4 = vld [vmem:[#allocation7 + $0x110] sm:$0xff] }
  0xab   :  { %3775 = vmatprep.subr.bf16.mxu1 %v5938_v5  ;;  %3715 = vmatprep.subr.bf16.mxu0 %v5948_v23  ;;  %v184_v63 = vld [vmem:[#allocation7 + $0x120] sm:$0xff]  ;;  %v5984_v3 = vpack.c.bf16 %v187_v31, %v183_v46  ;;  %v5991_v28 = vpack.c.bf16 %v186_v16, %v182_v4  ;;  %v190_v46 = vld [vmem:[#allocation7 + $0x150] sm:$0xff] }
  0xac   :  { %7210 = vst [vmem:[#allocation17_spill] sm:$0xff] %v5968_v51  ;;  %7211 = vst [vmem:[#allocation18_spill] sm:$0xff] %v5970_v12 }
  0xad   :  { %733 = vmatmul.mubr.f32.vlgmr.msra.gmra.mrb[16].mxu1 %v7075_v0  ;;  %3717 = vmatpush1.bf16.msra.mxu0 %v5952_v32  ;;  %7216 = vst [vmem:[#allocation23_spill] sm:$0xff] %v5984_v3  ;;  %7218 = vst [vmem:[#allocation25_spill] sm:$0xff] %v5991_v28 }
  0xae   :  { %923 = vmatprep.mubr.f32.mxu1 %v7075_v0  ;;  %3777 = vmatpush1.bf16.msra.mxu1 %v5943_v14  ;;  %v195_v0 = vld [vmem:[#allocation7 + $0x178] sm:$0xff] }
  0xaf   :  { %3779 = vmatprep.subr.bf16.mxu1 %v5950_v30  ;;  %3719 = vmatprep.subr.bf16.mxu0 %v5959_v49  ;;  %v5996_v31 = vpack.c.bf16 %v195_v0, %v191_v27  ;;  %v200_v0 = vld [vmem:[#allocation7 + $0x1a0] sm:$0xff] }
  0xb1   :  { %3721 = vmatpush1.bf16.msra.mxu0 %v5964_v59  ;;  %7220 = vst [vmem:[#allocation27_spill] sm:$0xff] %v5996_v31 }
  0xb2   :  { %3781 = vmatpush1.bf16.msra.mxu1 %v5955_v40  ;;  %3723 = vmatprep.subr.bf16.mxu0 %v5970_v12  ;;  %v5987_v12 = vpack.c.bf16 %v184_v63, %v180_v42  ;;  %v199_v42 = vld [vmem:[#allocation7 + $0x198] sm:$0xff] }
  0xb3   :  { %3783 = vmatprep.subr.bf16.mxu1 %v5961_v53  ;;  %v203_v63 = vld [vmem:[#allocation7 + $0x1b8] sm:$0xff] }
  0xb4   :  { %7217 = vst [vmem:[#allocation24_spill] sm:$0xff] %v5987_v12  ;;  %v6008_v27 = vpack.c.bf16 %v203_v63, %v199_v42  ;;  %v206_v42 = vld [vmem:[#allocation7 + $0x1d0] sm:$0xff] }
  0xb5   :  { %3725 = vmatpush1.bf16.msra.mxu0 %v5975_v37  ;;  %v201_v37 = vld [vmem:[#allocation7 + $0x1a8] sm:$0xff] }
  0xb6   :  { %3785 = vmatpush1.bf16.msra.mxu1 %v5968_v51  ;;  %3727 = vmatprep.subr.bf16.mxu0 %v5981_v55  ;;  %v197_v51 = vld [vmem:[#allocation7 + $0x188] sm:$0xff]  ;;  %7224 = vst [vmem:[#allocation31_spill] sm:$0xff] %v6008_v27 }
  0xb7   :  { %3787 = vmatprep.subr.bf16.mxu1 %v5972_v24  ;;  %v194_v24 = vld [vmem:[#allocation7 + $0x170] sm:$0xff]  ;;  %v6005_v16 = vpack.c.bf16 %v201_v37, %v197_v51  ;;  %v205_v55 = vld [vmem:[#allocation7 + $0x1c8] sm:$0xff]  ;;  %v204_v37 = vld [vmem:[#allocation7 + $0x1c0] sm:$0xff] }
  0xb8   :  { %v6003_v4 = vpack.c.bf16 %v194_v24, %v190_v46  ;;  %v208_v46 = vld [vmem:[#allocation7 + $0x1e0] sm:$0xff] }
  0xb9   :  { %3729 = vmatpush1.bf16.msra.mxu0 %v5987_v12  ;;  %7223 = vst [vmem:[#allocation30_spill] sm:$0xff] %v6005_v16  ;;  %v209_v12 = vld [vmem:[#allocation7 + $0x1e8] sm:$0xff] }
  0xba   :  { %3789 = vmatpush1.bf16.msra.mxu1 %v5979_v47  ;;  %v5999_v47 = vpack.c.bf16 %v192_v45, %v188_v38  ;;  %3731 = vmatprep.subr.bf16.mxu0 %v5993_v36  ;;  %7222 = vst [vmem:[#allocation29_spill] sm:$0xff] %v6003_v4  ;;  %v207_v38 = vld [vmem:[#allocation7 + $0x1d8] sm:$0xff]  ;;  %v6017_v24 = vpack.c.bf16 %v209_v12, %v205_v55  ;;  %v213_v36 = vld [vmem:[#allocation7 + $0x208] sm:$0xff] }
  0xbb   :  { %3791 = vmatprep.subr.bf16.mxu1 %v5984_v3  ;;  %v202_v3 = vld [vmem:[#allocation7 + $0x1b0] sm:$0xff]  ;;  %v211_v45 = vld [vmem:[#allocation7 + $0x1f8] sm:$0xff] }
  0xbc   :  { %7221 = vst [vmem:[#allocation28_spill] sm:$0xff] %v5999_v47  ;;  %v6015_v51 = vpack.c.bf16 %v202_v3, %v198_v19  ;;  %7227 = vst [vmem:[#allocation34_spill] sm:$0xff] %v6017_v24  ;;  %v6020_v63 = vpack.c.bf16 %v211_v45, %v207_v38  ;;  %v212_v19 = vld [vmem:[#allocation7 + $0x200] sm:$0xff]  ;;  %v214_v45 = vld [vmem:[#allocation7 + $0x210] sm:$0xff] }
  0xbd   :  { %3733 = vmatpush1.bf16.msra.mxu0 %v5999_v47  ;;  %v217_v47 = vld [vmem:[#allocation7 + $0x228] sm:$0xff]  ;;  %v216_v38 = vld [vmem:[#allocation7 + $0x220] sm:$0xff] }
  0xbe   :  { %3793 = vmatpush1.bf16.msra.mxu1 %v5991_v28  ;;  %v6011_v28 = vpack.c.bf16 %v200_v0, %v196_v18  ;;  %3735 = vmatprep.subr.bf16.mxu0 %v6005_v16  ;;  %7226 = vst [vmem:[#allocation33_spill] sm:$0xff] %v6015_v51  ;;  %7228 = vst [vmem:[#allocation35_spill] sm:$0xff] %v6020_v63  ;;  %v215_v18 = vld [vmem:[#allocation7 + $0x218] sm:$0xff]  ;;  %v6029_v55 = vpack.c.bf16 %v217_v47, %v213_v36  ;;  %v221_v36 = vld [vmem:[#allocation7 + $0x248] sm:$0xff] }
  0xbf   :  { %3795 = vmatprep.subr.bf16.mxu1 %v5996_v31  ;;  %v210_v31 = vld [vmem:[#allocation7 + $0x1f0] sm:$0xff]  ;;  %v219_v0 = vld [vmem:[#allocation7 + $0x238] sm:$0xff] }
  0xc0   :  { %7225 = vst [vmem:[#allocation32_spill] sm:$0xff] %v6011_v28  ;;  %v6027_v12 = vpack.c.bf16 %v210_v31, %v206_v42  ;;  %7231 = vst [vmem:[#allocation38_spill] sm:$0xff] %v6029_v55  ;;  %v6032_v3 = vpack.c.bf16 %v219_v0, %v215_v18  ;;  %v218_v31 = vld [vmem:[#allocation7 + $0x230] sm:$0xff]  ;;  %v223_v42 = vld [vmem:[#allocation7 + $0x258] sm:$0xff] }
  0xc1   :  { %3737 = vmatpush1.bf16.msra.mxu0 %v6011_v28  ;;  %v6040_v47 = vpack.c.bf16 %v218_v31, %v214_v45  ;;  %v227_v0 = vld [vmem:[#allocation7 + $0x278] sm:$0xff]  ;;  %v229_v31 = vld [vmem:[#allocation7 + $0x288] sm:$0xff] }
  0xc2   :  { %3797 = vmatpush1.bf16.msra.mxu1 %v6003_v4  ;;  %v6023_v4 = vpack.c.bf16 %v208_v46, %v204_v37  ;;  %3739 = vmatprep.subr.bf16.mxu0 %v6017_v24  ;;  %7230 = vst [vmem:[#allocation37_spill] sm:$0xff] %v6027_v12  ;;  %7232 = vst [vmem:[#allocation39_spill] sm:$0xff] %v6032_v3  ;;  %v6038_v37 = vpack.c.bf16 %v216_v38, %v212_v19  ;;  %v225_v46 = vld [vmem:[#allocation7 + $0x268] sm:$0xff]  ;;  %v222_v19 = vld [vmem:[#allocation7 + $0x250] sm:$0xff] }
  0xc3   :  { %3799 = vmatprep.subr.bf16.mxu1 %v6008_v27  ;;  %7234 = vst [vmem:[#allocation41_spill] sm:$0xff] %v6040_v47  ;;  %v6044_v18 = vpack.c.bf16 %v225_v46, %v221_v36  ;;  %v226_v38 = vld [vmem:[#allocation7 + $0x270] sm:$0xff]  ;;  %v233_v36 = vld [vmem:[#allocation7 + $0x2a8] sm:$0xff]  ;;  %v231_v46 = vld [vmem:[#allocation7 + $0x298] sm:$0xff] }
  0xc4   :  { %7229 = vst [vmem:[#allocation36_spill] sm:$0xff] %v6023_v4  ;;  %7233 = vst [vmem:[#allocation40_spill] sm:$0xff] %v6038_v37  ;;  %v6051_v45 = vpack.c.bf16 %v226_v38, %v222_v19  ;;  %v230_v19 = vld [vmem:[#allocation7 + $0x290] sm:$0xff] }
  0xc5   :  { %3741 = vmatpush1.bf16.msra.mxu0 %v6023_v4  ;;  %7235 = vst [vmem:[#allocation42_spill] sm:$0xff] %v6044_v18  ;;  %v6046_v4 = vpack.c.bf16 %v227_v0, %v223_v42  ;;  %v235_v42 = vld [vmem:[#allocation7 + $0x2b8] sm:$0xff]  ;;  %v234_v38 = vld [vmem:[#allocation7 + $0x2b0] sm:$0xff] }
  0xc6   :  { %3801 = vmatpush1.bf16.msra.mxu1 %v6015_v51  ;;  %3743 = vmatprep.subr.bf16.mxu0 %v6029_v55  ;;  %v220_v55 = vld [vmem:[#allocation7 + $0x240] sm:$0xff]  ;;  %7238 = vst [vmem:[#allocation45_spill] sm:$0xff] %v6051_v45  ;;  %v6058_v0 = vpack.c.bf16 %v235_v42, %v231_v46  ;;  %v243_v46 = vld [vmem:[#allocation7 + $0x2f8] sm:$0xff] }
  0xc7   :  { %3803 = vmatprep.subr.bf16.mxu1 %v6020_v63  ;;  %7236 = vst [vmem:[#allocation43_spill] sm:$0xff] %v6046_v4  ;;  %v236_v42 = vld [vmem:[#allocation7 + $0x2c0] sm:$0xff]  ;;  %v263_v63 = vld [vmem:[#allocation7 + $0x398] sm:$0xff] }
  0xc8   :  { %7240 = vst [vmem:[#allocation47_spill] sm:$0xff] %v6058_v0 }
  0xc9   :  { %3745 = vmatpush1.bf16.msra.mxu0 %v6038_v37 }
  0xca   :  { %3805 = vmatpush1.bf16.msra.mxu1 %v6027_v12  ;;  %v224_v12 = vld [vmem:[#allocation7 + $0x260] sm:$0xff]  ;;  %3747 = vmatprep.subr.bf16.mxu0 %v6044_v18 }
  0xcb   :  { %3807 = vmatprep.subr.bf16.mxu1 %v6032_v3  ;;  %v6048_v3 = vpack.c.bf16 %v224_v12, %v220_v55  ;;  %v228_v12 = vld [vmem:[#allocation7 + $0x280] sm:$0xff] }
  0xcc   :  { %v232_v55 = vld [vmem:[#allocation7 + $0x2a0] sm:$0xff] }
  0xcd   :  { %7237 = vst [vmem:[#allocation44_spill] sm:$0xff] %v6048_v3  ;;  %3749 = vmatpush1.bf16.msra.mxu0 %v6048_v3  ;;  %v6060_v37 = vpack.c.bf16 %v232_v55, %v228_v12  ;;  %v240_v12 = vld [vmem:[#allocation7 + $0x2e0] sm:$0xff] }
  0xce   :  { %3809 = vmatpush1.bf16.msra.mxu1 %v6040_v47  ;;  %v6056_v47 = vpack.c.bf16 %v233_v36, %v229_v31  ;;  %v241_v31 = vld [vmem:[#allocation7 + $0x2e8] sm:$0xff]  ;;  %v239_v36 = vld [vmem:[#allocation7 + $0x2d8] sm:$0xff]  ;;  %v6072_v18 = vpack.c.bf16 %v240_v12, %v236_v42  ;;  %v248_v42 = vld [vmem:[#allocation7 + $0x320] sm:$0xff] }
  0xcf   :  { %3811 = vmatprep.subr.bf16.mxu1 %v6046_v4  ;;  %7241 = vst [vmem:[#allocation48_spill] sm:$0xff] %v6060_v37  ;;  %v6063_v4 = vpack.c.bf16 %v234_v38, %v230_v19  ;;  %v6070_v55 = vpack.c.bf16 %v243_v46, %v239_v36  ;;  %v238_v19 = vld [vmem:[#allocation7 + $0x2d0] sm:$0xff]  ;;  %v251_v36 = vld [vmem:[#allocation7 + $0x338] sm:$0xff]  ;;  %v244_v46 = vld [vmem:[#allocation7 + $0x300] sm:$0xff] }
  0xd0   :  { %7239 = vst [vmem:[#allocation46_spill] sm:$0xff] %v6056_v47  ;;  %3751 = vmatprep.subr.bf16.mxu0 %v6056_v47  ;;  %7245 = vst [vmem:[#allocation52_spill] sm:$0xff] %v6072_v18  ;;  %v242_v38 = vld [vmem:[#allocation7 + $0x2f0] sm:$0xff]  ;;  %v6084_v47 = vpack.c.bf16 %v248_v42, %v244_v46  ;;  %v256_v46 = vld [vmem:[#allocation7 + $0x360] sm:$0xff] }
  0xd1   :  { %7242 = vst [vmem:[#allocation49_spill] sm:$0xff] %v6063_v4  ;;  %3753 = vmatpush1.bf16.msra.mxu0 %v6060_v37  ;;  %7244 = vst [vmem:[#allocation51_spill] sm:$0xff] %v6070_v55 }
  0xd2   :  { %3813 = vmatpush1.bf16.msra.mxu1 %v6051_v45  ;;  %v237_v45 = vld [vmem:[#allocation7 + $0x2c8] sm:$0xff]  ;;  %7249 = vst [vmem:[#allocation56_spill] sm:$0xff] %v6084_v47 }
  0xd3   :  { %3815 = vmatprep.subr.bf16.mxu1 %v6058_v0  ;;  %v6068_v3 = vpack.c.bf16 %v241_v31, %v237_v45  ;;  %v6075_v0 = vpack.c.bf16 %v242_v38, %v238_v19  ;;  %v249_v45 = vld [vmem:[#allocation7 + $0x328] sm:$0xff]  ;;  %v247_v31 = vld [vmem:[#allocation7 + $0x318] sm:$0xff]  ;;  %v246_v19 = vld [vmem:[#allocation7 + $0x310] sm:$0xff] }
  0xd4   :  { %v6082_v12 = vpack.c.bf16 %v251_v36, %v247_v31  ;;  %v250_v38 = vld [vmem:[#allocation7 + $0x330] sm:$0xff]  ;;  %v259_v31 = vld [vmem:[#allocation7 + $0x378] sm:$0xff]  ;;  %v252_v36 = vld [vmem:[#allocation7 + $0x340] sm:$0xff] }
  0xd5   :  { %7243 = vst [vmem:[#allocation50_spill] sm:$0xff] %v6068_v3  ;;  %3755 = vmatprep.subr.bf16.mxu0 %v6068_v3  ;;  %7246 = vst [vmem:[#allocation53_spill] sm:$0xff] %v6075_v0  ;;  %v6096_v3 = vpack.c.bf16 %v256_v46, %v252_v36 }
  0xd6   :  { %3817 = vmatpush1.bf16.msra.mxu1 %v6063_v4  ;;  %3757 = vmatpush1.bf16.msra.mxu0 %v6072_v18  ;;  %v245_v4 = vld [vmem:[#allocation7 + $0x308] sm:$0xff]  ;;  %7248 = vst [vmem:[#allocation55_spill] sm:$0xff] %v6082_v12 }
  0xd7   :  { %3819 = vmatprep.subr.bf16.mxu1 %v6070_v55  ;;  %v6080_v37 = vpack.c.bf16 %v249_v45, %v245_v4  ;;  %v6087_v55 = vpack.c.bf16 %v250_v38, %v246_v19  ;;  %v257_v4 = vld [vmem:[#allocation7 + $0x368] sm:$0xff]  ;;  %v255_v45 = vld [vmem:[#allocation7 + $0x358] sm:$0xff]  ;;  %7253 = vst [vmem:[#allocation60_spill] sm:$0xff] %v6096_v3  ;;  %v254_v19 = vld [vmem:[#allocation7 + $0x350] sm:$0xff] }
  0xd8   :  { %v6094_v42 = vpack.c.bf16 %v259_v31, %v255_v45  ;;  %v258_v38 = vld [vmem:[#allocation7 + $0x370] sm:$0xff]  ;;  %v260_v45 = vld [vmem:[#allocation7 + $0x380] sm:$0xff] }
  0xd9   :  { %7247 = vst [vmem:[#allocation54_spill] sm:$0xff] %v6080_v37  ;;  %3759 = vmatprep.subr.bf16.mxu0 %v6080_v37  ;;  %7250 = vst [vmem:[#allocation57_spill] sm:$0xff] %v6087_v55  ;;  %v265_v37 = vld [vmem:[#allocation7 + $0x3a8] sm:$0xff]  ;;  %v264_v31 = vld [vmem:[#allocation7 + $0x3a0] sm:$0xff] }
  0xda   :  { %3821 = vmatpush1.bf16.msra.mxu1 %v6075_v0  ;;  %3761 = vmatpush1.bf16.msra.mxu0 %v6084_v47  ;;  %v253_v0 = vld [vmem:[#allocation7 + $0x348] sm:$0xff]  ;;  %7252 = vst [vmem:[#allocation59_spill] sm:$0xff] %v6094_v42  ;;  %v6108_v46 = vpack.c.bf16 %v264_v31, %v260_v45  ;;  %v270_v45 = vld [vmem:[#allocation7 + $0x3d0] sm:$0xff] }
  0xdb   :  { %3823 = vmatprep.subr.bf16.mxu1 %v6082_v12  ;;  %v6092_v18 = vpack.c.bf16 %v257_v4, %v253_v0  ;;  %v6099_v12 = vpack.c.bf16 %v258_v38, %v254_v19  ;;  %v261_v47 = vld [vmem:[#allocation7 + $0x388] sm:$0xff]  ;;  %v267_v4 = vld [vmem:[#allocation7 + $0x3b8] sm:$0xff]  ;;  %v262_v19 = vld [vmem:[#allocation7 + $0x390] sm:$0xff] }
  0xdc   :  { %v6103_v0 = vpack.c.bf16 %v265_v37, %v261_v47  ;;  %v6106_v36 = vpack.c.bf16 %v267_v4, %v263_v63  ;;  %7257 = vst [vmem:[#allocation64_spill] sm:$0xff] %v6108_v46  ;;  %v266_v38 = vld [vmem:[#allocation7 + $0x3b0] sm:$0xff]  ;;  %v275_v37 = vld [vmem:[#allocation7 + $0x3f8] sm:$0xff]  ;;  %v268_v63 = vld [vmem:[#allocation7 + $0x3c0] sm:$0xff] }
  0xdd   :  { %7251 = vst [vmem:[#allocation58_spill] sm:$0xff] %v6092_v18  ;;  %3763 = vmatprep.subr.bf16.mxu0 %v6092_v18  ;;  %7254 = vst [vmem:[#allocation61_spill] sm:$0xff] %v6099_v12  ;;  %v269_v18 = vld [vmem:[#allocation7 + $0x3c8] sm:$0xff]  ;;  %v272_v4 = vld [vmem:[#allocation7 + $0x3e0] sm:$0xff] }
  0xde   :  { %3825 = vmatpush1.bf16.msra.mxu1 %v6087_v55  ;;  %3765 = vmatpush1.bf16.msra.mxu0 %v6096_v3  ;;  %7255 = vst [vmem:[#allocation62_spill] sm:$0xff] %v6103_v0  ;;  %7256 = vst [vmem:[#allocation63_spill] sm:$0xff] %v6106_v36  ;;  %v6111_v55 = vpack.c.bf16 %v266_v38, %v262_v19  ;;  %v271_v3 = vld [vmem:[#allocation7 + $0x3d8] sm:$0xff]  ;;  %v6119_v31 = vpack.c.bf16 %v272_v4, %v268_v63 }
  0xdf   :  { %3827 = vmatprep.subr.bf16.mxu1 %v6094_v42  ;;  %3767 = vmatprep.subr.bf16.mxu0 %v6103_v0  ;;  %v273_v42 = vld [vmem:[#allocation7 + $0x3e8] sm:$0xff]  ;;  %v6116_v24 = vpack.c.bf16 %v275_v37, %v271_v3  ;;  %v351_v3 = vlaneseq }
  0xe0   :  { %7258 = vst [vmem:[#allocation65_spill] sm:$0xff] %v6111_v55  ;;  %v6114_v47 = vpack.c.bf16 %v273_v42, %v269_v18  ;;  %7261 = vst [vmem:[#allocation68_spill] sm:$0xff] %v6119_v31 }
  0xe1   :  { %7260 = vst [vmem:[#allocation67_spill] sm:$0xff] %v6116_v24  ;;  %v6130_v18 = vshrl.u32 %v351_v3, 7 }
  0xe2   :  { %3829 = vmatpush1.bf16.msra.mxu1 %v6099_v12  ;;  %7259 = vst [vmem:[#allocation66_spill] sm:$0xff] %v6114_v47  ;;  %3769 = vmatpush1.bf16.msra.mxu0 %v6108_v46  ;;  %v274_v12 = vld [vmem:[#allocation7 + $0x3f0] sm:$0xff] }
  0xe3   :  { %3831 = vmatprep.subr.bf16.mxu1 %v6106_v36  ;;  %3771 = vmatprep.subr.bf16.mxu0 %v6114_v47  ;;  %v6123_v19 = vpack.c.bf16 %v274_v12, %v270_v45  ;;  %v7181_v42 = vsub.s32 0, %v6130_v18  ;;  %v349_v12 = vld [vmem:[%s7069_s3] sm:$0xf]  ;;  %v7184_v38 = vsub.s32 1, %v6130_v18 }
  0xe5   :  { %7262 = vst [vmem:[#allocation69_spill] sm:$0xff] %v6123_v19  ;;  %v354_v37 = vrot.slane %v349_v12, %v7181_v42  ;;  %v358_v63 = vrot.slane %v349_v12, %v7184_v38 }
  0xe6   :  { %3833 = vmatpush1.bf16.msra.mxu1 %v6111_v55  ;;  %3773 = vmatpush1.bf16.msra.mxu0 %v6119_v31 }
  0xe7   :  { %3835 = vmatprep.subr.bf16.mxu1 %v6116_v24  ;;  %3839 = vmatprep.subr.bf16.mxu0 %v5764_v9 }
  0xea   :  { %3837 = vmatpush1.bf16.msra.mxu1 %v6123_v19 }
  0xeb   :  { %3871 = vmatprep.subr.bf16.mxu1 %v5868_v54 }
 0x140   :  { %v437_v4 = vpop.f32.mrb[0].mxu1 }
 0x141   :  { %v438_v45 = vadd.f32 %v437_v4, %v354_v37  ;;  %v439_v54 = vpop.f32.mrb[1].mxu1 }
 0x142   :  { %v663_v9 = vpop.f32.mrb[0].mxu0  ;;  %v440_v3 = vadd.f32 %v439_v54, %v358_v63 }
 0x143   :  { %v665_v19 = vpop.f32.mrb[1].mxu0  ;;  %v739_v31 = vadd.f32 %v663_v9, %v438_v45 }
 0x144   :  { %v740_v24 = vadd.f32 %v665_v19, %v440_v3  ;;  %v443_v47 = vpop.f32.mrb[2].mxu1 }
 0x145   :  { %v6141_v55 = vadd.f32 %v443_v47, %v354_v37  ;;  %v445_v46 = vpop.f32.mrb[3].mxu1 }
 0x146   :  { %v6143_v36 = vadd.f32 %v445_v46, %v358_v63 }
 0x148   :  { %v449_v0 = vpop.f32.mrb[4].mxu1 }
 0x149   :  { %v6145_v51 = vadd.f32 %v449_v0, %v354_v37  ;;  %v451_v42 = vpop.f32.mrb[5].mxu1 }
 0x14a   :  { %v6147_v28 = vadd.f32 %v451_v42, %v358_v63 }
 0x14b   :  { %7263 = vst [vmem:[#allocation70_spill] sm:$0xff] %v6145_v51 }
 0x14c   :  { %7264 = vst [vmem:[#allocation71_spill] sm:$0xff] %v6147_v28  ;;  %v455_v38 = vpop.f32.mrb[6].mxu1 }
 0x14d   :  { %v6149_v4 = vadd.f32 %v455_v38, %v354_v37  ;;  %v457_v27 = vpop.f32.mrb[7].mxu1 }
 0x14e   :  { %v6151_v54 = vadd.f32 %v457_v27, %v358_v63 }
 0x14f   :  { %7265 = vst [vmem:[#allocation72_spill] sm:$0xff] %v6149_v4 }
 0x150   :  { %7266 = vst [vmem:[#allocation73_spill] sm:$0xff] %v6151_v54  ;;  %v461_v9 = vpop.f32.mrb[8].mxu1 }
 0x151   :  { %v6153_v19 = vadd.f32 %v461_v9, %v354_v37  ;;  %v463_v47 = vpop.f32.mrb[9].mxu1 }
 0x152   :  { %v6155_v45 = vadd.f32 %v463_v47, %v358_v63  ;;  %v3466_v47 = vmul.f32 -1.442695, %v740_v24 }
 0x153   :  { %7267 = vst [vmem:[#allocation74_spill] sm:$0xff] %v6153_v19 }
 0x154   :  { %7268 = vst [vmem:[#allocation75_spill] sm:$0xff] %v6155_v45  ;;  %v467_v46 = vpop.f32.mrb[10].mxu1  ;;  %v3465_v45 = vmul.f32 -1.442695, %v739_v31  ;;  %5287 = vpow2.f32 %v3466_v47 }
 0x155   :  { %v6157_v3 = vadd.f32 %v467_v46, %v354_v37  ;;  %v469_v0 = vpop.f32.mrb[11].mxu1  ;;  %v7187_v46 = vsub.s32 2, %v6130_v18 }
 0x156   :  { %v6159_v51 = vadd.f32 %v469_v0, %v358_v63  ;;  %5289 = vpow2.f32 %v3465_v45 }
 0x157   :  { %7269 = vst [vmem:[#allocation76_spill] sm:$0xff] %v6157_v3  ;;  %v7290_v3 = vld [vmem:[#allocation32_spill] sm:$0xff] }
 0x158   :  { %7270 = vst [vmem:[#allocation77_spill] sm:$0xff] %v6159_v51  ;;  %v473_v42 = vpop.f32.mrb[12].mxu1  ;;  %v7188_v51 = vsub.s32 3, %v6130_v18 }
 0x159   :  { %v6161_v28 = vadd.f32 %v473_v42, %v354_v37  ;;  %v475_v38 = vpop.f32.mrb[13].mxu1 }
 0x15a   :  { %v6163_v4 = vadd.f32 %v475_v38, %v358_v63  ;;  %v6173_v38 = vrot.slane %v349_v12, %v7187_v46 }
 0x15b   :  { %7271 = vst [vmem:[#allocation78_spill] sm:$0xff] %v6161_v28 }
 0x15c   :  { %7272 = vst [vmem:[#allocation79_spill] sm:$0xff] %v6163_v4  ;;  %v479_v27 = vpop.f32.mrb[14].mxu1 }
 0x15d   :  { %v6165_v54 = vadd.f32 %v479_v27, %v354_v37  ;;  %v481_v9 = vpop.f32.mrb[15].mxu1 }
 0x15e   :  { %v6167_v19 = vadd.f32 %v481_v9, %v358_v63  ;;  %v5288_v0 = vpop.eup %5287  ;;  %v6177_v63 = vrot.slane %v349_v12, %v7188_v51  ;;  %v7289_v51 = vld [vmem:[#allocation31_spill] sm:$0xff] }
 0x15f   :  { %7273 = vst [vmem:[#allocation80_spill] sm:$0xff] %v6165_v54  ;;  %v752_v28 = vadd.f32 1.0, %v5288_v0 }
 0x160   :  { %7274 = vst [vmem:[#allocation81_spill] sm:$0xff] %v6167_v19  ;;  %v5290_v42 = vpop.eup %5289 }
 0x161   :  { %v746_v37 = vadd.f32 1.0, %v5290_v42  ;;  %5291 = vrcp.f32 %v752_v28 }
 0x163   :  { %5293 = vrcp.f32 %v746_v37 }
 0x16b   :  { %v5292_v47 = vpop.eup %5291 }
 0x16c   :  { %v762_v19 = vmul.f32 0.0, %v5292_v47  ;;  %v7282_v47 = vld [vmem:[#allocation23_spill] sm:$0xff] }
 0x16d   :  { %v5294_v0 = vpop.eup %5293 }
 0x180   :  { %v734_v24 = vpop.f32.mrb[16].mxu1 }
 0x181   :  { %v5246_v31 = vadd.f32 %v734_v24, %v6173_v38  ;;  %v736_v45 = vpop.f32.mrb[17].mxu1 }
 0x182   :  { %v5247_v27 = vadd.f32 %v736_v45, %v6177_v63  ;;  %v7279_v45 = vld [vmem:[#allocation20_spill] sm:$0xff] }
 0x183   :  { %5295 = vtanh.f32 %v5246_v31  ;;  %v7278_v31 = vld [vmem:[#allocation19_spill] sm:$0xff] }
 0x184   :  { %v3467_v9 = vmul.f32 -1.442695, %v5247_v27  ;;  %v7280_v27 = vld [vmem:[#allocation21_spill] sm:$0xff] }
 0x186   :  { %5297 = vpow2.f32 %v3467_v9  ;;  %v7281_v9 = vld [vmem:[#allocation22_spill] sm:$0xff] }
 0x18d   :  { %v5296_v46 = vpop.eup %5295 }
 0x18e   :  { %v763_v42 = vmul.f32 %v5296_v46, %v5294_v0  ;;  %v7275_v46 = vmov 0.0   ;;  %v7283_v0 = vld [vmem:[#allocation24_spill] sm:$0xff] }
 0x190   :  { %v5298_v54 = vpop.eup %5297  ;;  %v6181_v4 = vadd.f32 %v763_v42, %v762_v19  ;;  %v7277_v19 = vld [vmem:[#allocation18_spill] sm:$0xff]  ;;  %v7284_v42 = vld [vmem:[#allocation25_spill] sm:$0xff] }
 0x191   :  { %v759_v12 = vadd.f32 1.0, %v5298_v54  ;;  %v7276_v54 = vld [vmem:[#allocation17_spill] sm:$0xff] }
 0x192   :  { %5299 = vtanh.f32 %v6181_v4 }
 0x193   :  { %5301 = vrcp.f32 %v759_v12  ;;  %v7285_v12 = vld [vmem:[#allocation26_spill] sm:$0xff] }
 0x19c   :  { %v5300_v28 = vpop.eup %5299 }
 0x19d   :  { %v5302_v24 = vpop.eup %5301 }
 0x19e   :  { %v766_v37 = vmul.f32 %v5302_v24, %v5300_v28  ;;  %v7286_v28 = vld [vmem:[#allocation27_spill] sm:$0xff]  ;;  %v7287_v24 = vld [vmem:[#allocation28_spill] sm:$0xff] }
 0x1a0   :  { %853 = vmatmul.mubr.f32.vlgmr.msra.gmra.mrb[2].mxu0 %v766_v37  ;;  %924 = vmatmul.mubr.f32.vlgmr.msra.gmra.mrb[32].mxu1 %v766_v37 }
 0x1a1   :  { %3841 = vmatpush1.bf16.msra.mxu0 %v5766_v13  ;;  %3873 = vmatpush1.bf16.msra.mxu1 %v5872_v61 }
 0x1a2   :  { %3843 = vmatprep.subr.bf16.mxu0 %v5770_v22  ;;  %3875 = vmatprep.subr.bf16.mxu1 %v5875_v62 }
 0x1a3   :  { %1019 = vmatprep.mubr.f32.mxu0 %v7275_v46  ;;  %1090 = vmatprep.mubr.f32.mxu1 %v7275_v46 }
 0x1a5   :  { %3845 = vmatpush1.bf16.msra.mxu0 %v5772_v26  ;;  %3877 = vmatpush1.bf16.msra.mxu1 %v5880_v7 }
 0x1a6   :  { %3847 = vmatprep.subr.bf16.mxu0 %v5775_v35  ;;  %3879 = vmatprep.subr.bf16.mxu1 %v5883_v8 }
 0x1a9   :  { %3849 = vmatpush1.bf16.msra.mxu0 %v5778_v39  ;;  %3881 = vmatpush1.bf16.msra.mxu1 %v5888_v48 }
 0x1aa   :  { %3851 = vmatprep.subr.bf16.mxu0 %v5781_v44  ;;  %3883 = vmatprep.subr.bf16.mxu1 %v5891_v17 }
 0x1ad   :  { %3853 = vmatpush1.bf16.msra.mxu0 %v5784_v52  ;;  %3885 = vmatpush1.bf16.msra.mxu1 %v5896_v56 }
 0x1ae   :  { %3855 = vmatprep.subr.bf16.mxu0 %v5787_v57  ;;  %3887 = vmatprep.subr.bf16.mxu1 %v5899_v25 }
 0x1b1   :  { %3857 = vmatpush1.bf16.msra.mxu0 %v5790_v1  ;;  %3889 = vmatpush1.bf16.msra.mxu1 %v5904_v2 }
 0x1b2   :  { %3859 = vmatprep.subr.bf16.mxu0 %v5793_v6  ;;  %3891 = vmatprep.subr.bf16.mxu1 %v5907_v33 }
 0x1b5   :  { %3861 = vmatpush1.bf16.msra.mxu0 %v5796_v15  ;;  %3893 = vmatpush1.bf16.msra.mxu1 %v5912_v11 }
 0x1b6   :  { %3863 = vmatprep.subr.bf16.mxu0 %v5799_v20  ;;  %3895 = vmatprep.subr.bf16.mxu1 %v5915_v43 }
 0x1b9   :  { %3865 = vmatpush1.bf16.msra.mxu0 %v5802_v29  ;;  %3897 = vmatpush1.bf16.msra.mxu1 %v5920_v21 }
 0x1ba   :  { %3867 = vmatprep.subr.bf16.mxu0 %v5805_v34  ;;  %3899 = vmatprep.subr.bf16.mxu1 %v5923_v50 }
 0x1bd   :  { %3869 = vmatpush1.bf16.msra.mxu0 %v5808_v41  ;;  %3901 = vmatpush1.bf16.msra.mxu1 %v5928_v58 }
 0x1be   :  { %3903 = vmatprep.subr.bf16.mxu0 %v5936_v60  ;;  %3967 = vmatprep.subr.bf16.mxu1 %v5938_v5 }
 0x1c0   :  { %1020 = vmatmul.mubr.f32.vlgmr.msra.gmra.mrb[4].mxu0 %v766_v37  ;;  %1091 = vmatmul.mubr.f32.vlgmr.msra.gmra.mrb[18].mxu1 %v766_v37  ;;  %v7288_v37 = vld [vmem:[#allocation29_spill] sm:$0xff] }
 0x1c1   :  { %3905 = vmatpush1.bf16.msra.mxu0 %v5940_v10  ;;  %3969 = vmatpush1.bf16.msra.mxu1 %v5943_v14 }
 0x1c2   :  { %3907 = vmatprep.subr.bf16.mxu0 %v5948_v23  ;;  %3971 = vmatprep.subr.bf16.mxu1 %v5950_v30 }
 0x1c5   :  { %3909 = vmatpush1.bf16.msra.mxu0 %v5952_v32  ;;  %3973 = vmatpush1.bf16.msra.mxu1 %v5955_v40 }
 0x1c6   :  { %3911 = vmatprep.subr.bf16.mxu0 %v5959_v49  ;;  %3975 = vmatprep.subr.bf16.mxu1 %v5961_v53 }
 0x1c9   :  { %3913 = vmatpush1.bf16.msra.mxu0 %v5964_v59  ;;  %3977 = vmatpush1.bf16.msra.mxu1 %v7276_v54 }
 0x1ca   :  { %3915 = vmatprep.subr.bf16.mxu0 %v7277_v19  ;;  %3979 = vmatprep.subr.bf16.mxu1 %v7278_v31  ;;  %v7333_v31 = vsub.s32 3, %v6130_v18 }
 0x1cd   :  { %3917 = vmatpush1.bf16.msra.mxu0 %v7279_v45  ;;  %3981 = vmatpush1.bf16.msra.mxu1 %v7280_v27 }
 0x1ce   :  { %3919 = vmatprep.subr.bf16.mxu0 %v7281_v9  ;;  %3983 = vmatprep.subr.bf16.mxu1 %v7282_v47  ;;  %v7291_v9 = vld [vmem:[#allocation33_spill] sm:$0xff]  ;;  %v7292_v47 = vld [vmem:[#allocation34_spill] sm:$0xff] }
 0x1d1   :  { %3921 = vmatpush1.bf16.msra.mxu0 %v7283_v0  ;;  %3985 = vmatpush1.bf16.msra.mxu1 %v7284_v42  ;;  %v7293_v0 = vld [vmem:[#allocation35_spill] sm:$0xff]  ;;  %v7294_v42 = vld [vmem:[#allocation36_spill] sm:$0xff] }
 0x1d2   :  { %3923 = vmatprep.subr.bf16.mxu0 %v7285_v12  ;;  %3987 = vmatprep.subr.bf16.mxu1 %v7286_v28  ;;  %v7295_v12 = vld [vmem:[#allocation37_spill] sm:$0xff]  ;;  %v7296_v28 = vld [vmem:[#allocation38_spill] sm:$0xff] }
 0x1d5   :  { %3925 = vmatpush1.bf16.msra.mxu0 %v7287_v24  ;;  %3989 = vmatpush1.bf16.msra.mxu1 %v7288_v37  ;;  %v7297_v24 = vld [vmem:[#allocation39_spill] sm:$0xff]  ;;  %v7298_v37 = vld [vmem:[#allocation40_spill] sm:$0xff] }
 0x1d6   :  { %3927 = vmatprep.subr.bf16.mxu0 %v6005_v16  ;;  %3991 = vmatprep.subr.bf16.mxu1 %v7289_v51  ;;  %v7299_v16 = vld [vmem:[#allocation41_spill] sm:$0xff]  ;;  %v7300_v51 = vld [vmem:[#allocation42_spill] sm:$0xff] }
 0x1d9   :  { %3929 = vmatpush1.bf16.msra.mxu0 %v7290_v3  ;;  %3993 = vmatpush1.bf16.msra.mxu1 %v7291_v9  ;;  %v7301_v3 = vld [vmem:[#allocation43_spill] sm:$0xff]  ;;  %v7302_v9 = vld [vmem:[#allocation44_spill] sm:$0xff] }
 0x1da   :  { %3931 = vmatprep.subr.bf16.mxu0 %v7292_v47  ;;  %3995 = vmatprep.subr.bf16.mxu1 %v7293_v0  ;;  %v7303_v47 = vld [vmem:[#allocation45_spill] sm:$0xff]  ;;  %v7304_v0 = vld [vmem:[#allocation46_spill] sm:$0xff] }
 0x1dd   :  { %3933 = vmatpush1.bf16.msra.mxu0 %v7294_v42  ;;  %3997 = vmatpush1.bf16.msra.mxu1 %v7295_v12  ;;  %v7305_v42 = vld [vmem:[#allocation47_spill] sm:$0xff]  ;;  %v7306_v12 = vld [vmem:[#allocation48_spill] sm:$0xff] }
 0x1de   :  { %3935 = vmatprep.subr.bf16.mxu0 %v7296_v28  ;;  %3999 = vmatprep.subr.bf16.mxu1 %v7297_v24  ;;  %v7307_v28 = vld [vmem:[#allocation49_spill] sm:$0xff]  ;;  %v7308_v24 = vld [vmem:[#allocation50_spill] sm:$0xff] }
 0x1e1   :  { %3937 = vmatpush1.bf16.msra.mxu0 %v7298_v37  ;;  %4001 = vmatpush1.bf16.msra.mxu1 %v7299_v16  ;;  %v7309_v37 = vld [vmem:[#allocation51_spill] sm:$0xff]  ;;  %v7310_v16 = vld [vmem:[#allocation52_spill] sm:$0xff] }
 0x1e2   :  { %3939 = vmatprep.subr.bf16.mxu0 %v7300_v51  ;;  %4003 = vmatprep.subr.bf16.mxu1 %v7301_v3  ;;  %v7311_v51 = vld [vmem:[#allocation53_spill] sm:$0xff]  ;;  %v7312_v3 = vld [vmem:[#allocation54_spill] sm:$0xff] }
 0x1e5   :  { %3941 = vmatpush1.bf16.msra.mxu0 %v7302_v9  ;;  %4005 = vmatpush1.bf16.msra.mxu1 %v7303_v47  ;;  %v7313_v9 = vld [vmem:[#allocation55_spill] sm:$0xff]  ;;  %v7314_v47 = vld [vmem:[#allocation56_spill] sm:$0xff] }
 0x1e6   :  { %3943 = vmatprep.subr.bf16.mxu0 %v7304_v0  ;;  %4007 = vmatprep.subr.bf16.mxu1 %v7305_v42  ;;  %v7315_v0 = vld [vmem:[#allocation57_spill] sm:$0xff]  ;;  %v7316_v42 = vld [vmem:[#allocation58_spill] sm:$0xff] }
 0x1e9   :  { %3945 = vmatpush1.bf16.msra.mxu0 %v7306_v12  ;;  %4009 = vmatpush1.bf16.msra.mxu1 %v7307_v28  ;;  %v7317_v12 = vld [vmem:[#allocation59_spill] sm:$0xff]  ;;  %v7318_v28 = vld [vmem:[#allocation60_spill] sm:$0xff] }
 0x1ea   :  { %3947 = vmatprep.subr.bf16.mxu0 %v7308_v24  ;;  %4011 = vmatprep.subr.bf16.mxu1 %v7309_v37  ;;  %v7319_v24 = vld [vmem:[#allocation61_spill] sm:$0xff]  ;;  %v7320_v37 = vld [vmem:[#allocation62_spill] sm:$0xff] }
 0x1ed   :  { %3949 = vmatpush1.bf16.msra.mxu0 %v7310_v16  ;;  %4013 = vmatpush1.bf16.msra.mxu1 %v7311_v51  ;;  %v7321_v16 = vld [vmem:[#allocation63_spill] sm:$0xff]  ;;  %v7322_v51 = vld [vmem:[#allocation64_spill] sm:$0xff] }
 0x1ee   :  { %3951 = vmatprep.subr.bf16.mxu0 %v7312_v3  ;;  %4015 = vmatprep.subr.bf16.mxu1 %v7313_v9  ;;  %v7323_v3 = vld [vmem:[#allocation65_spill] sm:$0xff]  ;;  %v7324_v9 = vld [vmem:[#allocation66_spill] sm:$0xff] }
 0x1f1   :  { %3953 = vmatpush1.bf16.msra.mxu0 %v7314_v47  ;;  %4017 = vmatpush1.bf16.msra.mxu1 %v7315_v0  ;;  %v7325_v47 = vld [vmem:[#allocation67_spill] sm:$0xff]  ;;  %v7326_v0 = vld [vmem:[#allocation68_spill] sm:$0xff] }
 0x1f2   :  { %3955 = vmatprep.subr.bf16.mxu0 %v7316_v42  ;;  %4019 = vmatprep.subr.bf16.mxu1 %v7317_v12  ;;  %v7327_v42 = vld [vmem:[#allocation69_spill] sm:$0xff] }
 0x1f3   :  { %v7328_v12 = vld [vmem:[#allocation13_spill] sm:$0xff] }
 0x1f5   :  { %3957 = vmatpush1.bf16.msra.mxu0 %v7318_v28  ;;  %4021 = vmatpush1.bf16.msra.mxu1 %v7319_v24  ;;  %v7329_v28 = vld [vmem:[#allocation14_spill] sm:$0xff] }
 0x1f6   :  { %3959 = vmatprep.subr.bf16.mxu0 %v7320_v37  ;;  %4023 = vmatprep.subr.bf16.mxu1 %v7321_v16  ;;  %v276_v16 = vld [vmem:[%s7071_s5] sm:$0xf] }
 0x1f7   :  { %v6297_v19 = vrot.slane %v276_v16, %v7333_v31 }
 0x1f9   :  { %3961 = vmatpush1.bf16.msra.mxu0 %v7322_v51  ;;  %4025 = vmatpush1.bf16.msra.mxu1 %v7323_v3  ;;  %v7330_v51 = vsub.s32 0, %v6130_v18  ;;  %7334 = vst [vmem:[#allocation83_spill] sm:$0xff] %v6297_v19 }
 0x1fa   :  { %3963 = vmatprep.subr.bf16.mxu0 %v7324_v9  ;;  %4027 = vmatprep.subr.bf16.mxu1 %v7325_v47  ;;  %v7332_v9 = vsub.s32 1, %v6130_v18 }
 0x1fb   :  { %v6287_v37 = vrot.slane %v276_v16, %v7330_v51 }
 0x1fc   :  { %v6291_v3 = vrot.slane %v276_v16, %v7332_v9  ;;  %v7335_v9 = vsub.s32 2, %v6130_v18 }
 0x1fd   :  { %3965 = vmatpush1.bf16.msra.mxu0 %v7326_v0  ;;  %4029 = vmatpush1.bf16.msra.mxu1 %v7327_v42  ;;  %7331 = vst [vmem:[#allocation82_spill] sm:$0xff] %v6287_v37 }
 0x1fe   :  { %4031 = vmatprep.subr.bf16.mxu0 %v7328_v12  ;;  %4063 = vmatprep.subr.bf16.mxu1 %v7329_v28  ;;  %v6302_v54 = vrot.slane %v276_v16, %v7335_v9 }
 0x200   :  { %7336 = vst [vmem:[#allocation84_spill] sm:$0xff] %v6302_v54 }
 0x273   :  { %v854_v47 = vpop.f32.mrb[2].mxu0  ;;  %v925_v0 = vpop.f32.mrb[32].mxu1 }
 0x274   :  { %v855_v42 = vadd.f32 %v854_v47, %v6287_v37  ;;  %v856_v24 = vpop.f32.mrb[3].mxu0  ;;  %v927_v12 = vpop.f32.mrb[33].mxu1  ;;  %v926_v47 = vadd.f32 %v925_v0, %v6302_v54 }
 0x275   :  { %v857_v28 = vadd.f32 %v856_v24, %v6291_v3  ;;  %v928_v51 = vadd.f32 %v927_v12, %v6297_v19 }
 0x276   :  { %v3468_v27 = vmul.f32 -1.442695, %v855_v42 }
 0x277   :  { %v3469_v45 = vmul.f32 -1.442695, %v857_v28  ;;  %v3470_v59 = vmul.f32 -1.442695, %v928_v51 }
 0x278   :  { %5303 = vpow2.f32 %v3468_v27 }
 0x279   :  { %5305 = vpow2.f32 %v3469_v45 }
 0x27a   :  { %5307 = vpow2.f32 %v3470_v59 }
 0x27b   :  { %5309 = vtanh.f32 %v926_v47 }
 0x282   :  { %v5304_v37 = vpop.eup %5303 }
 0x283   :  { %v5306_v53 = vpop.eup %5305  ;;  %v933_v24 = vadd.f32 1.0, %v5304_v37 }
 0x284   :  { %v939_v42 = vadd.f32 1.0, %v5306_v53  ;;  %v5308_v31 = vpop.eup %5307 }
 0x285   :  { %5311 = vrcp.f32 %v933_v24  ;;  %v5310_v27 = vpop.eup %5309  ;;  %v946_v19 = vadd.f32 1.0, %v5308_v31 }
 0x286   :  { %5313 = vrcp.f32 %v939_v42 }
 0x287   :  { %5315 = vrcp.f32 %v946_v19 }
 0x28f   :  { %v5312_v45 = vpop.eup %5311 }
 0x290   :  { %v5314_v28 = vpop.eup %5313  ;;  %v950_v12 = vmul.f32 %v5312_v45, %v5310_v27 }
 0x291   :  { %v949_v18 = vmul.f32 0.0, %v5314_v28  ;;  %v5316_v31 = vpop.eup %5315 }
 0x293   :  { %v6305_v16 = vadd.f32 %v950_v12, %v949_v18  ;;  %v1021_v51 = vpop.f32.mrb[4].mxu0  ;;  %v1092_v9 = vpop.f32.mrb[18].mxu1 }
 0x294   :  { %v1097_v0 = vadd.f32 %v1021_v51, %v6141_v55  ;;  %v1023_v37 = vpop.f32.mrb[5].mxu0  ;;  %v1094_v59 = vpop.f32.mrb[19].mxu1  ;;  %v5248_v28 = vadd.f32 %v1092_v9, %v6173_v38 }
 0x295   :  { %5317 = vtanh.f32 %v6305_v16  ;;  %v1098_v53 = vadd.f32 %v1023_v37, %v6143_v36  ;;  %v5249_v42 = vadd.f32 %v1094_v59, %v6177_v63 }
 0x296   :  { %v3471_v47 = vmul.f32 -1.442695, %v1097_v0 }
 0x297   :  { %v3472_v24 = vmul.f32 -1.442695, %v1098_v53  ;;  %v3473_v45 = vmul.f32 -1.442695, %v5249_v42 }
 0x298   :  { %5319 = vpow2.f32 %v3471_v47 }
 0x299   :  { %5321 = vpow2.f32 %v3472_v24 }
 0x29a   :  { %5323 = vpow2.f32 %v3473_v45  ;;  %v7339_v45 = vld [vmem:[#allocation16_spill] sm:$0xff] }
 0x29b   :  { %5325 = vtanh.f32 %v5248_v28  ;;  %v7340_v28 = vld [vmem:[#allocation17_spill] sm:$0xff] }
 0x29f   :  { %v5318_v27 = vpop.eup %5317 }
 0x2a0   :  { %v6312_v19 = vmul.f32 %v5318_v27, %v5316_v31 }
 0x2a2   :  { %7337 = vst [vmem:[#allocation85_spill] sm:$0xff] %v6312_v19  ;;  %v5320_v55 = vpop.eup %5319  ;;  %1189 = vmatprep.mubr.f32.mxu0 %v6312_v19  ;;  %1260 = vmatprep.mubr.f32.mxu1 %v6312_v19  ;;  %v7355_v19 = vld [vmem:[#allocation32_spill] sm:$0xff] }
 0x2a3   :  { %v5322_v12 = vpop.eup %5321  ;;  %v1104_v36 = vadd.f32 1.0, %v5320_v55  ;;  %v7341_v55 = vld [vmem:[#allocation18_spill] sm:$0xff] }
 0x2a4   :  { %v1110_v18 = vadd.f32 1.0, %v5322_v12  ;;  %v5324_v51 = vpop.eup %5323  ;;  %v7342_v12 = vld [vmem:[#allocation19_spill] sm:$0xff] }
 0x2a5   :  { %5327 = vrcp.f32 %v1104_v36  ;;  %v5326_v0 = vpop.eup %5325  ;;  %v1117_v9 = vadd.f32 1.0, %v5324_v51  ;;  %v7343_v36 = vld [vmem:[#allocation20_spill] sm:$0xff]  ;;  %v7345_v51 = vld [vmem:[#allocation22_spill] sm:$0xff] }
 0x2a6   :  { %5329 = vrcp.f32 %v1110_v18  ;;  %v7344_v18 = vld [vmem:[#allocation21_spill] sm:$0xff] }
 0x2a7   :  { %5331 = vrcp.f32 %v1117_v9  ;;  %v7350_v9 = vld [vmem:[#allocation27_spill] sm:$0xff] }
 0x2af   :  { %v5328_v37 = vpop.eup %5327 }
 0x2b0   :  { %v5330_v59 = vpop.eup %5329  ;;  %v1121_v53 = vmul.f32 %v5328_v37, %v5326_v0  ;;  %v7346_v0 = vld [vmem:[#allocation23_spill] sm:$0xff]  ;;  %v7347_v37 = vld [vmem:[#allocation24_spill] sm:$0xff] }
 0x2b1   :  { %v1120_v47 = vmul.f32 %v5330_v59, %v6181_v4  ;;  %v5332_v42 = vpop.eup %5331  ;;  %v7338_v4 = vld [vmem:[#allocation15_spill] sm:$0xff]  ;;  %v7348_v59 = vld [vmem:[#allocation25_spill] sm:$0xff] }
 0x2b3   :  { %v6317_v24 = vadd.f32 %v1121_v53, %v1120_v47  ;;  %v7349_v53 = vld [vmem:[#allocation26_spill] sm:$0xff]  ;;  %v7351_v47 = vld [vmem:[#allocation28_spill] sm:$0xff] }
 0x2b5   :  { %5333 = vtanh.f32 %v6317_v24 }
 0x2bf   :  { %v5334_v31 = vpop.eup %5333 }
 0x2c0   :  { %v1124_v27 = vmul.f32 %v5334_v31, %v5332_v42  ;;  %v7352_v42 = vld [vmem:[#allocation29_spill] sm:$0xff]  ;;  %v7353_v31 = vld [vmem:[#allocation30_spill] sm:$0xff] }
 0x2c2   :  { %1190 = vmatmul.mubr.f32.vlgmr.msra.gmra.mrb[6].mxu0 %v1124_v27  ;;  %1261 = vmatmul.mubr.f32.vlgmr.msra.gmra.mrb[34].mxu1 %v1124_v27 }
 0x2c3   :  { %4033 = vmatpush1.bf16.msra.mxu0 %v5766_v13  ;;  %4065 = vmatpush1.bf16.msra.mxu1 %v5872_v61 }
 0x2c4   :  { %4035 = vmatprep.subr.bf16.mxu0 %v5770_v22  ;;  %4067 = vmatprep.subr.bf16.mxu1 %v5875_v62 }
 0x2c5   :  { %1356 = vmatprep.mubr.f32.mxu0 %v7275_v46  ;;  %1427 = vmatprep.mubr.f32.mxu1 %v7275_v46 }
 0x2c7   :  { %4037 = vmatpush1.bf16.msra.mxu0 %v5772_v26  ;;  %4069 = vmatpush1.bf16.msra.mxu1 %v5880_v7 }
 0x2c8   :  { %4039 = vmatprep.subr.bf16.mxu0 %v5775_v35  ;;  %4071 = vmatprep.subr.bf16.mxu1 %v5883_v8 }
 0x2cb   :  { %4041 = vmatpush1.bf16.msra.mxu0 %v5778_v39  ;;  %4073 = vmatpush1.bf16.msra.mxu1 %v5888_v48 }
 0x2cc   :  { %4043 = vmatprep.subr.bf16.mxu0 %v5781_v44  ;;  %4075 = vmatprep.subr.bf16.mxu1 %v5891_v17 }
 0x2cf   :  { %4045 = vmatpush1.bf16.msra.mxu0 %v5784_v52  ;;  %4077 = vmatpush1.bf16.msra.mxu1 %v5896_v56 }
 0x2d0   :  { %4047 = vmatprep.subr.bf16.mxu0 %v5787_v57  ;;  %4079 = vmatprep.subr.bf16.mxu1 %v5899_v25 }
 0x2d3   :  { %4049 = vmatpush1.bf16.msra.mxu0 %v5790_v1  ;;  %4081 = vmatpush1.bf16.msra.mxu1 %v5904_v2 }
 0x2d4   :  { %4051 = vmatprep.subr.bf16.mxu0 %v5793_v6  ;;  %4083 = vmatprep.subr.bf16.mxu1 %v5907_v33 }
 0x2d7   :  { %4053 = vmatpush1.bf16.msra.mxu0 %v5796_v15  ;;  %4085 = vmatpush1.bf16.msra.mxu1 %v5912_v11 }
 0x2d8   :  { %4055 = vmatprep.subr.bf16.mxu0 %v5799_v20  ;;  %4087 = vmatprep.subr.bf16.mxu1 %v5915_v43 }
 0x2db   :  { %4057 = vmatpush1.bf16.msra.mxu0 %v5802_v29  ;;  %4089 = vmatpush1.bf16.msra.mxu1 %v5920_v21 }
 0x2dc   :  { %4059 = vmatprep.subr.bf16.mxu0 %v5805_v34  ;;  %4091 = vmatprep.subr.bf16.mxu1 %v5923_v50 }
 0x2df   :  { %4061 = vmatpush1.bf16.msra.mxu0 %v5808_v41  ;;  %4093 = vmatpush1.bf16.msra.mxu1 %v5928_v58 }
 0x2e0   :  { %4095 = vmatprep.subr.bf16.mxu0 %v5936_v60  ;;  %4159 = vmatprep.subr.bf16.mxu1 %v5938_v5 }
 0x2e2   :  { %1357 = vmatmul.mubr.f32.vlgmr.msra.gmra.mrb[8].mxu0 %v1124_v27  ;;  %1428 = vmatmul.mubr.f32.vlgmr.msra.gmra.mrb[20].mxu1 %v1124_v27  ;;  %v7354_v27 = vld [vmem:[#allocation31_spill] sm:$0xff] }
 0x2e3   :  { %4097 = vmatpush1.bf16.msra.mxu0 %v5940_v10  ;;  %4161 = vmatpush1.bf16.msra.mxu1 %v5943_v14 }
 0x2e4   :  { %4099 = vmatprep.subr.bf16.mxu0 %v5948_v23  ;;  %4163 = vmatprep.subr.bf16.mxu1 %v5950_v30 }
 0x2e7   :  { %4101 = vmatpush1.bf16.msra.mxu0 %v5952_v32  ;;  %4165 = vmatpush1.bf16.msra.mxu1 %v5955_v40 }
 0x2e8   :  { %4103 = vmatprep.subr.bf16.mxu0 %v5959_v49  ;;  %4167 = vmatprep.subr.bf16.mxu1 %v7338_v4 }
 0x2eb   :  { %4105 = vmatpush1.bf16.msra.mxu0 %v7339_v45  ;;  %4169 = vmatpush1.bf16.msra.mxu1 %v7340_v28 }
 0x2ec   :  { %4107 = vmatprep.subr.bf16.mxu0 %v7341_v55  ;;  %4171 = vmatprep.subr.bf16.mxu1 %v7342_v12 }
 0x2ef   :  { %4109 = vmatpush1.bf16.msra.mxu0 %v7343_v36  ;;  %4173 = vmatpush1.bf16.msra.mxu1 %v7344_v18  ;;  %v7395_v18 = vld [vmem:[#allocation82_spill] sm:$0xff] }
 0x2f0   :  { %4111 = vmatprep.subr.bf16.mxu0 %v7345_v51  ;;  %4175 = vmatprep.subr.bf16.mxu1 %v7346_v0  ;;  %v7356_v51 = vld [vmem:[#allocation33_spill] sm:$0xff]  ;;  %v7357_v0 = vld [vmem:[#allocation34_spill] sm:$0xff] }
 0x2f3   :  { %4113 = vmatpush1.bf16.msra.mxu0 %v7347_v37  ;;  %4177 = vmatpush1.bf16.msra.mxu1 %v7348_v59  ;;  %v7358_v37 = vld [vmem:[#allocation35_spill] sm:$0xff]  ;;  %v7359_v59 = vld [vmem:[#allocation36_spill] sm:$0xff] }
 0x2f4   :  { %4115 = vmatprep.subr.bf16.mxu0 %v7349_v53  ;;  %4179 = vmatprep.subr.bf16.mxu1 %v7350_v9  ;;  %v7360_v53 = vld [vmem:[#allocation37_spill] sm:$0xff]  ;;  %v7361_v9 = vld [vmem:[#allocation38_spill] sm:$0xff] }
 0x2f7   :  { %4117 = vmatpush1.bf16.msra.mxu0 %v7351_v47  ;;  %4181 = vmatpush1.bf16.msra.mxu1 %v7352_v42  ;;  %v7362_v47 = vld [vmem:[#allocation39_spill] sm:$0xff]  ;;  %v7363_v42 = vld [vmem:[#allocation40_spill] sm:$0xff] }
 0x2f8   :  { %4119 = vmatprep.subr.bf16.mxu0 %v7353_v31  ;;  %4183 = vmatprep.subr.bf16.mxu1 %v7354_v27  ;;  %v7364_v31 = vld [vmem:[#allocation41_spill] sm:$0xff]  ;;  %v7365_v27 = vld [vmem:[#allocation42_spill] sm:$0xff] }
 0x2fb   :  { %4121 = vmatpush1.bf16.msra.mxu0 %v7355_v19  ;;  %4185 = vmatpush1.bf16.msra.mxu1 %v7356_v51  ;;  %v7366_v19 = vld [vmem:[#allocation43_spill] sm:$0xff]  ;;  %v7367_v51 = vld [vmem:[#allocation44_spill] sm:$0xff] }
 0x2fc   :  { %4123 = vmatprep.subr.bf16.mxu0 %v7357_v0  ;;  %4187 = vmatprep.subr.bf16.mxu1 %v7358_v37  ;;  %v7368_v0 = vld [vmem:[#allocation45_spill] sm:$0xff]  ;;  %v7369_v37 = vld [vmem:[#allocation46_spill] sm:$0xff] }
 0x2ff   :  { %4125 = vmatpush1.bf16.msra.mxu0 %v7359_v59  ;;  %4189 = vmatpush1.bf16.msra.mxu1 %v7360_v53  ;;  %v7370_v59 = vld [vmem:[#allocation47_spill] sm:$0xff]  ;;  %v7371_v53 = vld [vmem:[#allocation48_spill] sm:$0xff] }
 0x300   :  { %4127 = vmatprep.subr.bf16.mxu0 %v7361_v9  ;;  %4191 = vmatprep.subr.bf16.mxu1 %v7362_v47  ;;  %v7372_v9 = vld [vmem:[#allocation49_spill] sm:$0xff]  ;;  %v7373_v47 = vld [vmem:[#allocation50_spill] sm:$0xff] }
 0x303   :  { %4129 = vmatpush1.bf16.msra.mxu0 %v7363_v42  ;;  %4193 = vmatpush1.bf16.msra.mxu1 %v7364_v31  ;;  %v7374_v42 = vld [vmem:[#allocation51_spill] sm:$0xff]  ;;  %v7375_v31 = vld [vmem:[#allocation52_spill] sm:$0xff] }
 0x304   :  { %4131 = vmatprep.subr.bf16.mxu0 %v7365_v27  ;;  %4195 = vmatprep.subr.bf16.mxu1 %v7366_v19  ;;  %v7376_v27 = vld [vmem:[#allocation53_spill] sm:$0xff]  ;;  %v7377_v19 = vld [vmem:[#allocation54_spill] sm:$0xff] }
 0x307   :  { %4133 = vmatpush1.bf16.msra.mxu0 %v7367_v51  ;;  %4197 = vmatpush1.bf16.msra.mxu1 %v7368_v0  ;;  %v7378_v51 = vld [vmem:[#allocation55_spill] sm:$0xff]  ;;  %v7379_v0 = vld [vmem:[#allocation56_spill] sm:$0xff] }
 0x308   :  { %4135 = vmatprep.subr.bf16.mxu0 %v7369_v37  ;;  %4199 = vmatprep.subr.bf16.mxu1 %v7370_v59  ;;  %v7380_v37 = vld [vmem:[#allocation57_spill] sm:$0xff]  ;;  %v7381_v59 = vld [vmem:[#allocation58_spill] sm:$0xff] }
 0x30b   :  { %4137 = vmatpush1.bf16.msra.mxu0 %v7371_v53  ;;  %4201 = vmatpush1.bf16.msra.mxu1 %v7372_v9  ;;  %v7382_v53 = vld [vmem:[#allocation59_spill] sm:$0xff]  ;;  %v7383_v9 = vld [vmem:[#allocation60_spill] sm:$0xff] }
 0x30c   :  { %4139 = vmatprep.subr.bf16.mxu0 %v7373_v47  ;;  %4203 = vmatprep.subr.bf16.mxu1 %v7374_v42  ;;  %v7384_v47 = vld [vmem:[#allocation61_spill] sm:$0xff]  ;;  %v7385_v42 = vld [vmem:[#allocation62_spill] sm:$0xff] }
 0x30f   :  { %4141 = vmatpush1.bf16.msra.mxu0 %v7375_v31  ;;  %4205 = vmatpush1.bf16.msra.mxu1 %v7376_v27  ;;  %v7386_v31 = vld [vmem:[#allocation63_spill] sm:$0xff]  ;;  %v7387_v27 = vld [vmem:[#allocation64_spill] sm:$0xff] }
 0x310   :  { %4143 = vmatprep.subr.bf16.mxu0 %v7377_v19  ;;  %4207 = vmatprep.subr.bf16.mxu1 %v7378_v51  ;;  %v7388_v19 = vld [vmem:[#allocation65_spill] sm:$0xff]  ;;  %v7389_v51 = vld [vmem:[#allocation66_spill] sm:$0xff] }
 0x313   :  { %4145 = vmatpush1.bf16.msra.mxu0 %v7379_v0  ;;  %4209 = vmatpush1.bf16.msra.mxu1 %v7380_v37  ;;  %v7390_v0 = vld [vmem:[#allocation67_spill] sm:$0xff]  ;;  %v7391_v37 = vld [vmem:[#allocation68_spill] sm:$0xff] }
 0x314   :  { %4147 = vmatprep.subr.bf16.mxu0 %v7381_v59  ;;  %4211 = vmatprep.subr.bf16.mxu1 %v7382_v53  ;;  %v7392_v59 = vld [vmem:[#allocation69_spill] sm:$0xff] }
 0x315   :  { %v7393_v53 = vld [vmem:[#allocation13_spill] sm:$0xff] }
 0x317   :  { %4149 = vmatpush1.bf16.msra.mxu0 %v7383_v9  ;;  %4213 = vmatpush1.bf16.msra.mxu1 %v7384_v47  ;;  %v7394_v9 = vld [vmem:[#allocation14_spill] sm:$0xff] }
 0x318   :  { %4151 = vmatprep.subr.bf16.mxu0 %v7385_v42  ;;  %4215 = vmatprep.subr.bf16.mxu1 %v7386_v31 }
 0x31b   :  { %4153 = vmatpush1.bf16.msra.mxu0 %v7387_v27  ;;  %4217 = vmatpush1.bf16.msra.mxu1 %v7388_v19 }
 0x31c   :  { %4155 = vmatprep.subr.bf16.mxu0 %v7389_v51  ;;  %4219 = vmatprep.subr.bf16.mxu1 %v7390_v0  ;;  %v7396_v0 = vld [vmem:[#allocation83_spill] sm:$0xff] }
 0x31f   :  { %4157 = vmatpush1.bf16.msra.mxu0 %v7391_v37  ;;  %4221 = vmatpush1.bf16.msra.mxu1 %v7392_v59 }
 0x320   :  { %4223 = vmatprep.subr.bf16.mxu0 %v7393_v53  ;;  %4255 = vmatprep.subr.bf16.mxu1 %v7394_v9 }
 0x395   :  { %v1191_v47 = vpop.f32.mrb[6].mxu0  ;;  %v1262_v42 = vpop.f32.mrb[34].mxu1 }
 0x396   :  { %v1192_v31 = vadd.f32 %v1191_v47, %v7395_v18  ;;  %v1193_v36 = vpop.f32.mrb[7].mxu0  ;;  %v1264_v27 = vpop.f32.mrb[35].mxu1  ;;  %v1263_v59 = vadd.f32 %v1262_v42, %v6302_v54  ;;  %v7397_v42 = vld [vmem:[#allocation70_spill] sm:$0xff] }
 0x397   :  { %v1194_v19 = vadd.f32 %v1193_v36, %v6291_v3  ;;  %v1265_v37 = vadd.f32 %v1264_v27, %v7396_v0 }
 0x398   :  { %v3474_v12 = vmul.f32 -1.442695, %v1192_v31 }
 0x399   :  { %v3475_v51 = vmul.f32 -1.442695, %v1194_v19  ;;  %v3476_v55 = vmul.f32 -1.442695, %v1265_v37 }
 0x39a   :  { %5335 = vpow2.f32 %v3474_v12 }
 0x39b   :  { %5337 = vpow2.f32 %v3475_v51 }
 0x39c   :  { %5339 = vpow2.f32 %v3476_v55 }
 0x39d   :  { %5341 = vtanh.f32 %v1263_v59 }
 0x3a4   :  { %v5336_v53 = vpop.eup %5335 }
 0x3a5   :  { %v5338_v28 = vpop.eup %5337  ;;  %v1270_v9 = vadd.f32 1.0, %v5336_v53 }
 0x3a6   :  { %v1276_v45 = vadd.f32 1.0, %v5338_v28  ;;  %v5340_v47 = vpop.eup %5339  ;;  %v7398_v28 = vld [vmem:[#allocation71_spill] sm:$0xff] }
 0x3a7   :  { %5343 = vrcp.f32 %v1270_v9  ;;  %v5342_v18 = vpop.eup %5341  ;;  %v1283_v12 = vadd.f32 1.0, %v5340_v47 }
 0x3a8   :  { %5345 = vrcp.f32 %v1276_v45 }
 0x3a9   :  { %5347 = vrcp.f32 %v1283_v12 }
 0x3b1   :  { %v5344_v36 = vpop.eup %5343 }
 0x3b2   :  { %v5346_v31 = vpop.eup %5345  ;;  %v1287_v19 = vmul.f32 %v5344_v36, %v5342_v18 }
 0x3b3   :  { %v1286_v51 = vmul.f32 %v5346_v31, %v6305_v16  ;;  %v5348_v16 = vpop.eup %5347 }
 0x3b5   :  { %v1358_v27 = vpop.f32.mrb[8].mxu0  ;;  %v1429_v37 = vpop.f32.mrb[20].mxu1  ;;  %v6423_v0 = vadd.f32 %v1287_v19, %v1286_v51 }
 0x3b6   :  { %v1434_v53 = vadd.f32 %v1358_v27, %v7397_v42  ;;  %v1360_v55 = vpop.f32.mrb[9].mxu0  ;;  %v1431_v59 = vpop.f32.mrb[21].mxu1  ;;  %v5250_v31 = vadd.f32 %v1429_v37, %v6173_v38 }
 0x3b7   :  { %v1435_v9 = vadd.f32 %v1360_v55, %v7398_v28  ;;  %5349 = vtanh.f32 %v6423_v0  ;;  %v5251_v18 = vadd.f32 %v1431_v59, %v6177_v63 }
 0x3b8   :  { %v3477_v45 = vmul.f32 -1.442695, %v1434_v53 }
 0x3b9   :  { %v3478_v54 = vmul.f32 -1.442695, %v1435_v9  ;;  %v3479_v36 = vmul.f32 -1.442695, %v5251_v18 }
 0x3ba   :  { %5351 = vpow2.f32 %v3477_v45 }
 0x3bb   :  { %5353 = vpow2.f32 %v3478_v54 }
 0x3bc   :  { %5355 = vpow2.f32 %v3479_v36  ;;  %v7401_v36 = vld [vmem:[#allocation17_spill] sm:$0xff] }
 0x3bd   :  { %5357 = vtanh.f32 %v5250_v31  ;;  %v7402_v31 = vld [vmem:[#allocation18_spill] sm:$0xff] }
 0x3c1   :  { %v5350_v47 = vpop.eup %5349 }
 0x3c2   :  { %v6430_v19 = vmul.f32 %v5350_v47, %v5348_v16 }
 0x3c4   :  { %7399 = vst [vmem:[#allocation15_spill] sm:$0xff] %v6430_v19  ;;  %v5352_v12 = vpop.eup %5351  ;;  %1526 = vmatprep.mubr.f32.mxu0 %v6430_v19  ;;  %1597 = vmatprep.mubr.f32.mxu1 %v6430_v19  ;;  %v7417_v19 = vld [vmem:[#allocation33_spill] sm:$0xff] }
 0x3c5   :  { %v5354_v51 = vpop.eup %5353  ;;  %v1441_v27 = vadd.f32 1.0, %v5352_v12  ;;  %v7403_v12 = vld [vmem:[#allocation19_spill] sm:$0xff] }
 0x3c6   :  { %v1447_v42 = vadd.f32 1.0, %v5354_v51  ;;  %v5356_v54 = vpop.eup %5355  ;;  %v7404_v51 = vld [vmem:[#allocation20_spill] sm:$0xff] }
 0x3c7   :  { %5359 = vrcp.f32 %v1441_v27  ;;  %v5358_v53 = vpop.eup %5357  ;;  %v1454_v37 = vadd.f32 1.0, %v5356_v54  ;;  %v7405_v27 = vld [vmem:[#allocation21_spill] sm:$0xff]  ;;  %v7407_v54 = vld [vmem:[#allocation23_spill] sm:$0xff] }
 0x3c8   :  { %5361 = vrcp.f32 %v1447_v42  ;;  %v7406_v42 = vld [vmem:[#allocation22_spill] sm:$0xff] }
 0x3c9   :  { %5363 = vrcp.f32 %v1454_v37  ;;  %v7412_v37 = vld [vmem:[#allocation28_spill] sm:$0xff] }
 0x3d1   :  { %v5360_v55 = vpop.eup %5359 }
 0x3d2   :  { %v5362_v59 = vpop.eup %5361  ;;  %v1458_v28 = vmul.f32 %v5360_v55, %v5358_v53  ;;  %v7408_v53 = vld [vmem:[#allocation24_spill] sm:$0xff]  ;;  %v7409_v55 = vld [vmem:[#allocation25_spill] sm:$0xff] }
 0x3d3   :  { %v1457_v9 = vmul.f32 %v5362_v59, %v6317_v24  ;;  %v5364_v18 = vpop.eup %5363  ;;  %v7400_v24 = vld [vmem:[#allocation16_spill] sm:$0xff]  ;;  %v7410_v59 = vld [vmem:[#allocation26_spill] sm:$0xff] }
 0x3d5   :  { %v6435_v45 = vadd.f32 %v1458_v28, %v1457_v9  ;;  %v7411_v28 = vld [vmem:[#allocation27_spill] sm:$0xff]  ;;  %v7413_v9 = vld [vmem:[#allocation29_spill] sm:$0xff] }
 0x3d7   :  { %5365 = vtanh.f32 %v6435_v45 }
 0x3e1   :  { %v5366_v16 = vpop.eup %5365 }
 0x3e2   :  { %v1461_v47 = vmul.f32 %v5366_v16, %v5364_v18  ;;  %v7414_v18 = vld [vmem:[#allocation30_spill] sm:$0xff]  ;;  %v7415_v16 = vld [vmem:[#allocation31_spill] sm:$0xff] }
 0x3e4   :  { %1527 = vmatmul.mubr.f32.vlgmr.msra.gmra.mrb[10].mxu0 %v1461_v47  ;;  %1598 = vmatmul.mubr.f32.vlgmr.msra.gmra.mrb[36].mxu1 %v1461_v47 }
 0x3e5   :  { %4225 = vmatpush1.bf16.msra.mxu0 %v5766_v13  ;;  %4257 = vmatpush1.bf16.msra.mxu1 %v5872_v61 }
 0x3e6   :  { %4227 = vmatprep.subr.bf16.mxu0 %v5770_v22  ;;  %4259 = vmatprep.subr.bf16.mxu1 %v5875_v62 }
 0x3e7   :  { %1693 = vmatprep.mubr.f32.mxu0 %v7275_v46  ;;  %1764 = vmatprep.mubr.f32.mxu1 %v7275_v46 }
 0x3e9   :  { %4229 = vmatpush1.bf16.msra.mxu0 %v5772_v26  ;;  %4261 = vmatpush1.bf16.msra.mxu1 %v5880_v7 }
 0x3ea   :  { %4231 = vmatprep.subr.bf16.mxu0 %v5775_v35  ;;  %4263 = vmatprep.subr.bf16.mxu1 %v5883_v8 }
 0x3ed   :  { %4233 = vmatpush1.bf16.msra.mxu0 %v5778_v39  ;;  %4265 = vmatpush1.bf16.msra.mxu1 %v5888_v48 }
 0x3ee   :  { %4235 = vmatprep.subr.bf16.mxu0 %v5781_v44  ;;  %4267 = vmatprep.subr.bf16.mxu1 %v5891_v17 }
 0x3f1   :  { %4237 = vmatpush1.bf16.msra.mxu0 %v5784_v52  ;;  %4269 = vmatpush1.bf16.msra.mxu1 %v5896_v56 }
 0x3f2   :  { %4239 = vmatprep.subr.bf16.mxu0 %v5787_v57  ;;  %4271 = vmatprep.subr.bf16.mxu1 %v5899_v25 }
 0x3f5   :  { %4241 = vmatpush1.bf16.msra.mxu0 %v5790_v1  ;;  %4273 = vmatpush1.bf16.msra.mxu1 %v5904_v2 }
 0x3f6   :  { %4243 = vmatprep.subr.bf16.mxu0 %v5793_v6  ;;  %4275 = vmatprep.subr.bf16.mxu1 %v5907_v33 }
 0x3f9   :  { %4245 = vmatpush1.bf16.msra.mxu0 %v5796_v15  ;;  %4277 = vmatpush1.bf16.msra.mxu1 %v5912_v11 }
 0x3fa   :  { %4247 = vmatprep.subr.bf16.mxu0 %v5799_v20  ;;  %4279 = vmatprep.subr.bf16.mxu1 %v5915_v43 }
 0x3fd   :  { %4249 = vmatpush1.bf16.msra.mxu0 %v5802_v29  ;;  %4281 = vmatpush1.bf16.msra.mxu1 %v5920_v21 }
 0x3fe   :  { %4251 = vmatprep.subr.bf16.mxu0 %v5805_v34  ;;  %4283 = vmatprep.subr.bf16.mxu1 %v5923_v50 }
 0x401   :  { %4253 = vmatpush1.bf16.msra.mxu0 %v5808_v41  ;;  %4285 = vmatpush1.bf16.msra.mxu1 %v5928_v58 }
 0x402   :  { %4287 = vmatprep.subr.bf16.mxu0 %v5936_v60  ;;  %4351 = vmatprep.subr.bf16.mxu1 %v5938_v5 }
 0x404   :  { %1694 = vmatmul.mubr.f32.vlgmr.msra.gmra.mrb[12].mxu0 %v1461_v47  ;;  %1765 = vmatmul.mubr.f32.vlgmr.msra.gmra.mrb[22].mxu1 %v1461_v47  ;;  %v7416_v47 = vld [vmem:[#allocation32_spill] sm:$0xff] }
 0x405   :  { %4289 = vmatpush1.bf16.msra.mxu0 %v5940_v10  ;;  %4353 = vmatpush1.bf16.msra.mxu1 %v5943_v14 }
 0x406   :  { %4291 = vmatprep.subr.bf16.mxu0 %v5948_v23  ;;  %4355 = vmatprep.subr.bf16.mxu1 %v5950_v30 }
 0x409   :  { %4293 = vmatpush1.bf16.msra.mxu0 %v5952_v32  ;;  %4357 = vmatpush1.bf16.msra.mxu1 %v5955_v40 }
 0x40a   :  { %4295 = vmatprep.subr.bf16.mxu0 %v5959_v49  ;;  %4359 = vmatprep.subr.bf16.mxu1 %v7338_v4 }
 0x40d   :  { %4297 = vmatpush1.bf16.msra.mxu0 %v7400_v24  ;;  %4361 = vmatpush1.bf16.msra.mxu1 %v7401_v36 }
 0x40e   :  { %4299 = vmatprep.subr.bf16.mxu0 %v7402_v31  ;;  %4363 = vmatprep.subr.bf16.mxu1 %v7403_v12 }
 0x411   :  { %4301 = vmatpush1.bf16.msra.mxu0 %v7404_v51  ;;  %4365 = vmatpush1.bf16.msra.mxu1 %v7405_v27 }
 0x412   :  { %4303 = vmatprep.subr.bf16.mxu0 %v7406_v42  ;;  %4367 = vmatprep.subr.bf16.mxu1 %v7407_v54  ;;  %v7418_v54 = vld [vmem:[#allocation34_spill] sm:$0xff] }
 0x413   :  { %v7456_v42 = vld [vmem:[#allocation82_spill] sm:$0xff] }
 0x415   :  { %4305 = vmatpush1.bf16.msra.mxu0 %v7408_v53  ;;  %4369 = vmatpush1.bf16.msra.mxu1 %v7409_v55  ;;  %v7419_v53 = vld [vmem:[#allocation35_spill] sm:$0xff]  ;;  %v7420_v55 = vld [vmem:[#allocation36_spill] sm:$0xff] }
 0x416   :  { %4307 = vmatprep.subr.bf16.mxu0 %v7410_v59  ;;  %4371 = vmatprep.subr.bf16.mxu1 %v7411_v28  ;;  %v7421_v59 = vld [vmem:[#allocation37_spill] sm:$0xff]  ;;  %v7422_v28 = vld [vmem:[#allocation38_spill] sm:$0xff] }
 0x419   :  { %4309 = vmatpush1.bf16.msra.mxu0 %v7412_v37  ;;  %4373 = vmatpush1.bf16.msra.mxu1 %v7413_v9  ;;  %v7423_v37 = vld [vmem:[#allocation39_spill] sm:$0xff]  ;;  %v7424_v9 = vld [vmem:[#allocation40_spill] sm:$0xff] }
 0x41a   :  { %4311 = vmatprep.subr.bf16.mxu0 %v7414_v18  ;;  %4375 = vmatprep.subr.bf16.mxu1 %v7415_v16  ;;  %v7425_v18 = vld [vmem:[#allocation41_spill] sm:$0xff]  ;;  %v7426_v16 = vld [vmem:[#allocation42_spill] sm:$0xff] }
 0x41d   :  { %4313 = vmatpush1.bf16.msra.mxu0 %v7416_v47  ;;  %4377 = vmatpush1.bf16.msra.mxu1 %v7417_v19  ;;  %v7427_v47 = vld [vmem:[#allocation43_spill] sm:$0xff]  ;;  %v7428_v19 = vld [vmem:[#allocation44_spill] sm:$0xff] }
 0x41e   :  { %4315 = vmatprep.subr.bf16.mxu0 %v7418_v54  ;;  %4379 = vmatprep.subr.bf16.mxu1 %v7419_v53  ;;  %v7429_v54 = vld [vmem:[#allocation45_spill] sm:$0xff]  ;;  %v7430_v53 = vld [vmem:[#allocation46_spill] sm:$0xff] }
 0x421   :  { %4317 = vmatpush1.bf16.msra.mxu0 %v7420_v55  ;;  %4381 = vmatpush1.bf16.msra.mxu1 %v7421_v59  ;;  %v7431_v55 = vld [vmem:[#allocation47_spill] sm:$0xff]  ;;  %v7432_v59 = vld [vmem:[#allocation48_spill] sm:$0xff] }
 0x422   :  { %4319 = vmatprep.subr.bf16.mxu0 %v7422_v28  ;;  %4383 = vmatprep.subr.bf16.mxu1 %v7423_v37  ;;  %v7433_v28 = vld [vmem:[#allocation49_spill] sm:$0xff]  ;;  %v7434_v37 = vld [vmem:[#allocation50_spill] sm:$0xff] }
 0x425   :  { %4321 = vmatpush1.bf16.msra.mxu0 %v7424_v9  ;;  %4385 = vmatpush1.bf16.msra.mxu1 %v7425_v18  ;;  %v7435_v9 = vld [vmem:[#allocation51_spill] sm:$0xff]  ;;  %v7436_v18 = vld [vmem:[#allocation52_spill] sm:$0xff] }
 0x426   :  { %4323 = vmatprep.subr.bf16.mxu0 %v7426_v16  ;;  %4387 = vmatprep.subr.bf16.mxu1 %v7427_v47  ;;  %v7437_v16 = vld [vmem:[#allocation53_spill] sm:$0xff]  ;;  %v7438_v47 = vld [vmem:[#allocation54_spill] sm:$0xff] }
 0x429   :  { %4325 = vmatpush1.bf16.msra.mxu0 %v7428_v19  ;;  %4389 = vmatpush1.bf16.msra.mxu1 %v7429_v54  ;;  %v7439_v19 = vld [vmem:[#allocation55_spill] sm:$0xff]  ;;  %v7440_v54 = vld [vmem:[#allocation56_spill] sm:$0xff] }
 0x42a   :  { %4327 = vmatprep.subr.bf16.mxu0 %v7430_v53  ;;  %4391 = vmatprep.subr.bf16.mxu1 %v7431_v55  ;;  %v7441_v53 = vld [vmem:[#allocation57_spill] sm:$0xff]  ;;  %v7442_v55 = vld [vmem:[#allocation58_spill] sm:$0xff] }
 0x42d   :  { %4329 = vmatpush1.bf16.msra.mxu0 %v7432_v59  ;;  %4393 = vmatpush1.bf16.msra.mxu1 %v7433_v28  ;;  %v7443_v59 = vld [vmem:[#allocation59_spill] sm:$0xff]  ;;  %v7444_v28 = vld [vmem:[#allocation60_spill] sm:$0xff] }
 0x42e   :  { %4331 = vmatprep.subr.bf16.mxu0 %v7434_v37  ;;  %4395 = vmatprep.subr.bf16.mxu1 %v7435_v9  ;;  %v7445_v37 = vld [vmem:[#allocation61_spill] sm:$0xff]  ;;  %v7446_v9 = vld [vmem:[#allocation62_spill] sm:$0xff] }
 0x431   :  { %4333 = vmatpush1.bf16.msra.mxu0 %v7436_v18  ;;  %4397 = vmatpush1.bf16.msra.mxu1 %v7437_v16  ;;  %v7447_v18 = vld [vmem:[#allocation63_spill] sm:$0xff]  ;;  %v7448_v16 = vld [vmem:[#allocation64_spill] sm:$0xff] }
 0x432   :  { %4335 = vmatprep.subr.bf16.mxu0 %v7438_v47  ;;  %4399 = vmatprep.subr.bf16.mxu1 %v7439_v19  ;;  %v7449_v47 = vld [vmem:[#allocation65_spill] sm:$0xff]  ;;  %v7450_v19 = vld [vmem:[#allocation66_spill] sm:$0xff] }
 0x435   :  { %4337 = vmatpush1.bf16.msra.mxu0 %v7440_v54  ;;  %4401 = vmatpush1.bf16.msra.mxu1 %v7441_v53  ;;  %v7451_v54 = vld [vmem:[#allocation67_spill] sm:$0xff]  ;;  %v7452_v53 = vld [vmem:[#allocation68_spill] sm:$0xff] }
 0x436   :  { %4339 = vmatprep.subr.bf16.mxu0 %v7442_v55  ;;  %4403 = vmatprep.subr.bf16.mxu1 %v7443_v59  ;;  %v7453_v55 = vld [vmem:[#allocation69_spill] sm:$0xff] }
 0x437   :  { %v7454_v59 = vld [vmem:[#allocation13_spill] sm:$0xff] }
 0x439   :  { %4341 = vmatpush1.bf16.msra.mxu0 %v7444_v28  ;;  %4405 = vmatpush1.bf16.msra.mxu1 %v7445_v37  ;;  %v7455_v28 = vld [vmem:[#allocation14_spill] sm:$0xff] }
 0x43a   :  { %4343 = vmatprep.subr.bf16.mxu0 %v7446_v9  ;;  %4407 = vmatprep.subr.bf16.mxu1 %v7447_v18 }
 0x43d   :  { %4345 = vmatpush1.bf16.msra.mxu0 %v7448_v16  ;;  %4409 = vmatpush1.bf16.msra.mxu1 %v7449_v47 }
 0x43e   :  { %4347 = vmatprep.subr.bf16.mxu0 %v7450_v19  ;;  %4411 = vmatprep.subr.bf16.mxu1 %v7451_v54  ;;  %v7457_v54 = vld [vmem:[#allocation83_spill] sm:$0xff] }
 0x441   :  { %4349 = vmatpush1.bf16.msra.mxu0 %v7452_v53  ;;  %4413 = vmatpush1.bf16.msra.mxu1 %v7453_v55  ;;  %v7458_v55 = vld [vmem:[#allocation84_spill] sm:$0xff] }
 0x442   :  { %4415 = vmatprep.subr.bf16.mxu0 %v7454_v59  ;;  %4447 = vmatprep.subr.bf16.mxu1 %v7455_v28 }
 0x4b7   :  { %v1528_v37 = vpop.f32.mrb[10].mxu0  ;;  %v1599_v9 = vpop.f32.mrb[36].mxu1 }
 0x4b8   :  { %v1529_v18 = vadd.f32 %v1528_v37, %v7456_v42  ;;  %v1530_v27 = vpop.f32.mrb[11].mxu0  ;;  %v1601_v16 = vpop.f32.mrb[37].mxu1  ;;  %v1600_v31 = vadd.f32 %v1599_v9, %v7458_v55  ;;  %v7459_v9 = vld [vmem:[#allocation72_spill] sm:$0xff] }
 0x4b9   :  { %v1531_v47 = vadd.f32 %v1530_v27, %v6291_v3  ;;  %v1602_v53 = vadd.f32 %v1601_v16, %v7457_v54 }
 0x4ba   :  { %v3480_v51 = vmul.f32 -1.442695, %v1529_v18 }
 0x4bb   :  { %v3481_v19 = vmul.f32 -1.442695, %v1531_v47  ;;  %v3482_v12 = vmul.f32 -1.442695, %v1602_v53 }
 0x4bc   :  { %5367 = vpow2.f32 %v3480_v51 }
 0x4bd   :  { %5369 = vpow2.f32 %v3481_v19 }
 0x4be   :  { %5371 = vpow2.f32 %v3482_v12 }
 0x4bf   :  { %5373 = vtanh.f32 %v1600_v31 }
 0x4c6   :  { %v5368_v59 = vpop.eup %5367 }
 0x4c7   :  { %v5370_v36 = vpop.eup %5369  ;;  %v1607_v28 = vadd.f32 1.0, %v5368_v59 }
 0x4c8   :  { %v1613_v24 = vadd.f32 1.0, %v5370_v36  ;;  %v5372_v37 = vpop.eup %5371  ;;  %v7460_v36 = vld [vmem:[#allocation73_spill] sm:$0xff] }
 0x4c9   :  { %5375 = vrcp.f32 %v1607_v28  ;;  %v5374_v42 = vpop.eup %5373  ;;  %v1620_v51 = vadd.f32 1.0, %v5372_v37 }
 0x4ca   :  { %5377 = vrcp.f32 %v1613_v24 }
 0x4cb   :  { %5379 = vrcp.f32 %v1620_v51 }
 0x4d3   :  { %v5376_v27 = vpop.eup %5375 }
 0x4d4   :  { %v5378_v18 = vpop.eup %5377  ;;  %v1624_v47 = vmul.f32 %v5376_v27, %v5374_v42 }
 0x4d5   :  { %v1623_v19 = vmul.f32 %v5378_v18, %v6423_v0  ;;  %v5380_v0 = vpop.eup %5379 }
 0x4d7   :  { %v1695_v16 = vpop.f32.mrb[12].mxu0  ;;  %v1766_v53 = vpop.f32.mrb[22].mxu1  ;;  %v6541_v54 = vadd.f32 %v1624_v47, %v1623_v19 }
 0x4d8   :  { %v1771_v59 = vadd.f32 %v1695_v16, %v7459_v9  ;;  %v1697_v12 = vpop.f32.mrb[13].mxu0  ;;  %v1768_v31 = vpop.f32.mrb[23].mxu1  ;;  %v5252_v18 = vadd.f32 %v1766_v53, %v6173_v38 }
 0x4d9   :  { %v1772_v28 = vadd.f32 %v1697_v12, %v7460_v36  ;;  %5381 = vtanh.f32 %v6541_v54  ;;  %v5253_v42 = vadd.f32 %v1768_v31, %v6177_v63 }
 0x4da   :  { %v3483_v24 = vmul.f32 -1.442695, %v1771_v59 }
 0x4db   :  { %v3484_v55 = vmul.f32 -1.442695, %v1772_v28  ;;  %v3485_v27 = vmul.f32 -1.442695, %v5253_v42 }
 0x4dc   :  { %5383 = vpow2.f32 %v3483_v24 }
 0x4dd   :  { %5385 = vpow2.f32 %v3484_v55 }
 0x4de   :  { %5387 = vpow2.f32 %v3485_v27  ;;  %v7463_v27 = vld [vmem:[#allocation17_spill] sm:$0xff] }
 0x4df   :  { %5389 = vtanh.f32 %v5252_v18  ;;  %v7464_v18 = vld [vmem:[#allocation18_spill] sm:$0xff] }
 0x4e3   :  { %v5382_v37 = vpop.eup %5381 }
 0x4e4   :  { %v6548_v47 = vmul.f32 %v5382_v37, %v5380_v0 }
 0x4e6   :  { %7461 = vst [vmem:[#allocation70_spill] sm:$0xff] %v6548_v47  ;;  %v5384_v51 = vpop.eup %5383  ;;  %1863 = vmatprep.mubr.f32.mxu0 %v6548_v47  ;;  %1934 = vmatprep.mubr.f32.mxu1 %v6548_v47  ;;  %v7479_v47 = vld [vmem:[#allocation33_spill] sm:$0xff] }
 0x4e7   :  { %v5386_v19 = vpop.eup %5385  ;;  %v1778_v16 = vadd.f32 1.0, %v5384_v51  ;;  %v7465_v51 = vld [vmem:[#allocation19_spill] sm:$0xff] }
 0x4e8   :  { %v1784_v9 = vadd.f32 1.0, %v5386_v19  ;;  %v5388_v55 = vpop.eup %5387  ;;  %v7466_v19 = vld [vmem:[#allocation20_spill] sm:$0xff] }
 0x4e9   :  { %5391 = vrcp.f32 %v1778_v16  ;;  %v5390_v59 = vpop.eup %5389  ;;  %v1791_v53 = vadd.f32 1.0, %v5388_v55  ;;  %v7467_v16 = vld [vmem:[#allocation21_spill] sm:$0xff]  ;;  %v7469_v55 = vld [vmem:[#allocation23_spill] sm:$0xff] }
 0x4ea   :  { %5393 = vrcp.f32 %v1784_v9  ;;  %v7468_v9 = vld [vmem:[#allocation22_spill] sm:$0xff] }
 0x4eb   :  { %5395 = vrcp.f32 %v1791_v53  ;;  %v7474_v53 = vld [vmem:[#allocation28_spill] sm:$0xff] }
 0x4f3   :  { %v5392_v12 = vpop.eup %5391 }
 0x4f4   :  { %v5394_v31 = vpop.eup %5393  ;;  %v1795_v36 = vmul.f32 %v5392_v12, %v5390_v59  ;;  %v7470_v59 = vld [vmem:[#allocation24_spill] sm:$0xff]  ;;  %v7471_v12 = vld [vmem:[#allocation25_spill] sm:$0xff] }
 0x4f5   :  { %v1794_v28 = vmul.f32 %v5394_v31, %v6435_v45  ;;  %v5396_v42 = vpop.eup %5395  ;;  %v7462_v45 = vld [vmem:[#allocation16_spill] sm:$0xff]  ;;  %v7472_v31 = vld [vmem:[#allocation26_spill] sm:$0xff] }
 0x4f7   :  { %v6553_v24 = vadd.f32 %v1795_v36, %v1794_v28  ;;  %v7473_v36 = vld [vmem:[#allocation27_spill] sm:$0xff]  ;;  %v7475_v28 = vld [vmem:[#allocation29_spill] sm:$0xff] }
 0x4f9   :  { %5397 = vtanh.f32 %v6553_v24 }
 0x503   :  { %v5398_v0 = vpop.eup %5397 }
 0x504   :  { %v1798_v37 = vmul.f32 %v5398_v0, %v5396_v42  ;;  %v7476_v42 = vld [vmem:[#allocation30_spill] sm:$0xff]  ;;  %v7477_v0 = vld [vmem:[#allocation31_spill] sm:$0xff] }
 0x506   :  { %1864 = vmatmul.mubr.f32.vlgmr.msra.gmra.mrb[14].mxu0 %v1798_v37  ;;  %1935 = vmatmul.mubr.f32.vlgmr.msra.gmra.mrb[38].mxu1 %v1798_v37 }
 0x507   :  { %4417 = vmatpush1.bf16.msra.mxu0 %v5766_v13  ;;  %4449 = vmatpush1.bf16.msra.mxu1 %v5872_v61 }
 0x508   :  { %4419 = vmatprep.subr.bf16.mxu0 %v5770_v22  ;;  %4451 = vmatprep.subr.bf16.mxu1 %v5875_v62 }
 0x509   :  { %2030 = vmatprep.mubr.f32.mxu0 %v7275_v46  ;;  %2101 = vmatprep.mubr.f32.mxu1 %v7275_v46 }
 0x50b   :  { %4421 = vmatpush1.bf16.msra.mxu0 %v5772_v26  ;;  %4453 = vmatpush1.bf16.msra.mxu1 %v5880_v7 }
 0x50c   :  { %4423 = vmatprep.subr.bf16.mxu0 %v5775_v35  ;;  %4455 = vmatprep.subr.bf16.mxu1 %v5883_v8 }
 0x50f   :  { %4425 = vmatpush1.bf16.msra.mxu0 %v5778_v39  ;;  %4457 = vmatpush1.bf16.msra.mxu1 %v5888_v48 }
 0x510   :  { %4427 = vmatprep.subr.bf16.mxu0 %v5781_v44  ;;  %4459 = vmatprep.subr.bf16.mxu1 %v5891_v17 }
 0x513   :  { %4429 = vmatpush1.bf16.msra.mxu0 %v5784_v52  ;;  %4461 = vmatpush1.bf16.msra.mxu1 %v5896_v56 }
 0x514   :  { %4431 = vmatprep.subr.bf16.mxu0 %v5787_v57  ;;  %4463 = vmatprep.subr.bf16.mxu1 %v5899_v25 }
 0x517   :  { %4433 = vmatpush1.bf16.msra.mxu0 %v5790_v1  ;;  %4465 = vmatpush1.bf16.msra.mxu1 %v5904_v2 }
 0x518   :  { %4435 = vmatprep.subr.bf16.mxu0 %v5793_v6  ;;  %4467 = vmatprep.subr.bf16.mxu1 %v5907_v33 }
 0x51b   :  { %4437 = vmatpush1.bf16.msra.mxu0 %v5796_v15  ;;  %4469 = vmatpush1.bf16.msra.mxu1 %v5912_v11 }
 0x51c   :  { %4439 = vmatprep.subr.bf16.mxu0 %v5799_v20  ;;  %4471 = vmatprep.subr.bf16.mxu1 %v5915_v43 }
 0x51f   :  { %4441 = vmatpush1.bf16.msra.mxu0 %v5802_v29  ;;  %4473 = vmatpush1.bf16.msra.mxu1 %v5920_v21 }
 0x520   :  { %4443 = vmatprep.subr.bf16.mxu0 %v5805_v34  ;;  %4475 = vmatprep.subr.bf16.mxu1 %v5923_v50 }
 0x523   :  { %4445 = vmatpush1.bf16.msra.mxu0 %v5808_v41  ;;  %4477 = vmatpush1.bf16.msra.mxu1 %v5928_v58 }
 0x524   :  { %4479 = vmatprep.subr.bf16.mxu0 %v5936_v60  ;;  %4543 = vmatprep.subr.bf16.mxu1 %v5938_v5 }
 0x526   :  { %2031 = vmatmul.mubr.f32.vlgmr.msra.gmra.mrb[16].mxu0 %v1798_v37  ;;  %2102 = vmatmul.mubr.f32.vlgmr.msra.gmra.mrb[24].mxu1 %v1798_v37  ;;  %v7478_v37 = vld [vmem:[#allocation32_spill] sm:$0xff] }
 0x527   :  { %4481 = vmatpush1.bf16.msra.mxu0 %v5940_v10  ;;  %4545 = vmatpush1.bf16.msra.mxu1 %v5943_v14 }
 0x528   :  { %4483 = vmatprep.subr.bf16.mxu0 %v5948_v23  ;;  %4547 = vmatprep.subr.bf16.mxu1 %v5950_v30 }
 0x52b   :  { %4485 = vmatpush1.bf16.msra.mxu0 %v5952_v32  ;;  %4549 = vmatpush1.bf16.msra.mxu1 %v5955_v40 }
 0x52c   :  { %4487 = vmatprep.subr.bf16.mxu0 %v5959_v49  ;;  %4551 = vmatprep.subr.bf16.mxu1 %v7338_v4 }
 0x52f   :  { %4489 = vmatpush1.bf16.msra.mxu0 %v7462_v45  ;;  %4553 = vmatpush1.bf16.msra.mxu1 %v7463_v27 }
 0x530   :  { %4491 = vmatprep.subr.bf16.mxu0 %v7464_v18  ;;  %4555 = vmatprep.subr.bf16.mxu1 %v7465_v51 }
 0x533   :  { %4493 = vmatpush1.bf16.msra.mxu0 %v7466_v19  ;;  %4557 = vmatpush1.bf16.msra.mxu1 %v7467_v16 }
 0x534   :  { %4495 = vmatprep.subr.bf16.mxu0 %v7468_v9  ;;  %4559 = vmatprep.subr.bf16.mxu1 %v7469_v55  ;;  %v7480_v55 = vld [vmem:[#allocation34_spill] sm:$0xff] }
 0x535   :  { %v7518_v9 = vld [vmem:[#allocation82_spill] sm:$0xff] }
 0x537   :  { %4497 = vmatpush1.bf16.msra.mxu0 %v7470_v59  ;;  %4561 = vmatpush1.bf16.msra.mxu1 %v7471_v12  ;;  %v7481_v59 = vld [vmem:[#allocation35_spill] sm:$0xff]  ;;  %v7482_v12 = vld [vmem:[#allocation36_spill] sm:$0xff] }
 0x538   :  { %4499 = vmatprep.subr.bf16.mxu0 %v7472_v31  ;;  %4563 = vmatprep.subr.bf16.mxu1 %v7473_v36  ;;  %v7483_v31 = vld [vmem:[#allocation37_spill] sm:$0xff]  ;;  %v7484_v36 = vld [vmem:[#allocation38_spill] sm:$0xff] }
 0x53b   :  { %4501 = vmatpush1.bf16.msra.mxu0 %v7474_v53  ;;  %4565 = vmatpush1.bf16.msra.mxu1 %v7475_v28  ;;  %v7485_v53 = vld [vmem:[#allocation39_spill] sm:$0xff]  ;;  %v7486_v28 = vld [vmem:[#allocation40_spill] sm:$0xff] }
 0x53c   :  { %4503 = vmatprep.subr.bf16.mxu0 %v7476_v42  ;;  %4567 = vmatprep.subr.bf16.mxu1 %v7477_v0  ;;  %v7487_v42 = vld [vmem:[#allocation41_spill] sm:$0xff]  ;;  %v7488_v0 = vld [vmem:[#allocation42_spill] sm:$0xff] }
 0x53f   :  { %4505 = vmatpush1.bf16.msra.mxu0 %v7478_v37  ;;  %4569 = vmatpush1.bf16.msra.mxu1 %v7479_v47  ;;  %v7489_v37 = vld [vmem:[#allocation43_spill] sm:$0xff]  ;;  %v7490_v47 = vld [vmem:[#allocation44_spill] sm:$0xff] }
 0x540   :  { %4507 = vmatprep.subr.bf16.mxu0 %v7480_v55  ;;  %4571 = vmatprep.subr.bf16.mxu1 %v7481_v59  ;;  %v7491_v55 = vld [vmem:[#allocation45_spill] sm:$0xff]  ;;  %v7492_v59 = vld [vmem:[#allocation46_spill] sm:$0xff] }
 0x543   :  { %4509 = vmatpush1.bf16.msra.mxu0 %v7482_v12  ;;  %4573 = vmatpush1.bf16.msra.mxu1 %v7483_v31  ;;  %v7493_v12 = vld [vmem:[#allocation47_spill] sm:$0xff]  ;;  %v7494_v31 = vld [vmem:[#allocation48_spill] sm:$0xff] }
 0x544   :  { %4511 = vmatprep.subr.bf16.mxu0 %v7484_v36  ;;  %4575 = vmatprep.subr.bf16.mxu1 %v7485_v53  ;;  %v7495_v36 = vld [vmem:[#allocation49_spill] sm:$0xff]  ;;  %v7496_v53 = vld [vmem:[#allocation50_spill] sm:$0xff] }
 0x547   :  { %4513 = vmatpush1.bf16.msra.mxu0 %v7486_v28  ;;  %4577 = vmatpush1.bf16.msra.mxu1 %v7487_v42  ;;  %v7497_v28 = vld [vmem:[#allocation51_spill] sm:$0xff]  ;;  %v7498_v42 = vld [vmem:[#allocation52_spill] sm:$0xff] }
 0x548   :  { %4515 = vmatprep.subr.bf16.mxu0 %v7488_v0  ;;  %4579 = vmatprep.subr.bf16.mxu1 %v7489_v37  ;;  %v7499_v0 = vld [vmem:[#allocation53_spill] sm:$0xff]  ;;  %v7500_v37 = vld [vmem:[#allocation54_spill] sm:$0xff] }
 0x54b   :  { %4517 = vmatpush1.bf16.msra.mxu0 %v7490_v47  ;;  %4581 = vmatpush1.bf16.msra.mxu1 %v7491_v55  ;;  %v7501_v47 = vld [vmem:[#allocation55_spill] sm:$0xff]  ;;  %v7502_v55 = vld [vmem:[#allocation56_spill] sm:$0xff] }
 0x54c   :  { %4519 = vmatprep.subr.bf16.mxu0 %v7492_v59  ;;  %4583 = vmatprep.subr.bf16.mxu1 %v7493_v12  ;;  %v7503_v59 = vld [vmem:[#allocation57_spill] sm:$0xff]  ;;  %v7504_v12 = vld [vmem:[#allocation58_spill] sm:$0xff] }
 0x54f   :  { %4521 = vmatpush1.bf16.msra.mxu0 %v7494_v31  ;;  %4585 = vmatpush1.bf16.msra.mxu1 %v7495_v36  ;;  %v7505_v31 = vld [vmem:[#allocation59_spill] sm:$0xff]  ;;  %v7506_v36 = vld [vmem:[#allocation60_spill] sm:$0xff] }
 0x550   :  { %4523 = vmatprep.subr.bf16.mxu0 %v7496_v53  ;;  %4587 = vmatprep.subr.bf16.mxu1 %v7497_v28  ;;  %v7507_v53 = vld [vmem:[#allocation61_spill] sm:$0xff]  ;;  %v7508_v28 = vld [vmem:[#allocation62_spill] sm:$0xff] }
 0x553   :  { %4525 = vmatpush1.bf16.msra.mxu0 %v7498_v42  ;;  %4589 = vmatpush1.bf16.msra.mxu1 %v7499_v0  ;;  %v7509_v42 = vld [vmem:[#allocation63_spill] sm:$0xff]  ;;  %v7510_v0 = vld [vmem:[#allocation64_spill] sm:$0xff] }
 0x554   :  { %4527 = vmatprep.subr.bf16.mxu0 %v7500_v37  ;;  %4591 = vmatprep.subr.bf16.mxu1 %v7501_v47  ;;  %v7511_v37 = vld [vmem:[#allocation65_spill] sm:$0xff]  ;;  %v7512_v47 = vld [vmem:[#allocation66_spill] sm:$0xff] }
 0x557   :  { %4529 = vmatpush1.bf16.msra.mxu0 %v7502_v55  ;;  %4593 = vmatpush1.bf16.msra.mxu1 %v7503_v59  ;;  %v7513_v55 = vld [vmem:[#allocation67_spill] sm:$0xff]  ;;  %v7514_v59 = vld [vmem:[#allocation68_spill] sm:$0xff] }
 0x558   :  { %4531 = vmatprep.subr.bf16.mxu0 %v7504_v12  ;;  %4595 = vmatprep.subr.bf16.mxu1 %v7505_v31  ;;  %v7515_v12 = vld [vmem:[#allocation69_spill] sm:$0xff] }
 0x559   :  { %v7516_v31 = vld [vmem:[#allocation13_spill] sm:$0xff] }
 0x55b   :  { %4533 = vmatpush1.bf16.msra.mxu0 %v7506_v36  ;;  %4597 = vmatpush1.bf16.msra.mxu1 %v7507_v53  ;;  %v7517_v36 = vld [vmem:[#allocation14_spill] sm:$0xff] }
 0x55c   :  { %4535 = vmatprep.subr.bf16.mxu0 %v7508_v28  ;;  %4599 = vmatprep.subr.bf16.mxu1 %v7509_v42 }
 0x55f   :  { %4537 = vmatpush1.bf16.msra.mxu0 %v7510_v0  ;;  %4601 = vmatpush1.bf16.msra.mxu1 %v7511_v37 }
 0x560   :  { %4539 = vmatprep.subr.bf16.mxu0 %v7512_v47  ;;  %4603 = vmatprep.subr.bf16.mxu1 %v7513_v55  ;;  %v7519_v55 = vld [vmem:[#allocation83_spill] sm:$0xff] }
 0x563   :  { %4541 = vmatpush1.bf16.msra.mxu0 %v7514_v59  ;;  %4605 = vmatpush1.bf16.msra.mxu1 %v7515_v12  ;;  %v7520_v12 = vld [vmem:[#allocation84_spill] sm:$0xff] }
 0x564   :  { %4607 = vmatprep.subr.bf16.mxu0 %v7516_v31  ;;  %4639 = vmatprep.subr.bf16.mxu1 %v7517_v36 }
 0x5d9   :  { %v1865_v53 = vpop.f32.mrb[14].mxu0  ;;  %v1936_v28 = vpop.f32.mrb[38].mxu1 }
 0x5da   :  { %v1866_v42 = vadd.f32 %v1865_v53, %v7518_v9  ;;  %v1867_v16 = vpop.f32.mrb[15].mxu0  ;;  %v1938_v0 = vpop.f32.mrb[39].mxu1  ;;  %v1937_v18 = vadd.f32 %v1936_v28, %v7520_v12  ;;  %v7521_v28 = vld [vmem:[#allocation74_spill] sm:$0xff] }
 0x5db   :  { %v1868_v37 = vadd.f32 %v1867_v16, %v6291_v3  ;;  %v1939_v59 = vadd.f32 %v1938_v0, %v7519_v55 }
 0x5dc   :  { %v3486_v19 = vmul.f32 -1.442695, %v1866_v42 }
 0x5dd   :  { %v3487_v47 = vmul.f32 -1.442695, %v1868_v37  ;;  %v3488_v51 = vmul.f32 -1.442695, %v1939_v59 }
 0x5de   :  { %5399 = vpow2.f32 %v3486_v19 }
 0x5df   :  { %5401 = vpow2.f32 %v3487_v47 }
 0x5e0   :  { %5403 = vpow2.f32 %v3488_v51 }
 0x5e1   :  { %5405 = vtanh.f32 %v1937_v18 }
 0x5e8   :  { %v5400_v31 = vpop.eup %5399 }
 0x5e9   :  { %v5402_v27 = vpop.eup %5401  ;;  %v1944_v36 = vadd.f32 1.0, %v5400_v31 }
 0x5ea   :  { %v1950_v45 = vadd.f32 1.0, %v5402_v27  ;;  %v5404_v53 = vpop.eup %5403  ;;  %v7522_v27 = vld [vmem:[#allocation75_spill] sm:$0xff] }
 0x5eb   :  { %5407 = vrcp.f32 %v1944_v36  ;;  %v5406_v9 = vpop.eup %5405  ;;  %v1957_v19 = vadd.f32 1.0, %v5404_v53 }
 0x5ec   :  { %5409 = vrcp.f32 %v1950_v45 }
 0x5ed   :  { %5411 = vrcp.f32 %v1957_v19 }
 0x5f5   :  { %v5408_v16 = vpop.eup %5407 }
 0x5f6   :  { %v5410_v42 = vpop.eup %5409  ;;  %v1961_v37 = vmul.f32 %v5408_v16, %v5406_v9 }
 0x5f7   :  { %v1960_v47 = vmul.f32 %v5410_v42, %v6541_v54  ;;  %v5412_v54 = vpop.eup %5411 }
 0x5f9   :  { %v2032_v0 = vpop.f32.mrb[16].mxu0  ;;  %v2103_v59 = vpop.f32.mrb[24].mxu1  ;;  %v6659_v55 = vadd.f32 %v1961_v37, %v1960_v47 }
 0x5fa   :  { %v2108_v31 = vadd.f32 %v2032_v0, %v7521_v28  ;;  %v2034_v51 = vpop.f32.mrb[17].mxu0  ;;  %v2105_v18 = vpop.f32.mrb[25].mxu1  ;;  %v5254_v42 = vadd.f32 %v2103_v59, %v6173_v38 }
 0x5fb   :  { %v2109_v36 = vadd.f32 %v2034_v51, %v7522_v27  ;;  %5413 = vtanh.f32 %v6659_v55  ;;  %v5255_v9 = vadd.f32 %v2105_v18, %v6177_v63 }
 0x5fc   :  { %v3489_v45 = vmul.f32 -1.442695, %v2108_v31 }
 0x5fd   :  { %v3490_v12 = vmul.f32 -1.442695, %v2109_v36  ;;  %v3491_v16 = vmul.f32 -1.442695, %v5255_v9 }
 0x5fe   :  { %5415 = vpow2.f32 %v3489_v45 }
 0x5ff   :  { %5417 = vpow2.f32 %v3490_v12 }
 0x600   :  { %5419 = vpow2.f32 %v3491_v16  ;;  %v7525_v16 = vld [vmem:[#allocation17_spill] sm:$0xff] }
 0x601   :  { %5421 = vtanh.f32 %v5254_v42  ;;  %v7526_v42 = vld [vmem:[#allocation18_spill] sm:$0xff] }
 0x605   :  { %v5414_v53 = vpop.eup %5413 }
 0x606   :  { %v6666_v37 = vmul.f32 %v5414_v53, %v5412_v54 }
 0x608   :  { %7523 = vst [vmem:[#allocation71_spill] sm:$0xff] %v6666_v37  ;;  %v5416_v19 = vpop.eup %5415  ;;  %2200 = vmatprep.mubr.f32.mxu0 %v6666_v37  ;;  %2271 = vmatprep.mubr.f32.mxu1 %v6666_v37  ;;  %v7541_v37 = vld [vmem:[#allocation33_spill] sm:$0xff] }
 0x609   :  { %v5418_v47 = vpop.eup %5417  ;;  %v2115_v0 = vadd.f32 1.0, %v5416_v19  ;;  %v7527_v19 = vld [vmem:[#allocation19_spill] sm:$0xff] }
 0x60a   :  { %v2121_v28 = vadd.f32 1.0, %v5418_v47  ;;  %v5420_v12 = vpop.eup %5419  ;;  %v7528_v47 = vld [vmem:[#allocation20_spill] sm:$0xff] }
 0x60b   :  { %5423 = vrcp.f32 %v2115_v0  ;;  %v5422_v31 = vpop.eup %5421  ;;  %v2128_v59 = vadd.f32 1.0, %v5420_v12  ;;  %v7529_v0 = vld [vmem:[#allocation21_spill] sm:$0xff]  ;;  %v7531_v12 = vld [vmem:[#allocation23_spill] sm:$0xff] }
 0x60c   :  { %5425 = vrcp.f32 %v2121_v28  ;;  %v7530_v28 = vld [vmem:[#allocation22_spill] sm:$0xff] }
 0x60d   :  { %5427 = vrcp.f32 %v2128_v59  ;;  %v7536_v59 = vld [vmem:[#allocation28_spill] sm:$0xff] }
 0x615   :  { %v5424_v51 = vpop.eup %5423 }
 0x616   :  { %v5426_v18 = vpop.eup %5425  ;;  %v2132_v27 = vmul.f32 %v5424_v51, %v5422_v31  ;;  %v7532_v31 = vld [vmem:[#allocation24_spill] sm:$0xff]  ;;  %v7533_v51 = vld [vmem:[#allocation25_spill] sm:$0xff] }
 0x617   :  { %v2131_v36 = vmul.f32 %v5426_v18, %v6553_v24  ;;  %v5428_v9 = vpop.eup %5427  ;;  %v7524_v24 = vld [vmem:[#allocation16_spill] sm:$0xff]  ;;  %v7534_v18 = vld [vmem:[#allocation26_spill] sm:$0xff] }
 0x619   :  { %v6671_v45 = vadd.f32 %v2132_v27, %v2131_v36  ;;  %v7535_v27 = vld [vmem:[#allocation27_spill] sm:$0xff]  ;;  %v7537_v36 = vld [vmem:[#allocation29_spill] sm:$0xff] }
 0x61b   :  { %5429 = vtanh.f32 %v6671_v45 }
 0x625   :  { %v5430_v54 = vpop.eup %5429 }
 0x626   :  { %v2135_v53 = vmul.f32 %v5430_v54, %v5428_v9  ;;  %v7538_v9 = vld [vmem:[#allocation30_spill] sm:$0xff]  ;;  %v7539_v54 = vld [vmem:[#allocation31_spill] sm:$0xff] }
 0x628   :  { %2201 = vmatmul.mubr.f32.vlgmr.msra.gmra.mrb[18].mxu0 %v2135_v53  ;;  %2272 = vmatmul.mubr.f32.vlgmr.msra.gmra.mrb[40].mxu1 %v2135_v53 }
 0x629   :  { %4609 = vmatpush1.bf16.msra.mxu0 %v5766_v13  ;;  %4641 = vmatpush1.bf16.msra.mxu1 %v5872_v61 }
 0x62a   :  { %4611 = vmatprep.subr.bf16.mxu0 %v5770_v22  ;;  %4643 = vmatprep.subr.bf16.mxu1 %v5875_v62 }
 0x62b   :  { %2367 = vmatprep.mubr.f32.mxu0 %v7275_v46  ;;  %2438 = vmatprep.mubr.f32.mxu1 %v7275_v46 }
 0x62d   :  { %4613 = vmatpush1.bf16.msra.mxu0 %v5772_v26  ;;  %4645 = vmatpush1.bf16.msra.mxu1 %v5880_v7 }
 0x62e   :  { %4615 = vmatprep.subr.bf16.mxu0 %v5775_v35  ;;  %4647 = vmatprep.subr.bf16.mxu1 %v5883_v8 }
 0x631   :  { %4617 = vmatpush1.bf16.msra.mxu0 %v5778_v39  ;;  %4649 = vmatpush1.bf16.msra.mxu1 %v5888_v48 }
 0x632   :  { %4619 = vmatprep.subr.bf16.mxu0 %v5781_v44  ;;  %4651 = vmatprep.subr.bf16.mxu1 %v5891_v17 }
 0x635   :  { %4621 = vmatpush1.bf16.msra.mxu0 %v5784_v52  ;;  %4653 = vmatpush1.bf16.msra.mxu1 %v5896_v56 }
 0x636   :  { %4623 = vmatprep.subr.bf16.mxu0 %v5787_v57  ;;  %4655 = vmatprep.subr.bf16.mxu1 %v5899_v25 }
 0x639   :  { %4625 = vmatpush1.bf16.msra.mxu0 %v5790_v1  ;;  %4657 = vmatpush1.bf16.msra.mxu1 %v5904_v2 }
 0x63a   :  { %4627 = vmatprep.subr.bf16.mxu0 %v5793_v6  ;;  %4659 = vmatprep.subr.bf16.mxu1 %v5907_v33 }
 0x63d   :  { %4629 = vmatpush1.bf16.msra.mxu0 %v5796_v15  ;;  %4661 = vmatpush1.bf16.msra.mxu1 %v5912_v11 }
 0x63e   :  { %4631 = vmatprep.subr.bf16.mxu0 %v5799_v20  ;;  %4663 = vmatprep.subr.bf16.mxu1 %v5915_v43 }
 0x641   :  { %4633 = vmatpush1.bf16.msra.mxu0 %v5802_v29  ;;  %4665 = vmatpush1.bf16.msra.mxu1 %v5920_v21 }
 0x642   :  { %4635 = vmatprep.subr.bf16.mxu0 %v5805_v34  ;;  %4667 = vmatprep.subr.bf16.mxu1 %v5923_v50 }
 0x645   :  { %4637 = vmatpush1.bf16.msra.mxu0 %v5808_v41  ;;  %4669 = vmatpush1.bf16.msra.mxu1 %v5928_v58 }
 0x646   :  { %4671 = vmatprep.subr.bf16.mxu0 %v5936_v60  ;;  %4735 = vmatprep.subr.bf16.mxu1 %v5938_v5 }
 0x648   :  { %2368 = vmatmul.mubr.f32.vlgmr.msra.gmra.mrb[20].mxu0 %v2135_v53  ;;  %2439 = vmatmul.mubr.f32.vlgmr.msra.gmra.mrb[26].mxu1 %v2135_v53  ;;  %v7540_v53 = vld [vmem:[#allocation32_spill] sm:$0xff] }
 0x649   :  { %4673 = vmatpush1.bf16.msra.mxu0 %v5940_v10  ;;  %4737 = vmatpush1.bf16.msra.mxu1 %v5943_v14 }
 0x64a   :  { %4675 = vmatprep.subr.bf16.mxu0 %v5948_v23  ;;  %4739 = vmatprep.subr.bf16.mxu1 %v5950_v30 }
 0x64d   :  { %4677 = vmatpush1.bf16.msra.mxu0 %v5952_v32  ;;  %4741 = vmatpush1.bf16.msra.mxu1 %v5955_v40 }
 0x64e   :  { %4679 = vmatprep.subr.bf16.mxu0 %v5959_v49  ;;  %4743 = vmatprep.subr.bf16.mxu1 %v7338_v4 }
 0x651   :  { %4681 = vmatpush1.bf16.msra.mxu0 %v7524_v24  ;;  %4745 = vmatpush1.bf16.msra.mxu1 %v7525_v16 }
 0x652   :  { %4683 = vmatprep.subr.bf16.mxu0 %v7526_v42  ;;  %4747 = vmatprep.subr.bf16.mxu1 %v7527_v19 }
 0x655   :  { %4685 = vmatpush1.bf16.msra.mxu0 %v7528_v47  ;;  %4749 = vmatpush1.bf16.msra.mxu1 %v7529_v0 }
 0x656   :  { %4687 = vmatprep.subr.bf16.mxu0 %v7530_v28  ;;  %4751 = vmatprep.subr.bf16.mxu1 %v7531_v12  ;;  %v7542_v12 = vld [vmem:[#allocation34_spill] sm:$0xff] }
 0x657   :  { %v7580_v28 = vld [vmem:[#allocation82_spill] sm:$0xff] }
 0x659   :  { %4689 = vmatpush1.bf16.msra.mxu0 %v7532_v31  ;;  %4753 = vmatpush1.bf16.msra.mxu1 %v7533_v51  ;;  %v7543_v31 = vld [vmem:[#allocation35_spill] sm:$0xff]  ;;  %v7544_v51 = vld [vmem:[#allocation36_spill] sm:$0xff] }
 0x65a   :  { %4691 = vmatprep.subr.bf16.mxu0 %v7534_v18  ;;  %4755 = vmatprep.subr.bf16.mxu1 %v7535_v27  ;;  %v7545_v18 = vld [vmem:[#allocation37_spill] sm:$0xff]  ;;  %v7546_v27 = vld [vmem:[#allocation38_spill] sm:$0xff] }
 0x65d   :  { %4693 = vmatpush1.bf16.msra.mxu0 %v7536_v59  ;;  %4757 = vmatpush1.bf16.msra.mxu1 %v7537_v36  ;;  %v7547_v59 = vld [vmem:[#allocation39_spill] sm:$0xff]  ;;  %v7548_v36 = vld [vmem:[#allocation40_spill] sm:$0xff] }
 0x65e   :  { %4695 = vmatprep.subr.bf16.mxu0 %v7538_v9  ;;  %4759 = vmatprep.subr.bf16.mxu1 %v7539_v54  ;;  %v7549_v9 = vld [vmem:[#allocation41_spill] sm:$0xff]  ;;  %v7550_v54 = vld [vmem:[#allocation42_spill] sm:$0xff] }
 0x661   :  { %4697 = vmatpush1.bf16.msra.mxu0 %v7540_v53  ;;  %4761 = vmatpush1.bf16.msra.mxu1 %v7541_v37  ;;  %v7551_v53 = vld [vmem:[#allocation43_spill] sm:$0xff]  ;;  %v7552_v37 = vld [vmem:[#allocation44_spill] sm:$0xff] }
 0x662   :  { %4699 = vmatprep.subr.bf16.mxu0 %v7542_v12  ;;  %4763 = vmatprep.subr.bf16.mxu1 %v7543_v31  ;;  %v7553_v12 = vld [vmem:[#allocation45_spill] sm:$0xff]  ;;  %v7554_v31 = vld [vmem:[#allocation46_spill] sm:$0xff] }
 0x665   :  { %4701 = vmatpush1.bf16.msra.mxu0 %v7544_v51  ;;  %4765 = vmatpush1.bf16.msra.mxu1 %v7545_v18  ;;  %v7555_v51 = vld [vmem:[#allocation47_spill] sm:$0xff]  ;;  %v7556_v18 = vld [vmem:[#allocation48_spill] sm:$0xff] }
 0x666   :  { %4703 = vmatprep.subr.bf16.mxu0 %v7546_v27  ;;  %4767 = vmatprep.subr.bf16.mxu1 %v7547_v59  ;;  %v7557_v27 = vld [vmem:[#allocation49_spill] sm:$0xff]  ;;  %v7558_v59 = vld [vmem:[#allocation50_spill] sm:$0xff] }
 0x669   :  { %4705 = vmatpush1.bf16.msra.mxu0 %v7548_v36  ;;  %4769 = vmatpush1.bf16.msra.mxu1 %v7549_v9  ;;  %v7559_v36 = vld [vmem:[#allocation51_spill] sm:$0xff]  ;;  %v7560_v9 = vld [vmem:[#allocation52_spill] sm:$0xff] }
 0x66a   :  { %4707 = vmatprep.subr.bf16.mxu0 %v7550_v54  ;;  %4771 = vmatprep.subr.bf16.mxu1 %v7551_v53  ;;  %v7561_v54 = vld [vmem:[#allocation53_spill] sm:$0xff]  ;;  %v7562_v53 = vld [vmem:[#allocation54_spill] sm:$0xff] }
 0x66d   :  { %4709 = vmatpush1.bf16.msra.mxu0 %v7552_v37  ;;  %4773 = vmatpush1.bf16.msra.mxu1 %v7553_v12  ;;  %v7563_v37 = vld [vmem:[#allocation55_spill] sm:$0xff]  ;;  %v7564_v12 = vld [vmem:[#allocation56_spill] sm:$0xff] }
 0x66e   :  { %4711 = vmatprep.subr.bf16.mxu0 %v7554_v31  ;;  %4775 = vmatprep.subr.bf16.mxu1 %v7555_v51  ;;  %v7565_v31 = vld [vmem:[#allocation57_spill] sm:$0xff]  ;;  %v7566_v51 = vld [vmem:[#allocation58_spill] sm:$0xff] }
 0x671   :  { %4713 = vmatpush1.bf16.msra.mxu0 %v7556_v18  ;;  %4777 = vmatpush1.bf16.msra.mxu1 %v7557_v27  ;;  %v7567_v18 = vld [vmem:[#allocation59_spill] sm:$0xff]  ;;  %v7568_v27 = vld [vmem:[#allocation60_spill] sm:$0xff] }
 0x672   :  { %4715 = vmatprep.subr.bf16.mxu0 %v7558_v59  ;;  %4779 = vmatprep.subr.bf16.mxu1 %v7559_v36  ;;  %v7569_v59 = vld [vmem:[#allocation61_spill] sm:$0xff]  ;;  %v7570_v36 = vld [vmem:[#allocation62_spill] sm:$0xff] }
 0x675   :  { %4717 = vmatpush1.bf16.msra.mxu0 %v7560_v9  ;;  %4781 = vmatpush1.bf16.msra.mxu1 %v7561_v54  ;;  %v7571_v9 = vld [vmem:[#allocation63_spill] sm:$0xff]  ;;  %v7572_v54 = vld [vmem:[#allocation64_spill] sm:$0xff] }
 0x676   :  { %4719 = vmatprep.subr.bf16.mxu0 %v7562_v53  ;;  %4783 = vmatprep.subr.bf16.mxu1 %v7563_v37  ;;  %v7573_v53 = vld [vmem:[#allocation65_spill] sm:$0xff]  ;;  %v7574_v37 = vld [vmem:[#allocation66_spill] sm:$0xff] }
 0x679   :  { %4721 = vmatpush1.bf16.msra.mxu0 %v7564_v12  ;;  %4785 = vmatpush1.bf16.msra.mxu1 %v7565_v31  ;;  %v7575_v12 = vld [vmem:[#allocation67_spill] sm:$0xff]  ;;  %v7576_v31 = vld [vmem:[#allocation68_spill] sm:$0xff] }
 0x67a   :  { %4723 = vmatprep.subr.bf16.mxu0 %v7566_v51  ;;  %4787 = vmatprep.subr.bf16.mxu1 %v7567_v18  ;;  %v7577_v51 = vld [vmem:[#allocation69_spill] sm:$0xff] }
 0x67b   :  { %v7578_v18 = vld [vmem:[#allocation13_spill] sm:$0xff] }
 0x67d   :  { %4725 = vmatpush1.bf16.msra.mxu0 %v7568_v27  ;;  %4789 = vmatpush1.bf16.msra.mxu1 %v7569_v59  ;;  %v7579_v27 = vld [vmem:[#allocation14_spill] sm:$0xff] }
 0x67e   :  { %4727 = vmatprep.subr.bf16.mxu0 %v7570_v36  ;;  %4791 = vmatprep.subr.bf16.mxu1 %v7571_v9 }
 0x681   :  { %4729 = vmatpush1.bf16.msra.mxu0 %v7572_v54  ;;  %4793 = vmatpush1.bf16.msra.mxu1 %v7573_v53 }
 0x682   :  { %4731 = vmatprep.subr.bf16.mxu0 %v7574_v37  ;;  %4795 = vmatprep.subr.bf16.mxu1 %v7575_v12  ;;  %v7581_v12 = vld [vmem:[#allocation83_spill] sm:$0xff] }
 0x685   :  { %4733 = vmatpush1.bf16.msra.mxu0 %v7576_v31  ;;  %4797 = vmatpush1.bf16.msra.mxu1 %v7577_v51  ;;  %v7582_v51 = vld [vmem:[#allocation84_spill] sm:$0xff] }
 0x686   :  { %4799 = vmatprep.subr.bf16.mxu0 %v7578_v18  ;;  %4831 = vmatprep.subr.bf16.mxu1 %v7579_v27 }
 0x6fb   :  { %v2202_v59 = vpop.f32.mrb[18].mxu0  ;;  %v2273_v36 = vpop.f32.mrb[40].mxu1 }
 0x6fc   :  { %v2203_v9 = vadd.f32 %v2202_v59, %v7580_v28  ;;  %v2204_v0 = vpop.f32.mrb[19].mxu0  ;;  %v2275_v54 = vpop.f32.mrb[41].mxu1  ;;  %v2274_v42 = vadd.f32 %v2273_v36, %v7582_v51  ;;  %v7583_v36 = vld [vmem:[#allocation76_spill] sm:$0xff] }
 0x6fd   :  { %v2205_v53 = vadd.f32 %v2204_v0, %v6291_v3  ;;  %v2276_v31 = vadd.f32 %v2275_v54, %v7581_v12 }
 0x6fe   :  { %v3492_v47 = vmul.f32 -1.442695, %v2203_v9 }
 0x6ff   :  { %v3493_v37 = vmul.f32 -1.442695, %v2205_v53  ;;  %v3494_v19 = vmul.f32 -1.442695, %v2276_v31 }
 0x700   :  { %5431 = vpow2.f32 %v3492_v47 }
 0x701   :  { %5433 = vpow2.f32 %v3493_v37 }
 0x702   :  { %5435 = vpow2.f32 %v3494_v19 }
 0x703   :  { %5437 = vtanh.f32 %v2274_v42 }
 0x70a   :  { %v5432_v18 = vpop.eup %5431 }
 0x70b   :  { %v5434_v16 = vpop.eup %5433  ;;  %v2281_v27 = vadd.f32 1.0, %v5432_v18 }
 0x70c   :  { %v2287_v24 = vadd.f32 1.0, %v5434_v16  ;;  %v5436_v59 = vpop.eup %5435  ;;  %v7584_v16 = vld [vmem:[#allocation77_spill] sm:$0xff] }
 0x70d   :  { %5439 = vrcp.f32 %v2281_v27  ;;  %v5438_v28 = vpop.eup %5437  ;;  %v2294_v47 = vadd.f32 1.0, %v5436_v59 }
 0x70e   :  { %5441 = vrcp.f32 %v2287_v24 }
 0x70f   :  { %5443 = vrcp.f32 %v2294_v47 }
 0x717   :  { %v5440_v0 = vpop.eup %5439 }
 0x718   :  { %v5442_v9 = vpop.eup %5441  ;;  %v2298_v53 = vmul.f32 %v5440_v0, %v5438_v28 }
 0x719   :  { %v2297_v37 = vmul.f32 %v5442_v9, %v6659_v55  ;;  %v5444_v55 = vpop.eup %5443 }
 0x71b   :  { %v2369_v54 = vpop.f32.mrb[20].mxu0  ;;  %v2440_v31 = vpop.f32.mrb[26].mxu1  ;;  %v6777_v12 = vadd.f32 %v2298_v53, %v2297_v37 }
 0x71c   :  { %v2445_v18 = vadd.f32 %v2369_v54, %v7583_v36  ;;  %v2371_v19 = vpop.f32.mrb[21].mxu0  ;;  %v2442_v42 = vpop.f32.mrb[27].mxu1  ;;  %v5256_v9 = vadd.f32 %v2440_v31, %v6173_v38 }
 0x71d   :  { %v2446_v27 = vadd.f32 %v2371_v19, %v7584_v16  ;;  %5445 = vtanh.f32 %v6777_v12  ;;  %v5257_v28 = vadd.f32 %v2442_v42, %v6177_v63 }
 0x71e   :  { %v3495_v24 = vmul.f32 -1.442695, %v2445_v18 }
 0x71f   :  { %v3496_v51 = vmul.f32 -1.442695, %v2446_v27  ;;  %v3497_v0 = vmul.f32 -1.442695, %v5257_v28 }
 0x720   :  { %5447 = vpow2.f32 %v3495_v24 }
 0x721   :  { %5449 = vpow2.f32 %v3496_v51 }
 0x722   :  { %5451 = vpow2.f32 %v3497_v0  ;;  %v7587_v0 = vld [vmem:[#allocation17_spill] sm:$0xff] }
 0x723   :  { %5453 = vtanh.f32 %v5256_v9  ;;  %v7588_v9 = vld [vmem:[#allocation18_spill] sm:$0xff] }
 0x727   :  { %v5446_v59 = vpop.eup %5445 }
 0x728   :  { %v6784_v53 = vmul.f32 %v5446_v59, %v5444_v55 }
 0x72a   :  { %7585 = vst [vmem:[#allocation72_spill] sm:$0xff] %v6784_v53  ;;  %v5448_v47 = vpop.eup %5447  ;;  %2537 = vmatprep.mubr.f32.mxu0 %v6784_v53  ;;  %2608 = vmatprep.mubr.f32.mxu1 %v6784_v53  ;;  %v7603_v53 = vld [vmem:[#allocation33_spill] sm:$0xff] }
 0x72b   :  { %v5450_v37 = vpop.eup %5449  ;;  %v2452_v54 = vadd.f32 1.0, %v5448_v47  ;;  %v7589_v47 = vld [vmem:[#allocation19_spill] sm:$0xff] }
 0x72c   :  { %v2458_v36 = vadd.f32 1.0, %v5450_v37  ;;  %v5452_v51 = vpop.eup %5451  ;;  %v7590_v37 = vld [vmem:[#allocation20_spill] sm:$0xff] }
 0x72d   :  { %5455 = vrcp.f32 %v2452_v54  ;;  %v5454_v18 = vpop.eup %5453  ;;  %v2465_v31 = vadd.f32 1.0, %v5452_v51  ;;  %v7591_v54 = vld [vmem:[#allocation21_spill] sm:$0xff]  ;;  %v7593_v51 = vld [vmem:[#allocation23_spill] sm:$0xff] }
 0x72e   :  { %5457 = vrcp.f32 %v2458_v36  ;;  %v7592_v36 = vld [vmem:[#allocation22_spill] sm:$0xff] }
 0x72f   :  { %5459 = vrcp.f32 %v2465_v31  ;;  %v7598_v31 = vld [vmem:[#allocation28_spill] sm:$0xff] }
 0x737   :  { %v5456_v19 = vpop.eup %5455 }
 0x738   :  { %v5458_v42 = vpop.eup %5457  ;;  %v2469_v16 = vmul.f32 %v5456_v19, %v5454_v18  ;;  %v7594_v18 = vld [vmem:[#allocation24_spill] sm:$0xff]  ;;  %v7595_v19 = vld [vmem:[#allocation25_spill] sm:$0xff] }
 0x739   :  { %v2468_v27 = vmul.f32 %v5458_v42, %v6671_v45  ;;  %v5460_v28 = vpop.eup %5459  ;;  %v7586_v45 = vld [vmem:[#allocation16_spill] sm:$0xff]  ;;  %v7596_v42 = vld [vmem:[#allocation26_spill] sm:$0xff] }
 0x73b   :  { %v6789_v24 = vadd.f32 %v2469_v16, %v2468_v27  ;;  %v7597_v16 = vld [vmem:[#allocation27_spill] sm:$0xff]  ;;  %v7599_v27 = vld [vmem:[#allocation29_spill] sm:$0xff] }
 0x73d   :  { %5461 = vtanh.f32 %v6789_v24 }
 0x747   :  { %v5462_v55 = vpop.eup %5461 }
 0x748   :  { %v2472_v59 = vmul.f32 %v5462_v55, %v5460_v28  ;;  %v7600_v28 = vld [vmem:[#allocation30_spill] sm:$0xff]  ;;  %v7601_v55 = vld [vmem:[#allocation31_spill] sm:$0xff] }
 0x74a   :  { %2538 = vmatmul.mubr.f32.vlgmr.msra.gmra.mrb[22].mxu0 %v2472_v59  ;;  %2609 = vmatmul.mubr.f32.vlgmr.msra.gmra.mrb[42].mxu1 %v2472_v59 }
 0x74b   :  { %4801 = vmatpush1.bf16.msra.mxu0 %v5766_v13  ;;  %4833 = vmatpush1.bf16.msra.mxu1 %v5872_v61 }
 0x74c   :  { %4803 = vmatprep.subr.bf16.mxu0 %v5770_v22  ;;  %4835 = vmatprep.subr.bf16.mxu1 %v5875_v62 }
 0x74d   :  { %2704 = vmatprep.mubr.f32.mxu0 %v7275_v46  ;;  %2775 = vmatprep.mubr.f32.mxu1 %v7275_v46 }
 0x74f   :  { %4805 = vmatpush1.bf16.msra.mxu0 %v5772_v26  ;;  %4837 = vmatpush1.bf16.msra.mxu1 %v5880_v7 }
 0x750   :  { %4807 = vmatprep.subr.bf16.mxu0 %v5775_v35  ;;  %4839 = vmatprep.subr.bf16.mxu1 %v5883_v8 }
 0x753   :  { %4809 = vmatpush1.bf16.msra.mxu0 %v5778_v39  ;;  %4841 = vmatpush1.bf16.msra.mxu1 %v5888_v48 }
 0x754   :  { %4811 = vmatprep.subr.bf16.mxu0 %v5781_v44  ;;  %4843 = vmatprep.subr.bf16.mxu1 %v5891_v17 }
 0x757   :  { %4813 = vmatpush1.bf16.msra.mxu0 %v5784_v52  ;;  %4845 = vmatpush1.bf16.msra.mxu1 %v5896_v56 }
 0x758   :  { %4815 = vmatprep.subr.bf16.mxu0 %v5787_v57  ;;  %4847 = vmatprep.subr.bf16.mxu1 %v5899_v25 }
 0x75b   :  { %4817 = vmatpush1.bf16.msra.mxu0 %v5790_v1  ;;  %4849 = vmatpush1.bf16.msra.mxu1 %v5904_v2 }
 0x75c   :  { %4819 = vmatprep.subr.bf16.mxu0 %v5793_v6  ;;  %4851 = vmatprep.subr.bf16.mxu1 %v5907_v33 }
 0x75f   :  { %4821 = vmatpush1.bf16.msra.mxu0 %v5796_v15  ;;  %4853 = vmatpush1.bf16.msra.mxu1 %v5912_v11 }
 0x760   :  { %4823 = vmatprep.subr.bf16.mxu0 %v5799_v20  ;;  %4855 = vmatprep.subr.bf16.mxu1 %v5915_v43 }
 0x763   :  { %4825 = vmatpush1.bf16.msra.mxu0 %v5802_v29  ;;  %4857 = vmatpush1.bf16.msra.mxu1 %v5920_v21 }
 0x764   :  { %4827 = vmatprep.subr.bf16.mxu0 %v5805_v34  ;;  %4859 = vmatprep.subr.bf16.mxu1 %v5923_v50 }
 0x767   :  { %4829 = vmatpush1.bf16.msra.mxu0 %v5808_v41  ;;  %4861 = vmatpush1.bf16.msra.mxu1 %v5928_v58 }
 0x768   :  { %4863 = vmatprep.subr.bf16.mxu0 %v5936_v60  ;;  %4927 = vmatprep.subr.bf16.mxu1 %v5938_v5 }
 0x76a   :  { %2705 = vmatmul.mubr.f32.vlgmr.msra.gmra.mrb[24].mxu0 %v2472_v59  ;;  %2776 = vmatmul.mubr.f32.vlgmr.msra.gmra.mrb[28].mxu1 %v2472_v59  ;;  %v7602_v59 = vld [vmem:[#allocation32_spill] sm:$0xff] }
 0x76b   :  { %4865 = vmatpush1.bf16.msra.mxu0 %v5940_v10  ;;  %4929 = vmatpush1.bf16.msra.mxu1 %v5943_v14 }
 0x76c   :  { %4867 = vmatprep.subr.bf16.mxu0 %v5948_v23  ;;  %4931 = vmatprep.subr.bf16.mxu1 %v5950_v30 }
 0x76f   :  { %4869 = vmatpush1.bf16.msra.mxu0 %v5952_v32  ;;  %4933 = vmatpush1.bf16.msra.mxu1 %v5955_v40 }
 0x770   :  { %4871 = vmatprep.subr.bf16.mxu0 %v5959_v49  ;;  %4935 = vmatprep.subr.bf16.mxu1 %v7338_v4 }
 0x773   :  { %4873 = vmatpush1.bf16.msra.mxu0 %v7586_v45  ;;  %4937 = vmatpush1.bf16.msra.mxu1 %v7587_v0 }
 0x774   :  { %4875 = vmatprep.subr.bf16.mxu0 %v7588_v9  ;;  %4939 = vmatprep.subr.bf16.mxu1 %v7589_v47 }
 0x777   :  { %4877 = vmatpush1.bf16.msra.mxu0 %v7590_v37  ;;  %4941 = vmatpush1.bf16.msra.mxu1 %v7591_v54 }
 0x778   :  { %4879 = vmatprep.subr.bf16.mxu0 %v7592_v36  ;;  %4943 = vmatprep.subr.bf16.mxu1 %v7593_v51  ;;  %v7604_v51 = vld [vmem:[#allocation34_spill] sm:$0xff] }
 0x779   :  { %v7642_v36 = vld [vmem:[#allocation82_spill] sm:$0xff] }
 0x77b   :  { %4881 = vmatpush1.bf16.msra.mxu0 %v7594_v18  ;;  %4945 = vmatpush1.bf16.msra.mxu1 %v7595_v19  ;;  %v7605_v18 = vld [vmem:[#allocation35_spill] sm:$0xff]  ;;  %v7606_v19 = vld [vmem:[#allocation36_spill] sm:$0xff] }
 0x77c   :  { %4883 = vmatprep.subr.bf16.mxu0 %v7596_v42  ;;  %4947 = vmatprep.subr.bf16.mxu1 %v7597_v16  ;;  %v7607_v42 = vld [vmem:[#allocation37_spill] sm:$0xff]  ;;  %v7608_v16 = vld [vmem:[#allocation38_spill] sm:$0xff] }
 0x77f   :  { %4885 = vmatpush1.bf16.msra.mxu0 %v7598_v31  ;;  %4949 = vmatpush1.bf16.msra.mxu1 %v7599_v27  ;;  %v7609_v31 = vld [vmem:[#allocation39_spill] sm:$0xff]  ;;  %v7610_v27 = vld [vmem:[#allocation40_spill] sm:$0xff] }
 0x780   :  { %4887 = vmatprep.subr.bf16.mxu0 %v7600_v28  ;;  %4951 = vmatprep.subr.bf16.mxu1 %v7601_v55  ;;  %v7611_v28 = vld [vmem:[#allocation41_spill] sm:$0xff]  ;;  %v7612_v55 = vld [vmem:[#allocation42_spill] sm:$0xff] }
 0x783   :  { %4889 = vmatpush1.bf16.msra.mxu0 %v7602_v59  ;;  %4953 = vmatpush1.bf16.msra.mxu1 %v7603_v53  ;;  %v7613_v59 = vld [vmem:[#allocation43_spill] sm:$0xff]  ;;  %v7614_v53 = vld [vmem:[#allocation44_spill] sm:$0xff] }
 0x784   :  { %4891 = vmatprep.subr.bf16.mxu0 %v7604_v51  ;;  %4955 = vmatprep.subr.bf16.mxu1 %v7605_v18  ;;  %v7615_v51 = vld [vmem:[#allocation45_spill] sm:$0xff]  ;;  %v7616_v18 = vld [vmem:[#allocation46_spill] sm:$0xff] }
 0x787   :  { %4893 = vmatpush1.bf16.msra.mxu0 %v7606_v19  ;;  %4957 = vmatpush1.bf16.msra.mxu1 %v7607_v42  ;;  %v7617_v19 = vld [vmem:[#allocation47_spill] sm:$0xff]  ;;  %v7618_v42 = vld [vmem:[#allocation48_spill] sm:$0xff] }
 0x788   :  { %4895 = vmatprep.subr.bf16.mxu0 %v7608_v16  ;;  %4959 = vmatprep.subr.bf16.mxu1 %v7609_v31  ;;  %v7619_v16 = vld [vmem:[#allocation49_spill] sm:$0xff]  ;;  %v7620_v31 = vld [vmem:[#allocation50_spill] sm:$0xff] }
 0x78b   :  { %4897 = vmatpush1.bf16.msra.mxu0 %v7610_v27  ;;  %4961 = vmatpush1.bf16.msra.mxu1 %v7611_v28  ;;  %v7621_v27 = vld [vmem:[#allocation51_spill] sm:$0xff]  ;;  %v7622_v28 = vld [vmem:[#allocation52_spill] sm:$0xff] }
 0x78c   :  { %4899 = vmatprep.subr.bf16.mxu0 %v7612_v55  ;;  %4963 = vmatprep.subr.bf16.mxu1 %v7613_v59  ;;  %v7623_v55 = vld [vmem:[#allocation53_spill] sm:$0xff]  ;;  %v7624_v59 = vld [vmem:[#allocation54_spill] sm:$0xff] }
 0x78f   :  { %4901 = vmatpush1.bf16.msra.mxu0 %v7614_v53  ;;  %4965 = vmatpush1.bf16.msra.mxu1 %v7615_v51  ;;  %v7625_v53 = vld [vmem:[#allocation55_spill] sm:$0xff]  ;;  %v7626_v51 = vld [vmem:[#allocation56_spill] sm:$0xff] }
 0x790   :  { %4903 = vmatprep.subr.bf16.mxu0 %v7616_v18  ;;  %4967 = vmatprep.subr.bf16.mxu1 %v7617_v19  ;;  %v7627_v18 = vld [vmem:[#allocation57_spill] sm:$0xff]  ;;  %v7628_v19 = vld [vmem:[#allocation58_spill] sm:$0xff] }
 0x793   :  { %4905 = vmatpush1.bf16.msra.mxu0 %v7618_v42  ;;  %4969 = vmatpush1.bf16.msra.mxu1 %v7619_v16  ;;  %v7629_v42 = vld [vmem:[#allocation59_spill] sm:$0xff]  ;;  %v7630_v16 = vld [vmem:[#allocation60_spill] sm:$0xff] }
 0x794   :  { %4907 = vmatprep.subr.bf16.mxu0 %v7620_v31  ;;  %4971 = vmatprep.subr.bf16.mxu1 %v7621_v27  ;;  %v7631_v31 = vld [vmem:[#allocation61_spill] sm:$0xff]  ;;  %v7632_v27 = vld [vmem:[#allocation62_spill] sm:$0xff] }
 0x797   :  { %4909 = vmatpush1.bf16.msra.mxu0 %v7622_v28  ;;  %4973 = vmatpush1.bf16.msra.mxu1 %v7623_v55  ;;  %v7633_v28 = vld [vmem:[#allocation63_spill] sm:$0xff]  ;;  %v7634_v55 = vld [vmem:[#allocation64_spill] sm:$0xff] }
 0x798   :  { %4911 = vmatprep.subr.bf16.mxu0 %v7624_v59  ;;  %4975 = vmatprep.subr.bf16.mxu1 %v7625_v53  ;;  %v7635_v59 = vld [vmem:[#allocation65_spill] sm:$0xff]  ;;  %v7636_v53 = vld [vmem:[#allocation66_spill] sm:$0xff] }
 0x79b   :  { %4913 = vmatpush1.bf16.msra.mxu0 %v7626_v51  ;;  %4977 = vmatpush1.bf16.msra.mxu1 %v7627_v18  ;;  %v7637_v51 = vld [vmem:[#allocation67_spill] sm:$0xff]  ;;  %v7638_v18 = vld [vmem:[#allocation68_spill] sm:$0xff] }
 0x79c   :  { %4915 = vmatprep.subr.bf16.mxu0 %v7628_v19  ;;  %4979 = vmatprep.subr.bf16.mxu1 %v7629_v42  ;;  %v7639_v19 = vld [vmem:[#allocation69_spill] sm:$0xff] }
 0x79d   :  { %v7640_v42 = vld [vmem:[#allocation13_spill] sm:$0xff] }
 0x79f   :  { %4917 = vmatpush1.bf16.msra.mxu0 %v7630_v16  ;;  %4981 = vmatpush1.bf16.msra.mxu1 %v7631_v31  ;;  %v7641_v16 = vld [vmem:[#allocation14_spill] sm:$0xff] }
 0x7a0   :  { %4919 = vmatprep.subr.bf16.mxu0 %v7632_v27  ;;  %4983 = vmatprep.subr.bf16.mxu1 %v7633_v28 }
 0x7a3   :  { %4921 = vmatpush1.bf16.msra.mxu0 %v7634_v55  ;;  %4985 = vmatpush1.bf16.msra.mxu1 %v7635_v59 }
 0x7a4   :  { %4923 = vmatprep.subr.bf16.mxu0 %v7636_v53  ;;  %4987 = vmatprep.subr.bf16.mxu1 %v7637_v51  ;;  %v7643_v51 = vld [vmem:[#allocation83_spill] sm:$0xff] }
 0x7a7   :  { %4925 = vmatpush1.bf16.msra.mxu0 %v7638_v18  ;;  %4989 = vmatpush1.bf16.msra.mxu1 %v7639_v19  ;;  %v7644_v19 = vld [vmem:[#allocation84_spill] sm:$0xff] }
 0x7a8   :  { %4991 = vmatprep.subr.bf16.mxu0 %v7640_v42  ;;  %5023 = vmatprep.subr.bf16.mxu1 %v7641_v16 }
 0x81d   :  { %v2539_v31 = vpop.f32.mrb[22].mxu0  ;;  %v2610_v27 = vpop.f32.mrb[42].mxu1 }
 0x81e   :  { %v2540_v28 = vadd.f32 %v2539_v31, %v7642_v36  ;;  %v2541_v54 = vpop.f32.mrb[23].mxu0  ;;  %v2612_v55 = vpop.f32.mrb[43].mxu1  ;;  %v2611_v9 = vadd.f32 %v2610_v27, %v7644_v19  ;;  %v7645_v27 = vld [vmem:[#allocation78_spill] sm:$0xff] }
 0x81f   :  { %v2542_v59 = vadd.f32 %v2541_v54, %v6291_v3  ;;  %v2613_v18 = vadd.f32 %v2612_v55, %v7643_v51 }
 0x820   :  { %v3498_v37 = vmul.f32 -1.442695, %v2540_v28 }
 0x821   :  { %v3499_v53 = vmul.f32 -1.442695, %v2542_v59  ;;  %v3500_v47 = vmul.f32 -1.442695, %v2613_v18 }
 0x822   :  { %5463 = vpow2.f32 %v3498_v37 }
 0x823   :  { %5465 = vpow2.f32 %v3499_v53 }
 0x824   :  { %5467 = vpow2.f32 %v3500_v47 }
 0x825   :  { %5469 = vtanh.f32 %v2611_v9 }
 0x82c   :  { %v5464_v42 = vpop.eup %5463 }
 0x82d   :  { %v5466_v0 = vpop.eup %5465  ;;  %v2618_v16 = vadd.f32 1.0, %v5464_v42 }
 0x82e   :  { %v2624_v45 = vadd.f32 1.0, %v5466_v0  ;;  %v5468_v31 = vpop.eup %5467  ;;  %v7646_v0 = vld [vmem:[#allocation79_spill] sm:$0xff] }
 0x82f   :  { %5471 = vrcp.f32 %v2618_v16  ;;  %v5470_v36 = vpop.eup %5469  ;;  %v2631_v37 = vadd.f32 1.0, %v5468_v31 }
 0x830   :  { %5473 = vrcp.f32 %v2624_v45 }
 0x831   :  { %5475 = vrcp.f32 %v2631_v37 }
 0x839   :  { %v5472_v54 = vpop.eup %5471 }
 0x83a   :  { %v5474_v28 = vpop.eup %5473  ;;  %v2635_v59 = vmul.f32 %v5472_v54, %v5470_v36 }
 0x83b   :  { %v2634_v53 = vmul.f32 %v5474_v28, %v6777_v12  ;;  %v5476_v12 = vpop.eup %5475 }
 0x83d   :  { %v2706_v55 = vpop.f32.mrb[24].mxu0  ;;  %v2777_v18 = vpop.f32.mrb[28].mxu1  ;;  %v6895_v51 = vadd.f32 %v2635_v59, %v2634_v53 }
 0x83e   :  { %v2782_v42 = vadd.f32 %v2706_v55, %v7645_v27  ;;  %v2708_v47 = vpop.f32.mrb[25].mxu0  ;;  %v2779_v9 = vpop.f32.mrb[29].mxu1  ;;  %v5258_v28 = vadd.f32 %v2777_v18, %v6173_v38 }
 0x83f   :  { %v2783_v16 = vadd.f32 %v2708_v47, %v7646_v0  ;;  %5477 = vtanh.f32 %v6895_v51  ;;  %v5259_v36 = vadd.f32 %v2779_v9, %v6177_v63 }
 0x840   :  { %v3501_v45 = vmul.f32 -1.442695, %v2782_v42 }
 0x841   :  { %v3502_v19 = vmul.f32 -1.442695, %v2783_v16  ;;  %v3503_v54 = vmul.f32 -1.442695, %v5259_v36 }
 0x842   :  { %5479 = vpow2.f32 %v3501_v45 }
 0x843   :  { %5481 = vpow2.f32 %v3502_v19 }
 0x844   :  { %5483 = vpow2.f32 %v3503_v54  ;;  %v7689_v54 = vld [vmem:[#allocation58_spill] sm:$0xff] }
 0x845   :  { %5485 = vtanh.f32 %v5258_v28  ;;  %v7690_v28 = vld [vmem:[#allocation59_spill] sm:$0xff] }
 0x849   :  { %v5478_v31 = vpop.eup %5477 }
 0x84a   :  { %v6902_v59 = vmul.f32 %v5478_v31, %v5476_v12 }
 0x84c   :  { %v5480_v37 = vpop.eup %5479  ;;  %2874 = vmatprep.mubr.f32.mxu0 %v6902_v59  ;;  %2945 = vmatprep.mubr.f32.mxu1 %v6902_v59 }
 0x84d   :  { %v5482_v53 = vpop.eup %5481  ;;  %v2789_v55 = vadd.f32 1.0, %v5480_v37  ;;  %v7691_v37 = vld [vmem:[#allocation60_spill] sm:$0xff] }
 0x84e   :  { %v2795_v27 = vadd.f32 1.0, %v5482_v53  ;;  %v5484_v19 = vpop.eup %5483  ;;  %v7692_v53 = vld [vmem:[#allocation61_spill] sm:$0xff] }
 0x84f   :  { %5487 = vrcp.f32 %v2789_v55  ;;  %v5486_v42 = vpop.eup %5485  ;;  %v2802_v18 = vadd.f32 1.0, %v5484_v19  ;;  %v7693_v55 = vld [vmem:[#allocation62_spill] sm:$0xff]  ;;  %v7695_v19 = vld [vmem:[#allocation64_spill] sm:$0xff] }
 0x850   :  { %5489 = vrcp.f32 %v2795_v27  ;;  %v7694_v27 = vld [vmem:[#allocation63_spill] sm:$0xff] }
 0x851   :  { %5491 = vrcp.f32 %v2802_v18  ;;  %v7700_v18 = vld [vmem:[#allocation69_spill] sm:$0xff] }
 0x859   :  { %v5488_v47 = vpop.eup %5487 }
 0x85a   :  { %v5490_v9 = vpop.eup %5489  ;;  %v2806_v0 = vmul.f32 %v5488_v47, %v5486_v42  ;;  %v7696_v42 = vld [vmem:[#allocation65_spill] sm:$0xff]  ;;  %v7697_v47 = vld [vmem:[#allocation66_spill] sm:$0xff] }
 0x85b   :  { %v2805_v16 = vmul.f32 %v5490_v9, %v6789_v24  ;;  %v5492_v36 = vpop.eup %5491  ;;  %v7688_v24 = vld [vmem:[#allocation57_spill] sm:$0xff]  ;;  %v7698_v9 = vld [vmem:[#allocation67_spill] sm:$0xff] }
 0x85d   :  { %v6907_v45 = vadd.f32 %v2806_v0, %v2805_v16  ;;  %v7699_v0 = vld [vmem:[#allocation68_spill] sm:$0xff]  ;;  %v3322_v16 = vld [vmem:[#allocation8] sm:$0xff] }
 0x85f   :  { %5493 = vtanh.f32 %v6907_v45 }
 0x869   :  { %v5494_v12 = vpop.eup %5493 }
 0x86a   :  { %v2809_v31 = vmul.f32 %v5494_v12, %v5492_v36  ;;  %v3323_v36 = vld [vmem:[#allocation8 + $0x8] sm:$0xff] }
 0x86b   :  { %v7006_v12 = vpack.c.bf16 %v3323_v36, %v3322_v16 }
 0x86c   :  { %2875 = vmatmul.mubr.f32.vlgmr.msra.gmra.mrb[26].mxu0 %v2809_v31  ;;  %2946 = vmatmul.mubr.f32.vlgmr.msra.gmra.mrb[44].mxu1 %v2809_v31 }
 0x86d   :  { %4993 = vmatpush1.bf16.msra.mxu0 %v5766_v13  ;;  %5025 = vmatpush1.bf16.msra.mxu1 %v5872_v61  ;;  %v7647_v13 = vld [vmem:[#allocation16_spill] sm:$0xff]  ;;  %v7662_v61 = vld [vmem:[#allocation31_spill] sm:$0xff] }
 0x86e   :  { %4995 = vmatprep.subr.bf16.mxu0 %v5770_v22  ;;  %5027 = vmatprep.subr.bf16.mxu1 %v5875_v62  ;;  %v7648_v22 = vld [vmem:[#allocation17_spill] sm:$0xff]  ;;  %v7663_v62 = vld [vmem:[#allocation32_spill] sm:$0xff] }
 0x86f   :  { %3041 = vmatprep.mubr.f32.mxu0 %v7275_v46  ;;  %3112 = vmatprep.mubr.f32.mxu1 %v7275_v46  ;;  %v7686_v46 = vld [vmem:[#allocation55_spill] sm:$0xff] }
 0x871   :  { %4997 = vmatpush1.bf16.msra.mxu0 %v5772_v26  ;;  %5029 = vmatpush1.bf16.msra.mxu1 %v5880_v7  ;;  %v7649_v26 = vld [vmem:[#allocation18_spill] sm:$0xff]  ;;  %v7664_v7 = vld [vmem:[#allocation33_spill] sm:$0xff] }
 0x872   :  { %4999 = vmatprep.subr.bf16.mxu0 %v5775_v35  ;;  %5031 = vmatprep.subr.bf16.mxu1 %v5883_v8  ;;  %v7650_v35 = vld [vmem:[#allocation19_spill] sm:$0xff]  ;;  %v7665_v8 = vld [vmem:[#allocation34_spill] sm:$0xff] }
 0x875   :  { %5001 = vmatpush1.bf16.msra.mxu0 %v5778_v39  ;;  %5033 = vmatpush1.bf16.msra.mxu1 %v5888_v48  ;;  %v7651_v39 = vld [vmem:[#allocation20_spill] sm:$0xff]  ;;  %v7666_v48 = vld [vmem:[#allocation35_spill] sm:$0xff] }
 0x876   :  { %5003 = vmatprep.subr.bf16.mxu0 %v5781_v44  ;;  %5035 = vmatprep.subr.bf16.mxu1 %v5891_v17  ;;  %v7652_v44 = vld [vmem:[#allocation21_spill] sm:$0xff]  ;;  %v7667_v17 = vld [vmem:[#allocation36_spill] sm:$0xff] }
 0x879   :  { %5005 = vmatpush1.bf16.msra.mxu0 %v5784_v52  ;;  %5037 = vmatpush1.bf16.msra.mxu1 %v5896_v56  ;;  %v7653_v52 = vld [vmem:[#allocation22_spill] sm:$0xff]  ;;  %v7668_v56 = vld [vmem:[#allocation37_spill] sm:$0xff] }
 0x87a   :  { %5007 = vmatprep.subr.bf16.mxu0 %v5787_v57  ;;  %5039 = vmatprep.subr.bf16.mxu1 %v5899_v25  ;;  %v7654_v57 = vld [vmem:[#allocation23_spill] sm:$0xff]  ;;  %v7669_v25 = vld [vmem:[#allocation38_spill] sm:$0xff] }
 0x87d   :  { %5009 = vmatpush1.bf16.msra.mxu0 %v5790_v1  ;;  %5041 = vmatpush1.bf16.msra.mxu1 %v5904_v2  ;;  %v7655_v1 = vld [vmem:[#allocation24_spill] sm:$0xff]  ;;  %v7670_v2 = vld [vmem:[#allocation39_spill] sm:$0xff] }
 0x87e   :  { %5011 = vmatprep.subr.bf16.mxu0 %v5793_v6  ;;  %5043 = vmatprep.subr.bf16.mxu1 %v5907_v33  ;;  %v7656_v6 = vld [vmem:[#allocation25_spill] sm:$0xff]  ;;  %v7671_v33 = vld [vmem:[#allocation40_spill] sm:$0xff] }
 0x881   :  { %5013 = vmatpush1.bf16.msra.mxu0 %v5796_v15  ;;  %5045 = vmatpush1.bf16.msra.mxu1 %v5912_v11  ;;  %v7657_v15 = vld [vmem:[#allocation26_spill] sm:$0xff]  ;;  %v7672_v11 = vld [vmem:[#allocation41_spill] sm:$0xff] }
 0x882   :  { %5015 = vmatprep.subr.bf16.mxu0 %v5799_v20  ;;  %5047 = vmatprep.subr.bf16.mxu1 %v5915_v43  ;;  %v7658_v20 = vld [vmem:[#allocation27_spill] sm:$0xff]  ;;  %v7673_v43 = vld [vmem:[#allocation42_spill] sm:$0xff] }
 0x885   :  { %5017 = vmatpush1.bf16.msra.mxu0 %v5802_v29  ;;  %5049 = vmatpush1.bf16.msra.mxu1 %v5920_v21  ;;  %v7659_v29 = vld [vmem:[#allocation28_spill] sm:$0xff]  ;;  %v7674_v21 = vld [vmem:[#allocation43_spill] sm:$0xff] }
 0x886   :  { %5019 = vmatprep.subr.bf16.mxu0 %v5805_v34  ;;  %5051 = vmatprep.subr.bf16.mxu1 %v5923_v50  ;;  %v7660_v34 = vld [vmem:[#allocation29_spill] sm:$0xff]  ;;  %v7675_v50 = vld [vmem:[#allocation44_spill] sm:$0xff] }
 0x889   :  { %5021 = vmatpush1.bf16.msra.mxu0 %v5808_v41  ;;  %5053 = vmatpush1.bf16.msra.mxu1 %v5928_v58  ;;  %v7661_v41 = vld [vmem:[#allocation30_spill] sm:$0xff]  ;;  %v7676_v58 = vld [vmem:[#allocation45_spill] sm:$0xff] }
 0x88a   :  { %5055 = vmatprep.subr.bf16.mxu0 %v5936_v60  ;;  %5119 = vmatprep.subr.bf16.mxu1 %v5938_v5  ;;  %v7677_v60 = vld [vmem:[#allocation46_spill] sm:$0xff]  ;;  %v7678_v5 = vld [vmem:[#allocation47_spill] sm:$0xff] }
 0x88c   :  { %3042 = vmatmul.mubr.f32.vlgmr.msra.gmra.mrb[28].mxu0 %v2809_v31  ;;  %3113 = vmatmul.mubr.f32.vlgmr.msra.gmra.mrb[30].mxu1 %v2809_v31 }
 0x88d   :  { %5057 = vmatpush1.bf16.msra.mxu0 %v5940_v10  ;;  %5121 = vmatpush1.bf16.msra.mxu1 %v5943_v14  ;;  %v7679_v10 = vld [vmem:[#allocation48_spill] sm:$0xff]  ;;  %v7680_v14 = vld [vmem:[#allocation49_spill] sm:$0xff] }
 0x88e   :  { %5059 = vmatprep.subr.bf16.mxu0 %v5948_v23  ;;  %5123 = vmatprep.subr.bf16.mxu1 %v5950_v30  ;;  %v7681_v23 = vld [vmem:[#allocation50_spill] sm:$0xff]  ;;  %v7682_v30 = vld [vmem:[#allocation51_spill] sm:$0xff] }
 0x891   :  { %5061 = vmatpush1.bf16.msra.mxu0 %v5952_v32  ;;  %5125 = vmatpush1.bf16.msra.mxu1 %v5955_v40  ;;  %v7683_v32 = vld [vmem:[#allocation52_spill] sm:$0xff]  ;;  %v7684_v40 = vld [vmem:[#allocation53_spill] sm:$0xff] }
 0x892   :  { %5063 = vmatprep.subr.bf16.mxu0 %v5959_v49  ;;  %5127 = vmatprep.subr.bf16.mxu1 %v7338_v4  ;;  %v7685_v49 = vld [vmem:[#allocation54_spill] sm:$0xff]  ;;  %v7687_v4 = vld [vmem:[#allocation56_spill] sm:$0xff] }
 0x895   :  { %5065 = vmatpush1.bf16.msra.mxu0 %v7647_v13  ;;  %5129 = vmatpush1.bf16.msra.mxu1 %v7648_v22  ;;  %v7701_v22 = vld [vmem:[#allocation82_spill] sm:$0xff] }
 0x896   :  { %5067 = vmatprep.subr.bf16.mxu0 %v7649_v26  ;;  %5131 = vmatprep.subr.bf16.mxu1 %v7650_v35 }
 0x899   :  { %5069 = vmatpush1.bf16.msra.mxu0 %v7651_v39  ;;  %5133 = vmatpush1.bf16.msra.mxu1 %v7652_v44 }
 0x89a   :  { %5071 = vmatprep.subr.bf16.mxu0 %v7653_v52  ;;  %5135 = vmatprep.subr.bf16.mxu1 %v7654_v57 }
 0x89d   :  { %5073 = vmatpush1.bf16.msra.mxu0 %v7655_v1  ;;  %5137 = vmatpush1.bf16.msra.mxu1 %v7656_v6  ;;  %v7702_v1 = vld [vmem:[#allocation83_spill] sm:$0xff] }
 0x89e   :  { %5075 = vmatprep.subr.bf16.mxu0 %v7657_v15  ;;  %5139 = vmatprep.subr.bf16.mxu1 %v7658_v20  ;;  %v7703_v20 = vld [vmem:[#allocation84_spill] sm:$0xff] }
 0x8a1   :  { %5077 = vmatpush1.bf16.msra.mxu0 %v7659_v29  ;;  %5141 = vmatpush1.bf16.msra.mxu1 %v7660_v34 }
 0x8a2   :  { %5079 = vmatprep.subr.bf16.mxu0 %v7661_v41  ;;  %5143 = vmatprep.subr.bf16.mxu1 %v7662_v61 }
 0x8a5   :  { %5081 = vmatpush1.bf16.msra.mxu0 %v7663_v62  ;;  %5145 = vmatpush1.bf16.msra.mxu1 %v7664_v7 }
 0x8a6   :  { %5083 = vmatprep.subr.bf16.mxu0 %v7665_v8  ;;  %5147 = vmatprep.subr.bf16.mxu1 %v7666_v48 }
 0x8a9   :  { %5085 = vmatpush1.bf16.msra.mxu0 %v7667_v17  ;;  %5149 = vmatpush1.bf16.msra.mxu1 %v7668_v56 }
 0x8aa   :  { %5087 = vmatprep.subr.bf16.mxu0 %v7669_v25  ;;  %5151 = vmatprep.subr.bf16.mxu1 %v7670_v2 }
 0x8ad   :  { %5089 = vmatpush1.bf16.msra.mxu0 %v7671_v33  ;;  %5153 = vmatpush1.bf16.msra.mxu1 %v7672_v11 }
 0x8ae   :  { %5091 = vmatprep.subr.bf16.mxu0 %v7673_v43  ;;  %5155 = vmatprep.subr.bf16.mxu1 %v7674_v21  ;;  %v7704_v21 = vld [vmem:[#allocation80_spill] sm:$0xff] }
 0x8b1   :  { %5093 = vmatpush1.bf16.msra.mxu0 %v7675_v50  ;;  %5157 = vmatpush1.bf16.msra.mxu1 %v7676_v58 }
 0x8b2   :  { %5095 = vmatprep.subr.bf16.mxu0 %v7677_v60  ;;  %5159 = vmatprep.subr.bf16.mxu1 %v7678_v5  ;;  %v7705_v5 = vld [vmem:[#allocation81_spill] sm:$0xff] }
 0x8b5   :  { %5097 = vmatpush1.bf16.msra.mxu0 %v7679_v10  ;;  %5161 = vmatpush1.bf16.msra.mxu1 %v7680_v14 }
 0x8b6   :  { %5099 = vmatprep.subr.bf16.mxu0 %v7681_v23  ;;  %5163 = vmatprep.subr.bf16.mxu1 %v7682_v30 }
 0x8b9   :  { %5101 = vmatpush1.bf16.msra.mxu0 %v7683_v32  ;;  %5165 = vmatpush1.bf16.msra.mxu1 %v7684_v40 }
 0x8ba   :  { %5103 = vmatprep.subr.bf16.mxu0 %v7685_v49  ;;  %5167 = vmatprep.subr.bf16.mxu1 %v7686_v46 }
 0x8bd   :  { %5105 = vmatpush1.bf16.msra.mxu0 %v7687_v4  ;;  %5169 = vmatpush1.bf16.msra.mxu1 %v7688_v24 }
 0x8be   :  { %5107 = vmatprep.subr.bf16.mxu0 %v7689_v54  ;;  %5171 = vmatprep.subr.bf16.mxu1 %v7690_v28 }
 0x8c1   :  { %5109 = vmatpush1.bf16.msra.mxu0 %v7691_v37  ;;  %5173 = vmatpush1.bf16.msra.mxu1 %v7692_v53 }
 0x8c2   :  { %5111 = vmatprep.subr.bf16.mxu0 %v7693_v55  ;;  %5175 = vmatprep.subr.bf16.mxu1 %v7694_v27 }
 0x8c5   :  { %5113 = vmatpush1.bf16.msra.mxu0 %v7695_v19  ;;  %5177 = vmatpush1.bf16.msra.mxu1 %v7696_v42 }
 0x8c6   :  { %5115 = vmatprep.subr.bf16.mxu0 %v7697_v47  ;;  %5179 = vmatprep.subr.bf16.mxu1 %v7698_v9  ;;  %v3324_v47 = vld [vmem:[#allocation8 + $0x10] sm:$0xff]  ;;  %v3325_v9 = vld [vmem:[#allocation8 + $0x18] sm:$0xff] }
 0x8c7   :  { %v5186_v36 = vpack.c.bf16 %v3325_v9, %v3324_v47 }
 0x8c9   :  { %5117 = vmatpush1.bf16.msra.mxu0 %v7699_v0  ;;  %5181 = vmatpush1.bf16.msra.mxu1 %v7700_v18 }
 0x8ca   :  { %5183 = vmatprep.subr.bf16.mxu0 %v7006_v12 }
 0x93f   :  { %v2876_v31 = vpop.f32.mrb[26].mxu0  ;;  %v2947_v13 = vpop.f32.mrb[44].mxu1 }
 0x940   :  { %v2877_v26 = vadd.f32 %v2876_v31, %v7701_v22  ;;  %v2878_v35 = vpop.f32.mrb[27].mxu0  ;;  %v2949_v39 = vpop.f32.mrb[45].mxu1  ;;  %v2948_v29 = vadd.f32 %v2947_v13, %v7703_v20  ;;  %v3326_v31 = vld [vmem:[#allocation8 + $0x20] sm:$0xff]  ;;  %v3327_v13 = vld [vmem:[#allocation8 + $0x28] sm:$0xff] }
 0x941   :  { %v2879_v44 = vadd.f32 %v2878_v35, %v6291_v3  ;;  %v2950_v6 = vadd.f32 %v2949_v39, %v7702_v1  ;;  %v5190_v35 = vpack.c.bf16 %v3327_v13, %v3326_v31  ;;  %v3329_v39 = vld [vmem:[#allocation8 + $0x38] sm:$0xff] }
 0x942   :  { %v3504_v52 = vmul.f32 -1.442695, %v2877_v26  ;;  %v7706_v26 = vld [vmem:[#allocation85_spill] sm:$0xff] }
 0x943   :  { %v3505_v57 = vmul.f32 -1.442695, %v2879_v44  ;;  %v3506_v15 = vmul.f32 -1.442695, %v2950_v6 }
 0x944   :  { %5495 = vpow2.f32 %v3504_v52  ;;  %v3330_v52 = vld [vmem:[#allocation8 + $0x40] sm:$0xff] }
 0x945   :  { %5497 = vpow2.f32 %v3505_v57  ;;  %v3331_v57 = vld [vmem:[#allocation8 + $0x48] sm:$0xff] }
 0x946   :  { %5499 = vpow2.f32 %v3506_v15  ;;  %v5198_v6 = vpack.c.bf16 %v3331_v57, %v3330_v52  ;;  %v3332_v15 = vld [vmem:[#allocation8 + $0x50] sm:$0xff] }
 0x947   :  { %5501 = vtanh.f32 %v2948_v29  ;;  %v3333_v29 = vld [vmem:[#allocation8 + $0x58] sm:$0xff] }
 0x94e   :  { %v5496_v34 = vpop.eup %5495 }
 0x94f   :  { %v5498_v41 = vpop.eup %5497  ;;  %v2955_v61 = vadd.f32 1.0, %v5496_v34  ;;  %v5202_v34 = vpack.c.bf16 %v3333_v29, %v3332_v15 }
 0x950   :  { %v2961_v62 = vadd.f32 1.0, %v5498_v41  ;;  %v5500_v7 = vpop.eup %5499  ;;  %v3335_v41 = vld [vmem:[#allocation8 + $0x68] sm:$0xff] }
 0x951   :  { %5503 = vrcp.f32 %v2955_v61  ;;  %v5502_v8 = vpop.eup %5501  ;;  %v2968_v25 = vadd.f32 1.0, %v5500_v7  ;;  %v3337_v7 = vld [vmem:[#allocation8 + $0x78] sm:$0xff] }
 0x952   :  { %5505 = vrcp.f32 %v2961_v62  ;;  %v3336_v62 = vld [vmem:[#allocation8 + $0x70] sm:$0xff] }
 0x953   :  { %5507 = vrcp.f32 %v2968_v25  ;;  %v7710_v25 = vld [vmem:[#allocation72_spill] sm:$0xff] }
 0x95b   :  { %v5504_v48 = vpop.eup %5503 }
 0x95c   :  { %v5506_v17 = vpop.eup %5505  ;;  %v2972_v56 = vmul.f32 %v5504_v48, %v5502_v8  ;;  %v5210_v8 = vpack.c.bf16 %v3337_v7, %v3336_v62  ;;  %v7707_v48 = vld [vmem:[#allocation15_spill] sm:$0xff] }
 0x95d   :  { %v2971_v2 = vmul.f32 %v5506_v17, %v6895_v51  ;;  %v5508_v51 = vpop.eup %5507  ;;  %v7708_v17 = vld [vmem:[#allocation70_spill] sm:$0xff] }
 0x95f   :  { %v3043_v33 = vpop.f32.mrb[28].mxu0  ;;  %v3114_v11 = vpop.f32.mrb[30].mxu1  ;;  %v7014_v43 = vadd.f32 %v2972_v56, %v2971_v2  ;;  %v7709_v56 = vld [vmem:[#allocation71_spill] sm:$0xff] }
 0x960   :  { %v3119_v50 = vadd.f32 %v3043_v33, %v7704_v21  ;;  %v3045_v58 = vpop.f32.mrb[29].mxu0  ;;  %v3116_v60 = vpop.f32.mrb[31].mxu1  ;;  %v5260_v49 = vadd.f32 %v3114_v11, %v6173_v38 }
 0x961   :  { %v3120_v10 = vadd.f32 %v3045_v58, %v7705_v5  ;;  %5509 = vtanh.f32 %v7014_v43  ;;  %v5261_v30 = vadd.f32 %v3116_v60, %v6177_v63 }
 0x962   :  { %v3507_v14 = vmul.f32 -1.442695, %v3119_v50 }
 0x963   :  { %v3508_v23 = vmul.f32 -1.442695, %v3120_v10  ;;  %v3509_v40 = vmul.f32 -1.442695, %v5261_v30 }
 0x964   :  { %5511 = vpow2.f32 %v3507_v14 }
 0x965   :  { %5513 = vpow2.f32 %v3508_v23 }
 0x966   :  { %5515 = vpow2.f32 %v3509_v40 }
 0x967   :  { %5517 = vtanh.f32 %v5260_v49 }
 0x96b   :  { %v5510_v32 = vpop.eup %5509 }
 0x96c   :  { %v7021_v46 = vmul.f32 %v5510_v32, %v5508_v51 }
 0x96e   :  { %v5512_v4 = vpop.eup %5511  ;;  %3211 = vmatprep.mubr.f32.mxu0 %v7021_v46  ;;  %3282 = vmatprep.mubr.f32.mxu1 %v7021_v46 }
 0x96f   :  { %v5514_v24 = vpop.eup %5513  ;;  %v3126_v54 = vadd.f32 1.0, %v5512_v4 }
 0x970   :  { %v3132_v28 = vadd.f32 1.0, %v5514_v24  ;;  %v5516_v63 = vpop.eup %5515 }
 0x971   :  { %5519 = vrcp.f32 %v3126_v54  ;;  %v5518_v37 = vpop.eup %5517  ;;  %v3139_v38 = vadd.f32 1.0, %v5516_v63 }
 0x972   :  { %5521 = vrcp.f32 %v3132_v28 }
 0x973   :  { %5523 = vrcp.f32 %v3139_v38 }
 0x97b   :  { %v5520_v53 = vpop.eup %5519 }
 0x97c   :  { %v5522_v55 = vpop.eup %5521  ;;  %v3143_v27 = vmul.f32 %v5520_v53, %v5518_v37 }
 0x97d   :  { %v3142_v19 = vmul.f32 %v5522_v55, %v6907_v45  ;;  %v5524_v0 = vpop.eup %5523  ;;  %v3328_v45 = vld [vmem:[#allocation8 + $0x30] sm:$0xff] }
 0x97e   :  { %v5194_v44 = vpack.c.bf16 %v3329_v39, %v3328_v45 }
 0x97f   :  { %v3144_v42 = vadd.f32 %v3143_v27, %v3142_v19 }
 0x981   :  { %5525 = vtanh.f32 %v3144_v42 }
 0x98b   :  { %v5526_v18 = vpop.eup %5525 }
 0x98c   :  { %v3146_v16 = vmul.f32 %v5526_v18, %v5524_v0 }
 0x98e   :  { %3212 = vmatmul.mubr.f32.vlgmr.msra.gmra.mrb[30].mxu0 %v3146_v16  ;;  %3283 = vmatmul.mubr.f32.vlgmr.msra.gmra.mrb[46].mxu1 %v3146_v16 }
 0x98f   :  { %5185 = vmatpush3.bf16.msra.mxu0 %v7006_v12  ;;  %3570 = vmatprep.mubr.f32.mxu0 %v7706_v26  ;;  %v3334_v12 = vld [vmem:[#allocation8 + $0x60] sm:$0xff] }
 0x990   :  { %5187 = vmatprep.subr.bf16.mxu0 %v5186_v36  ;;  %v5206_v61 = vpack.c.bf16 %v3335_v41, %v3334_v12 }
 0x993   :  { %5189 = vmatpush3.bf16.msra.mxu0 %v5186_v36 }
 0x994   :  { %5191 = vmatprep.subr.bf16.mxu0 %v5190_v35 }
 0x997   :  { %5193 = vmatpush3.bf16.msra.mxu0 %v5190_v35 }
 0x998   :  { %5195 = vmatprep.subr.bf16.mxu0 %v5194_v44 }
 0x99b   :  { %5197 = vmatpush3.bf16.msra.mxu0 %v5194_v44 }
 0x99c   :  { %5199 = vmatprep.subr.bf16.mxu0 %v5198_v6 }
 0x99f   :  { %5201 = vmatpush3.bf16.msra.mxu0 %v5198_v6 }
 0x9a0   :  { %5203 = vmatprep.subr.bf16.mxu0 %v5202_v34 }
 0x9a3   :  { %5205 = vmatpush3.bf16.msra.mxu0 %v5202_v34 }
 0x9a4   :  { %5207 = vmatprep.subr.bf16.mxu0 %v5206_v61 }
 0x9a7   :  { %5209 = vmatpush3.bf16.msra.mxu0 %v5206_v61 }
 0x9a8   :  { %5211 = vmatprep.subr.bf16.mxu0 %v5210_v8 }
 0x9ab   :  { %5213 = vmatpush3.bf16.msra.mxu0 %v5210_v8 }
 0x9ae   :  { %3571 = vmatmul.mubr.f32.vlgmr.msra.gmra.mrb[32].mxu0 %v7707_v48 }
 0x9af   :  { %3573 = vmatprep.mubr.f32.mxu0 %v7708_v17 }
 0x9b2   :  { %3574 = vmatmul.mubr.f32.gmra.mrb[34].mxu0 %v7709_v56 }
 0x9b3   :  { %3576 = vmatprep.mubr.f32.mxu0 %v7710_v25 }
 0x9b6   :  { %3577 = vmatmul.mubr.f32.gmra.mrb[36].mxu0 %v6902_v59 }
 0x9b7   :  { %3579 = vmatprep.mubr.f32.mxu0 %v7021_v46 }
 0xa61   :  { %v3213_v2 = vpop.f32.mrb[30].mxu0  ;;  %v3284_v33 = vpop.f32.mrb[46].mxu1 }
 0xa62   :  { %v3214_v11 = vadd.f32 %v3213_v2, %v7701_v22  ;;  %v3215_v21 = vpop.f32.mrb[31].mxu0  ;;  %v3286_v50 = vpop.f32.mrb[47].mxu1  ;;  %v3285_v23 = vadd.f32 %v3284_v33, %v7703_v20 }
 0xa63   :  { %v3216_v58 = vadd.f32 %v3215_v21, %v6291_v3  ;;  %v3287_v10 = vadd.f32 %v3286_v50, %v7702_v1  ;;  %v3513_v1 = vld [vmem:[%s7073_s7] ss:$0 sm:$0xff] }
 0xa64   :  { %v3510_v60 = vmul.f32 -1.442695, %v3214_v11 }
 0xa65   :  { %v3511_v5 = vmul.f32 -1.442695, %v3216_v58  ;;  %v3512_v14 = vmul.f32 -1.442695, %v3287_v10 }
 0xa66   :  { %5527 = vpow2.f32 %v3510_v60 }
 0xa67   :  { %5529 = vpow2.f32 %v3511_v5 }
 0xa68   :  { %5531 = vpow2.f32 %v3512_v14 }
 0xa69   :  { %5533 = vtanh.f32 %v3285_v23 }
 0xa70   :  { %v5528_v59 = vpop.eup %5527 }
 0xa71   :  { %v5530_v30 = vpop.eup %5529  ;;  %v3292_v51 = vadd.f32 1.0, %v5528_v59 }
 0xa72   :  { %v3298_v32 = vadd.f32 1.0, %v5530_v30  ;;  %v5532_v22 = vpop.eup %5531 }
 0xa73   :  { %5535 = vrcp.f32 %v3292_v51  ;;  %v5534_v40 = vpop.eup %5533  ;;  %v3305_v4 = vadd.f32 1.0, %v5532_v22 }
 0xa74   :  { %5537 = vrcp.f32 %v3298_v32 }
 0xa75   :  { %5539 = vrcp.f32 %v3305_v4 }
 0xa7d   :  { %v5536_v3 = vpop.eup %5535 }
 0xa7e   :  { %v5538_v49 = vpop.eup %5537  ;;  %v3309_v46 = vmul.f32 %v5536_v3, %v5534_v40 }
 0xa7f   :  { %v3308_v24 = vmul.f32 %v5538_v49, %v7014_v43  ;;  %v5540_v9 = vpop.eup %5539 }
 0xa81   :  { %v3572_v20 = vpop.f32.mrb[32].mxu0  ;;  %v3310_v54 = vadd.f32 %v3309_v46, %v3308_v24 }
 0xa82   :  { %v3417_v28 = vadd.f32 %v3572_v20, %v3513_v1  ;;  %v3411_v63 = vpop.f32.mrb[33].mxu0 }
 0xa83   :  { %v3412_v37 = vadd.f32 %v3513_v1, %v3411_v63  ;;  %5541 = vtanh.f32 %v3310_v54 }
 0xa84   :  { %3451 = vst [vmem:[%s7074_s8 + $0x8] sm:$0xff] %v3417_v28 }
 0xa85   :  { %3450 = vst [vmem:[%s7074_s8] sm:$0xff] %v3412_v37  ;;  %v3575_v43 = vpop.f32.mrb[34].mxu0 }
 0xa86   :  { %v3427_v53 = vadd.f32 %v3575_v43, %v3513_v1  ;;  %v3421_v55 = vpop.f32.mrb[35].mxu0 }
 0xa87   :  { %v3422_v27 = vadd.f32 %v3513_v1, %v3421_v55 }
 0xa88   :  { %3453 = vst [vmem:[%s7074_s8 + $0x18] sm:$0xff] %v3427_v53 }
 0xa89   :  { %3452 = vst [vmem:[%s7074_s8 + $0x10] sm:$0xff] %v3422_v27  ;;  %v3578_v38 = vpop.f32.mrb[36].mxu0 }
 0xa8a   :  { %v3437_v19 = vadd.f32 %v3578_v38, %v3513_v1  ;;  %v3431_v42 = vpop.f32.mrb[37].mxu0 }
 0xa8b   :  { %v3432_v47 = vadd.f32 %v3513_v1, %v3431_v42 }
 0xa8c   :  { %3455 = vst [vmem:[%s7074_s8 + $0x28] sm:$0xff] %v3437_v19 }
 0xa8d   :  { %v5542_v0 = vpop.eup %5541  ;;  %3454 = vst [vmem:[%s7074_s8 + $0x20] sm:$0xff] %v3432_v47 }
 0xa8e   :  { %v3312_v18 = vmul.f32 %v5542_v0, %v5540_v9 }
 0xa90   :  { %3580 = vmatmul.mubr.f32.gmra.mrb[38].mxu0 %v3312_v18 }
 0xb63   :  { %v3581_v16 = vpop.f32.mrb[38].mxu0 }
 0xb64   :  { %v3447_v36 = vadd.f32 %v3581_v16, %v3513_v1  ;;  %v3441_v31 = vpop.f32.mrb[39].mxu0 }
 0xb65   :  { %v3442_v13 = vadd.f32 %v3513_v1, %v3441_v31 }
 0xb66   :  { %3457 = vst [vmem:[%s7074_s8 + $0x38] sm:$0xff] %v3447_v36 }
 0xb67   :  { %3456 = vst [vmem:[%s7074_s8 + $0x30] sm:$0xff] %v3442_v13 }
 0xb68   :  { %3462 = vsyncpa [#allocation4], 1 }
 0xb69   :  { %3463 = vsyncpa [#allocation6], 1 }
 0xb6a   :  { %3464 = vsyncpa [#allocation9], 1 }

</bundles_post_ra>
